<compile_context>
chip_gen: v7x
topology: tpu7x:2x2x1
jax: 0.10.0
libtpu: 0.0.40
codegen_flags: <defaults>
</compile_context>

<pallas_src>
import numpy as np

import jax
import jax.numpy as jnp
from jax import lax
from jax.experimental import pallas as pl
from jax.experimental.pallas import tpu as pltpu

# Scaled VGG16_bn config ('M' = MaxPool2d(2,2)); original is [64,64,M,128,...,512,M]
CFG = [4, 4, 'M', 8, 8, 'M', 16, 16, 16, 'M', 32, 32, 32, 'M', 32, 32, 32, 'M']
IN_CH = 3
HIDDEN = 256        # scaled stand-in for 4096
NUM_CLASSES = 64    # scaled stand-in for 1000


# --------------------------------------------------------------------------
# Static layer plan
# --------------------------------------------------------------------------
def _build_plan(in_ch, h, w):
    plan = []
    c = in_ch
    for v in CFG:
        if v == 'M':
            plan.append(('pool', h, w, c))
            h //= 2
            w //= 2
        else:
            plan.append(('conv', h, w, c, v))
            c = v
    return plan, (c, h, w)          # final (C5, H5, W5)


def _adaptive_pool_matrix(in_size, out_size):
    p = np.zeros((out_size, in_size), np.float32)
    for i in range(out_size):
        start = (i * in_size) // out_size
        end = -((-(i + 1) * in_size) // out_size)   # ceil((i+1)*in/out)
        p[i, start:end] = 1.0 / (end - start)
    return p


# --------------------------------------------------------------------------
# The single fused kernel (one grid step == one sample end-to-end)
# --------------------------------------------------------------------------
def _make_vgg_kernel(plan, h5):
    n_conv = sum(1 for op in plan if op[0] == 'conv')
    n_pool = sum(1 for op in plan if op[0] == 'pool')

    def kernel(*refs):
        pos = 0
        x_ref = refs[pos]; pos += 1
        conv_refs = refs[pos:pos + 2 * n_conv]; pos += 2 * n_conv
        w6_ref, b6_ref, w7_ref, b7_ref, w8_ref, b8_ref = refs[pos:pos + 6]; pos += 6
        pool_refs = refs[pos:pos + n_pool]; pos += n_pool
        fc6_ref, fc7_ref, fc8_ref = refs[pos:pos + 3]

        # ---- tiny constant matrices built once per distinct size (trace-time cache)
        shift_cache = {}

        def shift_mats(h):
            if h not in shift_cache:
                ri = lax.broadcasted_iota(jnp.int32, (h, h), 0)
                ci = lax.broadcasted_iota(jnp.int32, (h, h), 1)
                shift_cache[h] = ((ci == ri - 1).astype(jnp.float32),   # down-shift
                                  (ci == ri + 1).astype(jnp.float32))   # up-shift
            return shift_cache[h]

        colsel_cache = {}

        def col_selectors(k):     # (k, k//2): even / odd column pickers
            if k not in colsel_cache:
                ri = lax.broadcasted_iota(jnp.int32, (k, k // 2), 0)
                ci = lax.broadcasted_iota(jnp.int32, (k, k // 2), 1)
                colsel_cache[k] = ((ri == 2 * ci).astype(jnp.float32),
                                   (ri == 2 * ci + 1).astype(jnp.float32))
            return colsel_cache[k]

        rowsel_cache = {}

        def row_selectors(h):     # (h//2, h): even / odd row pickers
            if h not in rowsel_cache:
                ri = lax.broadcasted_iota(jnp.int32, (h // 2, h), 0)
                ci = lax.broadcasted_iota(jnp.int32, (h // 2, h), 1)
                rowsel_cache[h] = ((ci == 2 * ri).astype(jnp.float32),
                                   (ci == 2 * ri + 1).astype(jnp.float32))
            return rowsel_cache[h]

        # ---- layer bodies
        def conv_bn_relu(xb, t_ref, b_ref, h):
            # xb: (h, cin*w) bf16; t_ref: (3, cin*w, cout*w) bf16; b_ref: (1, cout*w) f32
            y0 = jnp.dot(xb, t_ref[0], preferred_element_type=jnp.float32)
            y1 = jnp.dot(xb, t_ref[1], preferred_element_type=jnp.float32)
            y2 = jnp.dot(xb, t_ref[2], preferred_element_type=jnp.float32)
            sd, su = shift_mats(h)
            acc = (y1
                   + jnp.dot(sd, y0, preferred_element_type=jnp.float32)   # row r-1 tap
                   + jnp.dot(su, y2, preferred_element_type=jnp.float32))  # row r+1 tap
            return jnp.maximum(acc + b_ref[...], 0.0)                      # (h, cout*w) f32

        def maxpool2x2(y, h, k):
            se, so = col_selectors(k)
            cm = jnp.maximum(jnp.dot(y, se, preferred_element_type=jnp.float32),
                             jnp.dot(y, so, preferred_element_type=jnp.float32))
            re, ro = row_selectors(h)
            return jnp.maximum(jnp.dot(re, cm, preferred_element_type=jnp.float32),
                               jnp.dot(ro, cm, preferred_element_type=jnp.float32))

        # ---- feature extractor (whole sample stays in VMEM / vregs)
        cur_f32 = x_ref[...]                         # (H0, C0*W0) f32
        cur_bf = cur_f32.astype(jnp.bfloat16)
        ic = 0
        ip = 0
        for op in plan:
            if op[0] == 'conv':
                _, h, w, cin, cout = op
                t_ref = conv_refs[2 * ic]
                b_ref = conv_refs[2 * ic + 1]
                ic += 1
                cur_f32 = conv_bn_relu(cur_bf, t_ref, b_ref, h)
                cur_bf = cur_f32.astype(jnp.bfloat16)
            else:
                _, h, w, c = op
                cur_f32 = maxpool2x2(cur_f32, h, c * w)
                pool_refs[ip][...] = cur_f32          # exported feature (f32, native layout)
                ip += 1
                cur_bf = cur_f32.astype(jnp.bfloat16)

        # ---- classifier (AdaptiveAvgPool2d((7,7)) + flatten folded into w6 at init)
        # TODO(synk): Dropout is eval-mode identity here.
        acc = b6_ref[...]                             # (1, HIDDEN) f32
        for h in range(h5):
            acc = acc + jnp.dot(cur_bf[h:h + 1, :], w6_ref[h],
                                preferred_element_type=jnp.float32)
        h6 = jnp.maximum(acc, 0.0)                    # post-ReLU (inplace ReLU semantics)
        fc6_ref[...] = h6
        h7 = jnp.maximum(
            jnp.dot(h6.astype(jnp.bfloat16), w7_ref[...],
                    preferred_element_type=jnp.float32) + b7_ref[...], 0.0)
        fc7_ref[...] = h7
        fc8_ref[...] = (jnp.dot(h7.astype(jnp.bfloat16), w8_ref[...],
                                preferred_element_type=jnp.float32) + b8_ref[...])

    return kernel


# --------------------------------------------------------------------------
# Parameter setup: BN + W-axis conv folded into banded matrices, avgpool into fc6
# --------------------------------------------------------------------------
def init_params(key, in_ch=IN_CH, in_hw=32):
    eps = 1e-5
    plan, (c5, h5, w5) = _build_plan(in_ch, in_hw, in_hw)
    params = {"convs": [], "fcs": []}
    k = key
    for op in plan:
        if op[0] != 'conv':
            continue
        _, h, w, cin, cout = op
        k, k1, k2 = jax.random.split(k, 3)
        fan_in = cin * 9
        wconv = np.asarray(jax.random.normal(k1, (3, 3, cin, cout), jnp.float32)) \
            * (2.0 / fan_in) ** 0.5
        bconv = np.asarray(jax.random.normal(k2, (cout,), jnp.float32)) * 0.01
        # BatchNorm2d inference with fresh-init stats, folded into scale/bias.
        gamma = np.ones((cout,), np.float32)
        beta = np.zeros((cout,), np.float32)
        mean = np.zeros((cout,), np.float32)
        var = np.ones((cout,), np.float32)
        scale = gamma / np.sqrt(var + eps)
        bias = beta + (bconv - mean) * scale
        # Banded matrices T[dy][ci*W+jin, co*W+jout] = w[dy, dx, ci, co]*scale[co]
        # with dx = jin - jout + 1 (zero-padding along W handled by the band edges).
        t = np.zeros((3, cin * w, cout * w), np.float32)
        for dy in range(3):
            tv = t[dy].reshape(cin, w, cout, w)
            for dx in range(3):
                for jout in range(w):
                    jin = jout + dx - 1
                    if 0 <= jin < w:
                        tv[:, jin, :, jout] += wconv[dy, dx] * scale[None, :]
        bias_vec = np.repeat(bias, w)[None, :].astype(np.float32)   # (1, cout*w)
        params["convs"].append((jnp.asarray(t, dtype=jnp.bfloat16),
                                jnp.asarray(bias_vec)))

    dims = [c5 * 7 * 7, HIDDEN, HIDDEN, NUM_CLASSES]
    raw = []
    for i in range(3):
        k, k1, k2 = jax.random.split(k, 3)
        wt = np.asarray(jax.random.normal(k1, (dims[i], dims[i + 1]), jnp.float32)) \
            * (1.0 / dims[i]) ** 0.5                  # stored (K, Nout)
        b = np.asarray(jax.random.normal(k2, (dims[i + 1],), jnp.float32)) * 0.01
        raw.append((wt, b))

    # Fold AdaptiveAvgPool2d((7,7)) + torch.flatten ordering into fc6's weight
    # (valid: the avgpool output is never an exported feature).
    ph = _adaptive_pool_matrix(h5, 7)                 # (7, h5)
    pw = _adaptive_pool_matrix(w5, 7)                 # (7, w5)
    w6, b6 = raw[0]
    w6r = w6.reshape(c5, 7, 7, HIDDEN)                # K index = c*49 + ph*7 + pw
    w6f = np.einsum('ph,qw,cpqo->hcwo', ph, pw, w6r).reshape(h5, c5 * w5, HIDDEN)
    params["fcs"] = [
        (jnp.asarray(w6f, dtype=jnp.bfloat16), jnp.asarray(b6[None, :], dtype=jnp.float32)),
        (jnp.asarray(raw[1][0], dtype=jnp.bfloat16),
         jnp.asarray(raw[1][1][None, :], dtype=jnp.float32)),
        (jnp.asarray(raw[2][0], dtype=jnp.bfloat16),
         jnp.asarray(raw[2][1][None, :], dtype=jnp.float32)),
    ]
    return params


# --------------------------------------------------------------------------
# Forward: one pallas_call for the whole network
# --------------------------------------------------------------------------
def _const_spec(shape):
    nd = len(shape)
    return pl.BlockSpec(shape, lambda i, _nd=nd: (0,) * _nd)


def vgg16_bn_forward(x_nchw, params):
    """Returns [pool1, pool2, pool3, pool4, pool5, fc6, fc7, fc8] features."""
    n, c0, h0, w0 = x_nchw.shape
    plan, (c5, h5, w5) = _build_plan(c0, h0, w0)
    n_conv = sum(1 for op in plan if op[0] == 'conv')
    n_pool = sum(1 for op in plan if op[0] == 'pool')

    # (N, C, H, W) -> (N, H, C*W): rows on sublanes, channel-major width on lanes.
    x_hck = jnp.transpose(x_nchw, (0, 2, 1, 3)).reshape(n, h0, c0 * w0)

    inputs = [x_hck]
    in_specs = [pl.BlockSpec((None, h0, c0 * w0), lambda i: (i, 0, 0))]
    for t, b in params["convs"]:
        inputs += [t, b]
        in_specs += [_const_spec(t.shape), _const_spec(b.shape)]
    for wfc, bfc in params["fcs"]:
        inputs += [wfc, bfc]
        in_specs += [_const_spec(wfc.shape), _const_spec(bfc.shape)]

    pool_meta = [(op[3], op[1] // 2, op[2] // 2) for op in plan if op[0] == 'pool']
    out_shapes = [jax.ShapeDtypeStruct((n, ho, c * wo), jnp.float32)
                  for c, ho, wo in pool_meta]
    out_specs = [pl.BlockSpec((None, ho, c * wo), lambda i: (i, 0, 0))
                 for c, ho, wo in pool_meta]
    for d in (HIDDEN, HIDDEN, NUM_CLASSES):
        out_shapes.append(jax.ShapeDtypeStruct((n, 1, d), jnp.float32))
        out_specs.append(pl.BlockSpec((None, 1, d), lambda i: (i, 0, 0)))

    # Advisory cost hint for the XLA scheduler.
    flops = 0
    for op in plan:
        if op[0] == 'conv':
            _, h, w, cin, cout = op
            flops += 2 * h * (cin * w) * (cout * w) * 3 + 2 * h * h * (cout * w) * 2
        else:
            _, h, w, c = op
            kk = c * w
            flops += 2 * h * kk * (kk // 2) * 2 + 2 * (h // 2) * h * (kk // 2) * 2
    flops += 2 * h5 * (c5 * w5) * HIDDEN + 2 * HIDDEN * HIDDEN + 2 * HIDDEN * NUM_CLASSES
    flops *= n
    bytes_accessed = int(x_hck.size * 4
                         + sum(int(a.size) * a.dtype.itemsize for a in inputs[1:])
                         + sum(int(np.prod(s.shape)) * 4 for s in out_shapes))

    outs = pl.pallas_call(
        _make_vgg_kernel(plan, h5),
        out_shape=tuple(out_shapes),
        grid_spec=pltpu.PrefetchScalarGridSpec(
            num_scalar_prefetch=0,
            grid=(n,),
            in_specs=in_specs,
            out_specs=out_specs,
        ),
        compiler_params=pltpu.CompilerParams(dimension_semantics=("parallel",)),
        cost_estimate=pl.CostEstimate(flops=int(flops), transcendentals=0,
                                      bytes_accessed=bytes_accessed),
    )(*inputs)

    pools = outs[:n_pool]
    fc6, fc7, fc8 = outs[n_pool:]
    features = []
    # Exported pool features back to NCHW (terminal layout plumbing only).
    for (c, ho, wo), p in zip(pool_meta, pools):
        features.append(jnp.transpose(p.reshape(n, ho, c, wo), (0, 2, 1, 3)))
    features.append(fc6.reshape(n, HIDDEN))
    features.append(fc7.reshape(n, HIDDEN))
    features.append(fc8.reshape(n, NUM_CLASSES))
    return features


if __name__ == "__main__":
    key = jax.random.PRNGKey(0)
    params = init_params(key)
    # Small input consistent with the module: NCHW, 3 channels, 32x32 spatial.
    x = jax.random.normal(jax.random.fold_in(key, 1234), (2, IN_CH, 32, 32), jnp.float32)

    fwd = jax.jit(vgg16_bn_forward)
    feats = fwd(x, params)
    jax.block_until_ready(feats)

    assert len(feats) == 8
    assert feats[0].shape == (2, 4, 16, 16)
    assert feats[1].shape == (2, 8, 8, 8)
    assert feats[2].shape == (2, 16, 4, 4)
    assert feats[3].shape == (2, 32, 2, 2)
    assert feats[4].shape == (2, 32, 1, 1)
    assert feats[5].shape == (2, HIDDEN)
    assert feats[6].shape == (2, HIDDEN)
    assert feats[7].shape == (2, NUM_CLASSES)
    print("KERNEL_OK")
</pallas_src>

<mosaic_0001>
module attributes {stable_mosaic.version = 11 : i64} {
  func.func @kernel(%arg0: i32, %arg1: memref<1x32x96xf32, #tpu.memory_space<vmem>>, %arg2: memref<3x96x128xbf16, #tpu.memory_space<vmem>>, %arg3: memref<1x128xf32, #tpu.memory_space<vmem>>, %arg4: memref<3x128x128xbf16, #tpu.memory_space<vmem>>, %arg5: memref<1x128xf32, #tpu.memory_space<vmem>>, %arg6: memref<3x64x128xbf16, #tpu.memory_space<vmem>>, %arg7: memref<1x128xf32, #tpu.memory_space<vmem>>, %arg8: memref<3x128x128xbf16, #tpu.memory_space<vmem>>, %arg9: memref<1x128xf32, #tpu.memory_space<vmem>>, %arg10: memref<3x64x128xbf16, #tpu.memory_space<vmem>>, %arg11: memref<1x128xf32, #tpu.memory_space<vmem>>, %arg12: memref<3x128x128xbf16, #tpu.memory_space<vmem>>, %arg13: memref<1x128xf32, #tpu.memory_space<vmem>>, %arg14: memref<3x128x128xbf16, #tpu.memory_space<vmem>>, %arg15: memref<1x128xf32, #tpu.memory_space<vmem>>, %arg16: memref<3x64x128xbf16, #tpu.memory_space<vmem>>, %arg17: memref<1x128xf32, #tpu.memory_space<vmem>>, %arg18: memref<3x128x128xbf16, #tpu.memory_space<vmem>>, %arg19: memref<1x128xf32, #tpu.memory_space<vmem>>, %arg20: memref<3x128x128xbf16, #tpu.memory_space<vmem>>, %arg21: memref<1x128xf32, #tpu.memory_space<vmem>>, %arg22: memref<3x64x64xbf16, #tpu.memory_space<vmem>>, %arg23: memref<1x64xf32, #tpu.memory_space<vmem>>, %arg24: memref<3x64x64xbf16, #tpu.memory_space<vmem>>, %arg25: memref<1x64xf32, #tpu.memory_space<vmem>>, %arg26: memref<3x64x64xbf16, #tpu.memory_space<vmem>>, %arg27: memref<1x64xf32, #tpu.memory_space<vmem>>, %arg28: memref<1x32x256xbf16, #tpu.memory_space<vmem>>, %arg29: memref<1x256xf32, #tpu.memory_space<vmem>>, %arg30: memref<256x256xbf16, #tpu.memory_space<vmem>>, %arg31: memref<1x256xf32, #tpu.memory_space<vmem>>, %arg32: memref<256x64xbf16, #tpu.memory_space<vmem>>, %arg33: memref<1x64xf32, #tpu.memory_space<vmem>>, %arg34: memref<1x16x64xf32, #tpu.memory_space<vmem>>, %arg35: memref<1x8x64xf32, #tpu.memory_space<vmem>>, %arg36: memref<1x4x64xf32, #tpu.memory_space<vmem>>, %arg37: memref<1x2x64xf32, #tpu.memory_space<vmem>>, %arg38: memref<1x1x32xf32, #tpu.memory_space<vmem>>, %arg39: memref<1x1x256xf32, #tpu.memory_space<vmem>>, %arg40: memref<1x1x256xf32, #tpu.memory_space<vmem>>, %arg41: memref<1x1x64xf32, #tpu.memory_space<vmem>>) attributes {dimension_semantics = [#tpu.dimension_semantics<parallel>], iteration_bounds = array<i64: 2>, scalar_prefetch = 0 : i64, scratch_operands = 0 : i64, tpu.core_type = #tpu.core_type<tc>, window_params = [{transform_indices = @transform_0, window_bounds = array<i64: 1, 32, 96>}, {pipeline_mode = #tpu.pipeline_mode<synchronous>, transform_indices = @transform_1, window_bounds = array<i64: 3, 96, 128>}, {pipeline_mode = #tpu.pipeline_mode<synchronous>, transform_indices = @transform_2, window_bounds = array<i64: 1, 128>}, {pipeline_mode = #tpu.pipeline_mode<synchronous>, transform_indices = @transform_3, window_bounds = array<i64: 3, 128, 128>}, {pipeline_mode = #tpu.pipeline_mode<synchronous>, transform_indices = @transform_4, window_bounds = array<i64: 1, 128>}, {pipeline_mode = #tpu.pipeline_mode<synchronous>, transform_indices = @transform_5, window_bounds = array<i64: 3, 64, 128>}, {pipeline_mode = #tpu.pipeline_mode<synchronous>, transform_indices = @transform_6, window_bounds = array<i64: 1, 128>}, {pipeline_mode = #tpu.pipeline_mode<synchronous>, transform_indices = @transform_7, window_bounds = array<i64: 3, 128, 128>}, {pipeline_mode = #tpu.pipeline_mode<synchronous>, transform_indices = @transform_8, window_bounds = array<i64: 1, 128>}, {pipeline_mode = #tpu.pipeline_mode<synchronous>, transform_indices = @transform_9, window_bounds = array<i64: 3, 64, 128>}, {pipeline_mode = #tpu.pipeline_mode<synchronous>, transform_indices = @transform_10, window_bounds = array<i64: 1, 128>}, {pipeline_mode = #tpu.pipeline_mode<synchronous>, transform_indices = @transform_11, window_bounds = array<i64: 3, 128, 128>}, {pipeline_mode = #tpu.pipeline_mode<synchronous>, transform_indices = @transform_12, window_bounds = array<i64: 1, 128>}, {pipeline_mode = #tpu.pipeline_mode<synchronous>, transform_indices = @transform_13, window_bounds = array<i64: 3, 128, 128>}, {pipeline_mode = #tpu.pipeline_mode<synchronous>, transform_indices = @transform_14, window_bounds = array<i64: 1, 128>}, {pipeline_mode = #tpu.pipeline_mode<synchronous>, transform_indices = @transform_15, window_bounds = array<i64: 3, 64, 128>}, {pipeline_mode = #tpu.pipeline_mode<synchronous>, transform_indices = @transform_16, window_bounds = array<i64: 1, 128>}, {pipeline_mode = #tpu.pipeline_mode<synchronous>, transform_indices = @transform_17, window_bounds = array<i64: 3, 128, 128>}, {pipeline_mode = #tpu.pipeline_mode<synchronous>, transform_indices = @transform_18, window_bounds = array<i64: 1, 128>}, {pipeline_mode = #tpu.pipeline_mode<synchronous>, transform_indices = @transform_19, window_bounds = array<i64: 3, 128, 128>}, {pipeline_mode = #tpu.pipeline_mode<synchronous>, transform_indices = @transform_20, window_bounds = array<i64: 1, 128>}, {pipeline_mode = #tpu.pipeline_mode<synchronous>, transform_indices = @transform_21, window_bounds = array<i64: 3, 64, 64>}, {pipeline_mode = #tpu.pipeline_mode<synchronous>, transform_indices = @transform_22, window_bounds = array<i64: 1, 64>}, {pipeline_mode = #tpu.pipeline_mode<synchronous>, transform_indices = @transform_23, window_bounds = array<i64: 3, 64, 64>}, {pipeline_mode = #tpu.pipeline_mode<synchronous>, transform_indices = @transform_24, window_bounds = array<i64: 1, 64>}, {pipeline_mode = #tpu.pipeline_mode<synchronous>, transform_indices = @transform_25, window_bounds = array<i64: 3, 64, 64>}, {pipeline_mode = #tpu.pipeline_mode<synchronous>, transform_indices = @transform_26, window_bounds = array<i64: 1, 64>}, {pipeline_mode = #tpu.pipeline_mode<synchronous>, transform_indices = @transform_27, window_bounds = array<i64: 1, 32, 256>}, {pipeline_mode = #tpu.pipeline_mode<synchronous>, transform_indices = @transform_28, window_bounds = array<i64: 1, 256>}, {pipeline_mode = #tpu.pipeline_mode<synchronous>, transform_indices = @transform_29, window_bounds = array<i64: 256, 256>}, {pipeline_mode = #tpu.pipeline_mode<synchronous>, transform_indices = @transform_30, window_bounds = array<i64: 1, 256>}, {pipeline_mode = #tpu.pipeline_mode<synchronous>, transform_indices = @transform_31, window_bounds = array<i64: 256, 64>}, {pipeline_mode = #tpu.pipeline_mode<synchronous>, transform_indices = @transform_32, window_bounds = array<i64: 1, 64>}, {transform_indices = @transform_33, window_bounds = array<i64: 1, 16, 64>}, {transform_indices = @transform_34, window_bounds = array<i64: 1, 8, 64>}, {transform_indices = @transform_35, window_bounds = array<i64: 1, 4, 64>}, {transform_indices = @transform_36, window_bounds = array<i64: 1, 2, 64>}, {transform_indices = @transform_37, window_bounds = array<i64: 1, 1, 32>}, {transform_indices = @transform_38, window_bounds = array<i64: 1, 1, 256>}, {transform_indices = @transform_39, window_bounds = array<i64: 1, 1, 256>}, {transform_indices = @transform_40, window_bounds = array<i64: 1, 1, 64>}]} {
    %c0 = arith.constant 0 : index
    %c0_0 = arith.constant 0 : index
    %c0_1 = arith.constant 0 : index
    %0 = vector.load %arg1[%c0, %c0_0, %c0_1] : memref<1x32x96xf32, #tpu.memory_space<vmem>>, vector<1x32x96xf32>
    %1 = vector.shape_cast %0 : vector<1x32x96xf32> to vector<32x96xf32>
    %2 = arith.truncf %1 : vector<32x96xf32> to vector<32x96xbf16>
    %c0_2 = arith.constant 0 : index
    %c0_3 = arith.constant 0 : index
    %c0_4 = arith.constant 0 : index
    %3 = vector.load %arg2[%c0_2, %c0_3, %c0_4] : memref<3x96x128xbf16, #tpu.memory_space<vmem>>, vector<1x96x128xbf16>
    %4 = vector.shape_cast %3 : vector<1x96x128xbf16> to vector<96x128xbf16>
    %cst = arith.constant dense<0.000000e+00> : vector<32x128xf32>
    %5 = tpu.matmul %2, %4, %cst {dimension_numbers = #tpu.dot_dimension_numbers<[1], [0], [0], [1], [0, 0, 1, 1], [], []>} : vector<32x96xbf16>, vector<96x128xbf16>, vector<32x128xf32> -> vector<32x128xf32>
    %c1 = arith.constant 1 : index
    %c0_5 = arith.constant 0 : index
    %c0_6 = arith.constant 0 : index
    %6 = vector.load %arg2[%c1, %c0_5, %c0_6] : memref<3x96x128xbf16, #tpu.memory_space<vmem>>, vector<1x96x128xbf16>
    %7 = vector.shape_cast %6 : vector<1x96x128xbf16> to vector<96x128xbf16>
    %cst_7 = arith.constant dense<0.000000e+00> : vector<32x128xf32>
    %8 = tpu.matmul %2, %7, %cst_7 {dimension_numbers = #tpu.dot_dimension_numbers<[1], [0], [0], [1], [0, 0, 1, 1], [], []>} : vector<32x96xbf16>, vector<96x128xbf16>, vector<32x128xf32> -> vector<32x128xf32>
    %c2 = arith.constant 2 : index
    %c0_8 = arith.constant 0 : index
    %c0_9 = arith.constant 0 : index
    %9 = vector.load %arg2[%c2, %c0_8, %c0_9] : memref<3x96x128xbf16, #tpu.memory_space<vmem>>, vector<1x96x128xbf16>
    %10 = vector.shape_cast %9 : vector<1x96x128xbf16> to vector<96x128xbf16>
    %cst_10 = arith.constant dense<0.000000e+00> : vector<32x128xf32>
    %11 = tpu.matmul %2, %10, %cst_10 {dimension_numbers = #tpu.dot_dimension_numbers<[1], [0], [0], [1], [0, 0, 1, 1], [], []>} : vector<32x96xbf16>, vector<96x128xbf16>, vector<32x128xf32> -> vector<32x128xf32>
    %12 = tpu.iota {dimensions = array<i32: 0>} : vector<32x32xi32>
    %13 = tpu.iota {dimensions = array<i32: 1>} : vector<32x32xi32>
    %c1_i32 = arith.constant 1 : i32
    %14 = vector.broadcast %c1_i32 : i32 to vector<32x32xi32>
    %15 = arith.subi %12, %14 : vector<32x32xi32>
    %16 = arith.cmpi eq, %13, %15 : vector<32x32xi32>
    %17 = arith.extui %16 : vector<32x32xi1> to vector<32x32xi32>
    %18 = arith.sitofp %17 : vector<32x32xi32> to vector<32x32xf32>
    %c1_i32_11 = arith.constant 1 : i32
    %19 = vector.broadcast %c1_i32_11 : i32 to vector<32x32xi32>
    %20 = arith.addi %12, %19 : vector<32x32xi32>
    %21 = arith.cmpi eq, %13, %20 : vector<32x32xi32>
    %22 = arith.extui %21 : vector<32x32xi1> to vector<32x32xi32>
    %23 = arith.sitofp %22 : vector<32x32xi32> to vector<32x32xf32>
    %cst_12 = arith.constant dense<0.000000e+00> : vector<32x128xf32>
    %24 = tpu.matmul %18, %5, %cst_12 {dimension_numbers = #tpu.dot_dimension_numbers<[1], [0], [0], [1], [0, 0, 1, 1], [], []>} : vector<32x32xf32>, vector<32x128xf32>, vector<32x128xf32> -> vector<32x128xf32>
    %25 = arith.addf %8, %24 : vector<32x128xf32>
    %cst_13 = arith.constant dense<0.000000e+00> : vector<32x128xf32>
    %26 = tpu.matmul %23, %11, %cst_13 {dimension_numbers = #tpu.dot_dimension_numbers<[1], [0], [0], [1], [0, 0, 1, 1], [], []>} : vector<32x32xf32>, vector<32x128xf32>, vector<32x128xf32> -> vector<32x128xf32>
    %27 = arith.addf %25, %26 : vector<32x128xf32>
    %c0_14 = arith.constant 0 : index
    %c0_15 = arith.constant 0 : index
    %28 = vector.load %arg3[%c0_14, %c0_15] : memref<1x128xf32, #tpu.memory_space<vmem>>, vector<1x128xf32>
    %29 = vector.broadcast %28 : vector<1x128xf32> to vector<32x128xf32>
    %30 = arith.addf %27, %29 : vector<32x128xf32>
    %cst_16 = arith.constant 0.000000e+00 : f32
    %31 = vector.broadcast %cst_16 : f32 to vector<32x128xf32>
    %32 = arith.maximumf %30, %31 : vector<32x128xf32>
    %33 = arith.truncf %32 : vector<32x128xf32> to vector<32x128xbf16>
    %c0_17 = arith.constant 0 : index
    %c0_18 = arith.constant 0 : index
    %c0_19 = arith.constant 0 : index
    %34 = vector.load %arg4[%c0_17, %c0_18, %c0_19] : memref<3x128x128xbf16, #tpu.memory_space<vmem>>, vector<1x128x128xbf16>
    %35 = vector.shape_cast %34 : vector<1x128x128xbf16> to vector<128x128xbf16>
    %cst_20 = arith.constant dense<0.000000e+00> : vector<32x128xf32>
    %36 = tpu.matmul %33, %35, %cst_20 {dimension_numbers = #tpu.dot_dimension_numbers<[1], [0], [0], [1], [0, 0, 1, 1], [], []>} : vector<32x128xbf16>, vector<128x128xbf16>, vector<32x128xf32> -> vector<32x128xf32>
    %c1_21 = arith.constant 1 : index
    %c0_22 = arith.constant 0 : index
    %c0_23 = arith.constant 0 : index
    %37 = vector.load %arg4[%c1_21, %c0_22, %c0_23] : memref<3x128x128xbf16, #tpu.memory_space<vmem>>, vector<1x128x128xbf16>
    %38 = vector.shape_cast %37 : vector<1x128x128xbf16> to vector<128x128xbf16>
    %cst_24 = arith.constant dense<0.000000e+00> : vector<32x128xf32>
    %39 = tpu.matmul %33, %38, %cst_24 {dimension_numbers = #tpu.dot_dimension_numbers<[1], [0], [0], [1], [0, 0, 1, 1], [], []>} : vector<32x128xbf16>, vector<128x128xbf16>, vector<32x128xf32> -> vector<32x128xf32>
    %c2_25 = arith.constant 2 : index
    %c0_26 = arith.constant 0 : index
    %c0_27 = arith.constant 0 : index
    %40 = vector.load %arg4[%c2_25, %c0_26, %c0_27] : memref<3x128x128xbf16, #tpu.memory_space<vmem>>, vector<1x128x128xbf16>
    %41 = vector.shape_cast %40 : vector<1x128x128xbf16> to vector<128x128xbf16>
    %cst_28 = arith.constant dense<0.000000e+00> : vector<32x128xf32>
    %42 = tpu.matmul %33, %41, %cst_28 {dimension_numbers = #tpu.dot_dimension_numbers<[1], [0], [0], [1], [0, 0, 1, 1], [], []>} : vector<32x128xbf16>, vector<128x128xbf16>, vector<32x128xf32> -> vector<32x128xf32>
    %cst_29 = arith.constant dense<0.000000e+00> : vector<32x128xf32>
    %43 = tpu.matmul %18, %36, %cst_29 {dimension_numbers = #tpu.dot_dimension_numbers<[1], [0], [0], [1], [0, 0, 1, 1], [], []>} : vector<32x32xf32>, vector<32x128xf32>, vector<32x128xf32> -> vector<32x128xf32>
    %44 = arith.addf %39, %43 : vector<32x128xf32>
    %cst_30 = arith.constant dense<0.000000e+00> : vector<32x128xf32>
    %45 = tpu.matmul %23, %42, %cst_30 {dimension_numbers = #tpu.dot_dimension_numbers<[1], [0], [0], [1], [0, 0, 1, 1], [], []>} : vector<32x32xf32>, vector<32x128xf32>, vector<32x128xf32> -> vector<32x128xf32>
    %46 = arith.addf %44, %45 : vector<32x128xf32>
    %c0_31 = arith.constant 0 : index
    %c0_32 = arith.constant 0 : index
    %47 = vector.load %arg5[%c0_31, %c0_32] : memref<1x128xf32, #tpu.memory_space<vmem>>, vector<1x128xf32>
    %48 = vector.broadcast %47 : vector<1x128xf32> to vector<32x128xf32>
    %49 = arith.addf %46, %48 : vector<32x128xf32>
    %cst_33 = arith.constant 0.000000e+00 : f32
    %50 = vector.broadcast %cst_33 : f32 to vector<32x128xf32>
    %51 = arith.maximumf %49, %50 : vector<32x128xf32>
    %52 = tpu.iota {dimensions = array<i32: 0>} : vector<128x64xi32>
    %53 = tpu.iota {dimensions = array<i32: 1>} : vector<128x64xi32>
    %c2_i32 = arith.constant 2 : i32
    %54 = vector.broadcast %c2_i32 : i32 to vector<128x64xi32>
    %55 = arith.muli %54, %53 : vector<128x64xi32>
    %56 = arith.cmpi eq, %52, %55 : vector<128x64xi32>
    %57 = arith.extui %56 : vector<128x64xi1> to vector<128x64xi32>
    %58 = arith.sitofp %57 : vector<128x64xi32> to vector<128x64xf32>
    %c2_i32_34 = arith.constant 2 : i32
    %59 = vector.broadcast %c2_i32_34 : i32 to vector<128x64xi32>
    %60 = arith.muli %59, %53 : vector<128x64xi32>
    %c1_i32_35 = arith.constant 1 : i32
    %61 = vector.broadcast %c1_i32_35 : i32 to vector<128x64xi32>
    %62 = arith.addi %60, %61 : vector<128x64xi32>
    %63 = arith.cmpi eq, %52, %62 : vector<128x64xi32>
    %64 = arith.extui %63 : vector<128x64xi1> to vector<128x64xi32>
    %65 = arith.sitofp %64 : vector<128x64xi32> to vector<128x64xf32>
    %cst_36 = arith.constant dense<0.000000e+00> : vector<32x64xf32>
    %66 = tpu.matmul %51, %58, %cst_36 {dimension_numbers = #tpu.dot_dimension_numbers<[1], [0], [0], [1], [0, 0, 1, 1], [], []>} : vector<32x128xf32>, vector<128x64xf32>, vector<32x64xf32> -> vector<32x64xf32>
    %cst_37 = arith.constant dense<0.000000e+00> : vector<32x64xf32>
    %67 = tpu.matmul %51, %65, %cst_37 {dimension_numbers = #tpu.dot_dimension_numbers<[1], [0], [0], [1], [0, 0, 1, 1], [], []>} : vector<32x128xf32>, vector<128x64xf32>, vector<32x64xf32> -> vector<32x64xf32>
    %68 = arith.maximumf %66, %67 : vector<32x64xf32>
    %69 = tpu.iota {dimensions = array<i32: 0>} : vector<16x32xi32>
    %70 = tpu.iota {dimensions = array<i32: 1>} : vector<16x32xi32>
    %c2_i32_38 = arith.constant 2 : i32
    %71 = vector.broadcast %c2_i32_38 : i32 to vector<16x32xi32>
    %72 = arith.muli %71, %69 : vector<16x32xi32>
    %73 = arith.cmpi eq, %70, %72 : vector<16x32xi32>
    %74 = arith.extui %73 : vector<16x32xi1> to vector<16x32xi32>
    %75 = arith.sitofp %74 : vector<16x32xi32> to vector<16x32xf32>
    %c2_i32_39 = arith.constant 2 : i32
    %76 = vector.broadcast %c2_i32_39 : i32 to vector<16x32xi32>
    %77 = arith.muli %76, %69 : vector<16x32xi32>
    %c1_i32_40 = arith.constant 1 : i32
    %78 = vector.broadcast %c1_i32_40 : i32 to vector<16x32xi32>
    %79 = arith.addi %77, %78 : vector<16x32xi32>
    %80 = arith.cmpi eq, %70, %79 : vector<16x32xi32>
    %81 = arith.extui %80 : vector<16x32xi1> to vector<16x32xi32>
    %82 = arith.sitofp %81 : vector<16x32xi32> to vector<16x32xf32>
    %cst_41 = arith.constant dense<0.000000e+00> : vector<16x64xf32>
    %83 = tpu.matmul %75, %68, %cst_41 {dimension_numbers = #tpu.dot_dimension_numbers<[1], [0], [0], [1], [0, 0, 1, 1], [], []>} : vector<16x32xf32>, vector<32x64xf32>, vector<16x64xf32> -> vector<16x64xf32>
    %cst_42 = arith.constant dense<0.000000e+00> : vector<16x64xf32>
    %84 = tpu.matmul %82, %68, %cst_42 {dimension_numbers = #tpu.dot_dimension_numbers<[1], [0], [0], [1], [0, 0, 1, 1], [], []>} : vector<16x32xf32>, vector<32x64xf32>, vector<16x64xf32> -> vector<16x64xf32>
    %85 = arith.maximumf %83, %84 : vector<16x64xf32>
    %c0_43 = arith.constant 0 : index
    %c0_44 = arith.constant 0 : index
    %c0_45 = arith.constant 0 : index
    %86 = vector.load %arg34[%c0_43, %c0_44, %c0_45] : memref<1x16x64xf32, #tpu.memory_space<vmem>>, vector<1x16x64xf32>
    %87 = vector.shape_cast %86 : vector<1x16x64xf32> to vector<16x64xf32>
    %88 = vector.shape_cast %85 : vector<16x64xf32> to vector<1x16x64xf32>
    tpu.vector_store %arg34[%c0_43, %c0_44, %c0_45], %88 {strides = array<i32>} : memref<1x16x64xf32, #tpu.memory_space<vmem>>, vector<1x16x64xf32>,
    %89 = arith.truncf %85 : vector<16x64xf32> to vector<16x64xbf16>
    %c0_46 = arith.constant 0 : index
    %c0_47 = arith.constant 0 : index
    %c0_48 = arith.constant 0 : index
    %90 = vector.load %arg6[%c0_46, %c0_47, %c0_48] : memref<3x64x128xbf16, #tpu.memory_space<vmem>>, vector<1x64x128xbf16>
    %91 = vector.shape_cast %90 : vector<1x64x128xbf16> to vector<64x128xbf16>
    %cst_49 = arith.constant dense<0.000000e+00> : vector<16x128xf32>
    %92 = tpu.matmul %89, %91, %cst_49 {dimension_numbers = #tpu.dot_dimension_numbers<[1], [0], [0], [1], [0, 0, 1, 1], [], []>} : vector<16x64xbf16>, vector<64x128xbf16>, vector<16x128xf32> -> vector<16x128xf32>
    %c1_50 = arith.constant 1 : index
    %c0_51 = arith.constant 0 : index
    %c0_52 = arith.constant 0 : index
    %93 = vector.load %arg6[%c1_50, %c0_51, %c0_52] : memref<3x64x128xbf16, #tpu.memory_space<vmem>>, vector<1x64x128xbf16>
    %94 = vector.shape_cast %93 : vector<1x64x128xbf16> to vector<64x128xbf16>
    %cst_53 = arith.constant dense<0.000000e+00> : vector<16x128xf32>
    %95 = tpu.matmul %89, %94, %cst_53 {dimension_numbers = #tpu.dot_dimension_numbers<[1], [0], [0], [1], [0, 0, 1, 1], [], []>} : vector<16x64xbf16>, vector<64x128xbf16>, vector<16x128xf32> -> vector<16x128xf32>
    %c2_54 = arith.constant 2 : index
    %c0_55 = arith.constant 0 : index
    %c0_56 = arith.constant 0 : index
    %96 = vector.load %arg6[%c2_54, %c0_55, %c0_56] : memref<3x64x128xbf16, #tpu.memory_space<vmem>>, vector<1x64x128xbf16>
    %97 = vector.shape_cast %96 : vector<1x64x128xbf16> to vector<64x128xbf16>
    %cst_57 = arith.constant dense<0.000000e+00> : vector<16x128xf32>
    %98 = tpu.matmul %89, %97, %cst_57 {dimension_numbers = #tpu.dot_dimension_numbers<[1], [0], [0], [1], [0, 0, 1, 1], [], []>} : vector<16x64xbf16>, vector<64x128xbf16>, vector<16x128xf32> -> vector<16x128xf32>
    %99 = tpu.iota {dimensions = array<i32: 0>} : vector<16x16xi32>
    %100 = tpu.iota {dimensions = array<i32: 1>} : vector<16x16xi32>
    %c1_i32_58 = arith.constant 1 : i32
    %101 = vector.broadcast %c1_i32_58 : i32 to vector<16x16xi32>
    %102 = arith.subi %99, %101 : vector<16x16xi32>
    %103 = arith.cmpi eq, %100, %102 : vector<16x16xi32>
    %104 = arith.extui %103 : vector<16x16xi1> to vector<16x16xi32>
    %105 = arith.sitofp %104 : vector<16x16xi32> to vector<16x16xf32>
    %c1_i32_59 = arith.constant 1 : i32
    %106 = vector.broadcast %c1_i32_59 : i32 to vector<16x16xi32>
    %107 = arith.addi %99, %106 : vector<16x16xi32>
    %108 = arith.cmpi eq, %100, %107 : vector<16x16xi32>
    %109 = arith.extui %108 : vector<16x16xi1> to vector<16x16xi32>
    %110 = arith.sitofp %109 : vector<16x16xi32> to vector<16x16xf32>
    %cst_60 = arith.constant dense<0.000000e+00> : vector<16x128xf32>
    %111 = tpu.matmul %105, %92, %cst_60 {dimension_numbers = #tpu.dot_dimension_numbers<[1], [0], [0], [1], [0, 0, 1, 1], [], []>} : vector<16x16xf32>, vector<16x128xf32>, vector<16x128xf32> -> vector<16x128xf32>
    %112 = arith.addf %95, %111 : vector<16x128xf32>
    %cst_61 = arith.constant dense<0.000000e+00> : vector<16x128xf32>
    %113 = tpu.matmul %110, %98, %cst_61 {dimension_numbers = #tpu.dot_dimension_numbers<[1], [0], [0], [1], [0, 0, 1, 1], [], []>} : vector<16x16xf32>, vector<16x128xf32>, vector<16x128xf32> -> vector<16x128xf32>
    %114 = arith.addf %112, %113 : vector<16x128xf32>
    %c0_62 = arith.constant 0 : index
    %c0_63 = arith.constant 0 : index
    %115 = vector.load %arg7[%c0_62, %c0_63] : memref<1x128xf32, #tpu.memory_space<vmem>>, vector<1x128xf32>
    %116 = vector.broadcast %115 : vector<1x128xf32> to vector<16x128xf32>
    %117 = arith.addf %114, %116 : vector<16x128xf32>
    %cst_64 = arith.constant 0.000000e+00 : f32
    %118 = vector.broadcast %cst_64 : f32 to vector<16x128xf32>
    %119 = arith.maximumf %117, %118 : vector<16x128xf32>
    %120 = arith.truncf %119 : vector<16x128xf32> to vector<16x128xbf16>
    %c0_65 = arith.constant 0 : index
    %c0_66 = arith.constant 0 : index
    %c0_67 = arith.constant 0 : index
    %121 = vector.load %arg8[%c0_65, %c0_66, %c0_67] : memref<3x128x128xbf16, #tpu.memory_space<vmem>>, vector<1x128x128xbf16>
    %122 = vector.shape_cast %121 : vector<1x128x128xbf16> to vector<128x128xbf16>
    %cst_68 = arith.constant dense<0.000000e+00> : vector<16x128xf32>
    %123 = tpu.matmul %120, %122, %cst_68 {dimension_numbers = #tpu.dot_dimension_numbers<[1], [0], [0], [1], [0, 0, 1, 1], [], []>} : vector<16x128xbf16>, vector<128x128xbf16>, vector<16x128xf32> -> vector<16x128xf32>
    %c1_69 = arith.constant 1 : index
    %c0_70 = arith.constant 0 : index
    %c0_71 = arith.constant 0 : index
    %124 = vector.load %arg8[%c1_69, %c0_70, %c0_71] : memref<3x128x128xbf16, #tpu.memory_space<vmem>>, vector<1x128x128xbf16>
    %125 = vector.shape_cast %124 : vector<1x128x128xbf16> to vector<128x128xbf16>
    %cst_72 = arith.constant dense<0.000000e+00> : vector<16x128xf32>
    %126 = tpu.matmul %120, %125, %cst_72 {dimension_numbers = #tpu.dot_dimension_numbers<[1], [0], [0], [1], [0, 0, 1, 1], [], []>} : vector<16x128xbf16>, vector<128x128xbf16>, vector<16x128xf32> -> vector<16x128xf32>
    %c2_73 = arith.constant 2 : index
    %c0_74 = arith.constant 0 : index
    %c0_75 = arith.constant 0 : index
    %127 = vector.load %arg8[%c2_73, %c0_74, %c0_75] : memref<3x128x128xbf16, #tpu.memory_space<vmem>>, vector<1x128x128xbf16>
    %128 = vector.shape_cast %127 : vector<1x128x128xbf16> to vector<128x128xbf16>
    %cst_76 = arith.constant dense<0.000000e+00> : vector<16x128xf32>
    %129 = tpu.matmul %120, %128, %cst_76 {dimension_numbers = #tpu.dot_dimension_numbers<[1], [0], [0], [1], [0, 0, 1, 1], [], []>} : vector<16x128xbf16>, vector<128x128xbf16>, vector<16x128xf32> -> vector<16x128xf32>
    %cst_77 = arith.constant dense<0.000000e+00> : vector<16x128xf32>
    %130 = tpu.matmul %105, %123, %cst_77 {dimension_numbers = #tpu.dot_dimension_numbers<[1], [0], [0], [1], [0, 0, 1, 1], [], []>} : vector<16x16xf32>, vector<16x128xf32>, vector<16x128xf32> -> vector<16x128xf32>
    %131 = arith.addf %126, %130 : vector<16x128xf32>
    %cst_78 = arith.constant dense<0.000000e+00> : vector<16x128xf32>
    %132 = tpu.matmul %110, %129, %cst_78 {dimension_numbers = #tpu.dot_dimension_numbers<[1], [0], [0], [1], [0, 0, 1, 1], [], []>} : vector<16x16xf32>, vector<16x128xf32>, vector<16x128xf32> -> vector<16x128xf32>
    %133 = arith.addf %131, %132 : vector<16x128xf32>
    %c0_79 = arith.constant 0 : index
    %c0_80 = arith.constant 0 : index
    %134 = vector.load %arg9[%c0_79, %c0_80] : memref<1x128xf32, #tpu.memory_space<vmem>>, vector<1x128xf32>
    %135 = vector.broadcast %134 : vector<1x128xf32> to vector<16x128xf32>
    %136 = arith.addf %133, %135 : vector<16x128xf32>
    %cst_81 = arith.constant 0.000000e+00 : f32
    %137 = vector.broadcast %cst_81 : f32 to vector<16x128xf32>
    %138 = arith.maximumf %136, %137 : vector<16x128xf32>
    %cst_82 = arith.constant dense<0.000000e+00> : vector<16x64xf32>
    %139 = tpu.matmul %138, %58, %cst_82 {dimension_numbers = #tpu.dot_dimension_numbers<[1], [0], [0], [1], [0, 0, 1, 1], [], []>} : vector<16x128xf32>, vector<128x64xf32>, vector<16x64xf32> -> vector<16x64xf32>
    %cst_83 = arith.constant dense<0.000000e+00> : vector<16x64xf32>
    %140 = tpu.matmul %138, %65, %cst_83 {dimension_numbers = #tpu.dot_dimension_numbers<[1], [0], [0], [1], [0, 0, 1, 1], [], []>} : vector<16x128xf32>, vector<128x64xf32>, vector<16x64xf32> -> vector<16x64xf32>
    %141 = arith.maximumf %139, %140 : vector<16x64xf32>
    %142 = tpu.iota {dimensions = array<i32: 0>} : vector<8x16xi32>
    %143 = tpu.iota {dimensions = array<i32: 1>} : vector<8x16xi32>
    %c2_i32_84 = arith.constant 2 : i32
    %144 = vector.broadcast %c2_i32_84 : i32 to vector<8x16xi32>
    %145 = arith.muli %144, %142 : vector<8x16xi32>
    %146 = arith.cmpi eq, %143, %145 : vector<8x16xi32>
    %147 = arith.extui %146 : vector<8x16xi1> to vector<8x16xi32>
    %148 = arith.sitofp %147 : vector<8x16xi32> to vector<8x16xf32>
    %c2_i32_85 = arith.constant 2 : i32
    %149 = vector.broadcast %c2_i32_85 : i32 to vector<8x16xi32>
    %150 = arith.muli %149, %142 : vector<8x16xi32>
    %c1_i32_86 = arith.constant 1 : i32
    %151 = vector.broadcast %c1_i32_86 : i32 to vector<8x16xi32>
    %152 = arith.addi %150, %151 : vector<8x16xi32>
    %153 = arith.cmpi eq, %143, %152 : vector<8x16xi32>
    %154 = arith.extui %153 : vector<8x16xi1> to vector<8x16xi32>
    %155 = arith.sitofp %154 : vector<8x16xi32> to vector<8x16xf32>
    %cst_87 = arith.constant dense<0.000000e+00> : vector<8x64xf32>
    %156 = tpu.matmul %148, %141, %cst_87 {dimension_numbers = #tpu.dot_dimension_numbers<[1], [0], [0], [1], [0, 0, 1, 1], [], []>} : vector<8x16xf32>, vector<16x64xf32>, vector<8x64xf32> -> vector<8x64xf32>
    %cst_88 = arith.constant dense<0.000000e+00> : vector<8x64xf32>
    %157 = tpu.matmul %155, %141, %cst_88 {dimension_numbers = #tpu.dot_dimension_numbers<[1], [0], [0], [1], [0, 0, 1, 1], [], []>} : vector<8x16xf32>, vector<16x64xf32>, vector<8x64xf32> -> vector<8x64xf32>
    %158 = arith.maximumf %156, %157 : vector<8x64xf32>
    %c0_89 = arith.constant 0 : index
    %c0_90 = arith.constant 0 : index
    %c0_91 = arith.constant 0 : index
    %159 = vector.load %arg35[%c0_89, %c0_90, %c0_91] : memref<1x8x64xf32, #tpu.memory_space<vmem>>, vector<1x8x64xf32>
    %160 = vector.shape_cast %159 : vector<1x8x64xf32> to vector<8x64xf32>
    %161 = vector.shape_cast %158 : vector<8x64xf32> to vector<1x8x64xf32>
    tpu.vector_store %arg35[%c0_89, %c0_90, %c0_91], %161 {strides = array<i32>} : memref<1x8x64xf32, #tpu.memory_space<vmem>>, vector<1x8x64xf32>,
    %162 = arith.truncf %158 : vector<8x64xf32> to vector<8x64xbf16>
    %c0_92 = arith.constant 0 : index
    %c0_93 = arith.constant 0 : index
    %c0_94 = arith.constant 0 : index
    %163 = vector.load %arg10[%c0_92, %c0_93, %c0_94] : memref<3x64x128xbf16, #tpu.memory_space<vmem>>, vector<1x64x128xbf16>
    %164 = vector.shape_cast %163 : vector<1x64x128xbf16> to vector<64x128xbf16>
    %cst_95 = arith.constant dense<0.000000e+00> : vector<8x128xf32>
    %165 = tpu.matmul %162, %164, %cst_95 {dimension_numbers = #tpu.dot_dimension_numbers<[1], [0], [0], [1], [0, 0, 1, 1], [], []>} : vector<8x64xbf16>, vector<64x128xbf16>, vector<8x128xf32> -> vector<8x128xf32>
    %c1_96 = arith.constant 1 : index
    %c0_97 = arith.constant 0 : index
    %c0_98 = arith.constant 0 : index
    %166 = vector.load %arg10[%c1_96, %c0_97, %c0_98] : memref<3x64x128xbf16, #tpu.memory_space<vmem>>, vector<1x64x128xbf16>
    %167 = vector.shape_cast %166 : vector<1x64x128xbf16> to vector<64x128xbf16>
    %cst_99 = arith.constant dense<0.000000e+00> : vector<8x128xf32>
    %168 = tpu.matmul %162, %167, %cst_99 {dimension_numbers = #tpu.dot_dimension_numbers<[1], [0], [0], [1], [0, 0, 1, 1], [], []>} : vector<8x64xbf16>, vector<64x128xbf16>, vector<8x128xf32> -> vector<8x128xf32>
    %c2_100 = arith.constant 2 : index
    %c0_101 = arith.constant 0 : index
    %c0_102 = arith.constant 0 : index
    %169 = vector.load %arg10[%c2_100, %c0_101, %c0_102] : memref<3x64x128xbf16, #tpu.memory_space<vmem>>, vector<1x64x128xbf16>
    %170 = vector.shape_cast %169 : vector<1x64x128xbf16> to vector<64x128xbf16>
    %cst_103 = arith.constant dense<0.000000e+00> : vector<8x128xf32>
    %171 = tpu.matmul %162, %170, %cst_103 {dimension_numbers = #tpu.dot_dimension_numbers<[1], [0], [0], [1], [0, 0, 1, 1], [], []>} : vector<8x64xbf16>, vector<64x128xbf16>, vector<8x128xf32> -> vector<8x128xf32>
    %172 = tpu.iota {dimensions = array<i32: 0>} : vector<8x8xi32>
    %173 = tpu.iota {dimensions = array<i32: 1>} : vector<8x8xi32>
    %c1_i32_104 = arith.constant 1 : i32
    %174 = vector.broadcast %c1_i32_104 : i32 to vector<8x8xi32>
    %175 = arith.subi %172, %174 : vector<8x8xi32>
    %176 = arith.cmpi eq, %173, %175 : vector<8x8xi32>
    %177 = arith.extui %176 : vector<8x8xi1> to vector<8x8xi32>
    %178 = arith.sitofp %177 : vector<8x8xi32> to vector<8x8xf32>
    %c1_i32_105 = arith.constant 1 : i32
    %179 = vector.broadcast %c1_i32_105 : i32 to vector<8x8xi32>
    %180 = arith.addi %172, %179 : vector<8x8xi32>
    %181 = arith.cmpi eq, %173, %180 : vector<8x8xi32>
    %182 = arith.extui %181 : vector<8x8xi1> to vector<8x8xi32>
    %183 = arith.sitofp %182 : vector<8x8xi32> to vector<8x8xf32>
    %cst_106 = arith.constant dense<0.000000e+00> : vector<8x128xf32>
    %184 = tpu.matmul %178, %165, %cst_106 {dimension_numbers = #tpu.dot_dimension_numbers<[1], [0], [0], [1], [0, 0, 1, 1], [], []>} : vector<8x8xf32>, vector<8x128xf32>, vector<8x128xf32> -> vector<8x128xf32>
    %185 = arith.addf %168, %184 : vector<8x128xf32>
    %cst_107 = arith.constant dense<0.000000e+00> : vector<8x128xf32>
    %186 = tpu.matmul %183, %171, %cst_107 {dimension_numbers = #tpu.dot_dimension_numbers<[1], [0], [0], [1], [0, 0, 1, 1], [], []>} : vector<8x8xf32>, vector<8x128xf32>, vector<8x128xf32> -> vector<8x128xf32>
    %187 = arith.addf %185, %186 : vector<8x128xf32>
    %c0_108 = arith.constant 0 : index
    %c0_109 = arith.constant 0 : index
    %188 = vector.load %arg11[%c0_108, %c0_109] : memref<1x128xf32, #tpu.memory_space<vmem>>, vector<1x128xf32>
    %189 = vector.broadcast %188 : vector<1x128xf32> to vector<8x128xf32>
    %190 = arith.addf %187, %189 : vector<8x128xf32>
    %cst_110 = arith.constant 0.000000e+00 : f32
    %191 = vector.broadcast %cst_110 : f32 to vector<8x128xf32>
    %192 = arith.maximumf %190, %191 : vector<8x128xf32>
    %193 = arith.truncf %192 : vector<8x128xf32> to vector<8x128xbf16>
    %c0_111 = arith.constant 0 : index
    %c0_112 = arith.constant 0 : index
    %c0_113 = arith.constant 0 : index
    %194 = vector.load %arg12[%c0_111, %c0_112, %c0_113] : memref<3x128x128xbf16, #tpu.memory_space<vmem>>, vector<1x128x128xbf16>
    %195 = vector.shape_cast %194 : vector<1x128x128xbf16> to vector<128x128xbf16>
    %cst_114 = arith.constant dense<0.000000e+00> : vector<8x128xf32>
    %196 = tpu.matmul %193, %195, %cst_114 {dimension_numbers = #tpu.dot_dimension_numbers<[1], [0], [0], [1], [0, 0, 1, 1], [], []>} : vector<8x128xbf16>, vector<128x128xbf16>, vector<8x128xf32> -> vector<8x128xf32>
    %c1_115 = arith.constant 1 : index
    %c0_116 = arith.constant 0 : index
    %c0_117 = arith.constant 0 : index
    %197 = vector.load %arg12[%c1_115, %c0_116, %c0_117] : memref<3x128x128xbf16, #tpu.memory_space<vmem>>, vector<1x128x128xbf16>
    %198 = vector.shape_cast %197 : vector<1x128x128xbf16> to vector<128x128xbf16>
    %cst_118 = arith.constant dense<0.000000e+00> : vector<8x128xf32>
    %199 = tpu.matmul %193, %198, %cst_118 {dimension_numbers = #tpu.dot_dimension_numbers<[1], [0], [0], [1], [0, 0, 1, 1], [], []>} : vector<8x128xbf16>, vector<128x128xbf16>, vector<8x128xf32> -> vector<8x128xf32>
    %c2_119 = arith.constant 2 : index
    %c0_120 = arith.constant 0 : index
    %c0_121 = arith.constant 0 : index
    %200 = vector.load %arg12[%c2_119, %c0_120, %c0_121] : memref<3x128x128xbf16, #tpu.memory_space<vmem>>, vector<1x128x128xbf16>
    %201 = vector.shape_cast %200 : vector<1x128x128xbf16> to vector<128x128xbf16>
    %cst_122 = arith.constant dense<0.000000e+00> : vector<8x128xf32>
    %202 = tpu.matmul %193, %201, %cst_122 {dimension_numbers = #tpu.dot_dimension_numbers<[1], [0], [0], [1], [0, 0, 1, 1], [], []>} : vector<8x128xbf16>, vector<128x128xbf16>, vector<8x128xf32> -> vector<8x128xf32>
    %cst_123 = arith.constant dense<0.000000e+00> : vector<8x128xf32>
    %203 = tpu.matmul %178, %196, %cst_123 {dimension_numbers = #tpu.dot_dimension_numbers<[1], [0], [0], [1], [0, 0, 1, 1], [], []>} : vector<8x8xf32>, vector<8x128xf32>, vector<8x128xf32> -> vector<8x128xf32>
    %204 = arith.addf %199, %203 : vector<8x128xf32>
    %cst_124 = arith.constant dense<0.000000e+00> : vector<8x128xf32>
    %205 = tpu.matmul %183, %202, %cst_124 {dimension_numbers = #tpu.dot_dimension_numbers<[1], [0], [0], [1], [0, 0, 1, 1], [], []>} : vector<8x8xf32>, vector<8x128xf32>, vector<8x128xf32> -> vector<8x128xf32>
    %206 = arith.addf %204, %205 : vector<8x128xf32>
    %c0_125 = arith.constant 0 : index
    %c0_126 = arith.constant 0 : index
    %207 = vector.load %arg13[%c0_125, %c0_126] : memref<1x128xf32, #tpu.memory_space<vmem>>, vector<1x128xf32>
    %208 = vector.broadcast %207 : vector<1x128xf32> to vector<8x128xf32>
    %209 = arith.addf %206, %208 : vector<8x128xf32>
    %cst_127 = arith.constant 0.000000e+00 : f32
    %210 = vector.broadcast %cst_127 : f32 to vector<8x128xf32>
    %211 = arith.maximumf %209, %210 : vector<8x128xf32>
    %212 = arith.truncf %211 : vector<8x128xf32> to vector<8x128xbf16>
    %c0_128 = arith.constant 0 : index
    %c0_129 = arith.constant 0 : index
    %c0_130 = arith.constant 0 : index
    %213 = vector.load %arg14[%c0_128, %c0_129, %c0_130] : memref<3x128x128xbf16, #tpu.memory_space<vmem>>, vector<1x128x128xbf16>
    %214 = vector.shape_cast %213 : vector<1x128x128xbf16> to vector<128x128xbf16>
    %cst_131 = arith.constant dense<0.000000e+00> : vector<8x128xf32>
    %215 = tpu.matmul %212, %214, %cst_131 {dimension_numbers = #tpu.dot_dimension_numbers<[1], [0], [0], [1], [0, 0, 1, 1], [], []>} : vector<8x128xbf16>, vector<128x128xbf16>, vector<8x128xf32> -> vector<8x128xf32>
    %c1_132 = arith.constant 1 : index
    %c0_133 = arith.constant 0 : index
    %c0_134 = arith.constant 0 : index
    %216 = vector.load %arg14[%c1_132, %c0_133, %c0_134] : memref<3x128x128xbf16, #tpu.memory_space<vmem>>, vector<1x128x128xbf16>
    %217 = vector.shape_cast %216 : vector<1x128x128xbf16> to vector<128x128xbf16>
    %cst_135 = arith.constant dense<0.000000e+00> : vector<8x128xf32>
    %218 = tpu.matmul %212, %217, %cst_135 {dimension_numbers = #tpu.dot_dimension_numbers<[1], [0], [0], [1], [0, 0, 1, 1], [], []>} : vector<8x128xbf16>, vector<128x128xbf16>, vector<8x128xf32> -> vector<8x128xf32>
    %c2_136 = arith.constant 2 : index
    %c0_137 = arith.constant 0 : index
    %c0_138 = arith.constant 0 : index
    %219 = vector.load %arg14[%c2_136, %c0_137, %c0_138] : memref<3x128x128xbf16, #tpu.memory_space<vmem>>, vector<1x128x128xbf16>
    %220 = vector.shape_cast %219 : vector<1x128x128xbf16> to vector<128x128xbf16>
    %cst_139 = arith.constant dense<0.000000e+00> : vector<8x128xf32>
    %221 = tpu.matmul %212, %220, %cst_139 {dimension_numbers = #tpu.dot_dimension_numbers<[1], [0], [0], [1], [0, 0, 1, 1], [], []>} : vector<8x128xbf16>, vector<128x128xbf16>, vector<8x128xf32> -> vector<8x128xf32>
    %cst_140 = arith.constant dense<0.000000e+00> : vector<8x128xf32>
    %222 = tpu.matmul %178, %215, %cst_140 {dimension_numbers = #tpu.dot_dimension_numbers<[1], [0], [0], [1], [0, 0, 1, 1], [], []>} : vector<8x8xf32>, vector<8x128xf32>, vector<8x128xf32> -> vector<8x128xf32>
    %223 = arith.addf %218, %222 : vector<8x128xf32>
    %cst_141 = arith.constant dense<0.000000e+00> : vector<8x128xf32>
    %224 = tpu.matmul %183, %221, %cst_141 {dimension_numbers = #tpu.dot_dimension_numbers<[1], [0], [0], [1], [0, 0, 1, 1], [], []>} : vector<8x8xf32>, vector<8x128xf32>, vector<8x128xf32> -> vector<8x128xf32>
    %225 = arith.addf %223, %224 : vector<8x128xf32>
    %c0_142 = arith.constant 0 : index
    %c0_143 = arith.constant 0 : index
    %226 = vector.load %arg15[%c0_142, %c0_143] : memref<1x128xf32, #tpu.memory_space<vmem>>, vector<1x128xf32>
    %227 = vector.broadcast %226 : vector<1x128xf32> to vector<8x128xf32>
    %228 = arith.addf %225, %227 : vector<8x128xf32>
    %cst_144 = arith.constant 0.000000e+00 : f32
    %229 = vector.broadcast %cst_144 : f32 to vector<8x128xf32>
    %230 = arith.maximumf %228, %229 : vector<8x128xf32>
    %cst_145 = arith.constant dense<0.000000e+00> : vector<8x64xf32>
    %231 = tpu.matmul %230, %58, %cst_145 {dimension_numbers = #tpu.dot_dimension_numbers<[1], [0], [0], [1], [0, 0, 1, 1], [], []>} : vector<8x128xf32>, vector<128x64xf32>, vector<8x64xf32> -> vector<8x64xf32>
    %cst_146 = arith.constant dense<0.000000e+00> : vector<8x64xf32>
    %232 = tpu.matmul %230, %65, %cst_146 {dimension_numbers = #tpu.dot_dimension_numbers<[1], [0], [0], [1], [0, 0, 1, 1], [], []>} : vector<8x128xf32>, vector<128x64xf32>, vector<8x64xf32> -> vector<8x64xf32>
    %233 = arith.maximumf %231, %232 : vector<8x64xf32>
    %234 = tpu.iota {dimensions = array<i32: 0>} : vector<4x8xi32>
    %235 = tpu.iota {dimensions = array<i32: 1>} : vector<4x8xi32>
    %c2_i32_147 = arith.constant 2 : i32
    %236 = vector.broadcast %c2_i32_147 : i32 to vector<4x8xi32>
    %237 = arith.muli %236, %234 : vector<4x8xi32>
    %238 = arith.cmpi eq, %235, %237 : vector<4x8xi32>
    %239 = arith.extui %238 : vector<4x8xi1> to vector<4x8xi32>
    %240 = arith.sitofp %239 : vector<4x8xi32> to vector<4x8xf32>
    %c2_i32_148 = arith.constant 2 : i32
    %241 = vector.broadcast %c2_i32_148 : i32 to vector<4x8xi32>
    %242 = arith.muli %241, %234 : vector<4x8xi32>
    %c1_i32_149 = arith.constant 1 : i32
    %243 = vector.broadcast %c1_i32_149 : i32 to vector<4x8xi32>
    %244 = arith.addi %242, %243 : vector<4x8xi32>
    %245 = arith.cmpi eq, %235, %244 : vector<4x8xi32>
    %246 = arith.extui %245 : vector<4x8xi1> to vector<4x8xi32>
    %247 = arith.sitofp %246 : vector<4x8xi32> to vector<4x8xf32>
    %cst_150 = arith.constant dense<0.000000e+00> : vector<4x64xf32>
    %248 = tpu.matmul %240, %233, %cst_150 {dimension_numbers = #tpu.dot_dimension_numbers<[1], [0], [0], [1], [0, 0, 1, 1], [], []>} : vector<4x8xf32>, vector<8x64xf32>, vector<4x64xf32> -> vector<4x64xf32>
    %cst_151 = arith.constant dense<0.000000e+00> : vector<4x64xf32>
    %249 = tpu.matmul %247, %233, %cst_151 {dimension_numbers = #tpu.dot_dimension_numbers<[1], [0], [0], [1], [0, 0, 1, 1], [], []>} : vector<4x8xf32>, vector<8x64xf32>, vector<4x64xf32> -> vector<4x64xf32>
    %250 = arith.maximumf %248, %249 : vector<4x64xf32>
    %c0_152 = arith.constant 0 : index
    %c0_153 = arith.constant 0 : index
    %c0_154 = arith.constant 0 : index
    %251 = vector.load %arg36[%c0_152, %c0_153, %c0_154] : memref<1x4x64xf32, #tpu.memory_space<vmem>>, vector<1x4x64xf32>
    %252 = vector.shape_cast %251 : vector<1x4x64xf32> to vector<4x64xf32>
    %253 = vector.shape_cast %250 : vector<4x64xf32> to vector<1x4x64xf32>
    tpu.vector_store %arg36[%c0_152, %c0_153, %c0_154], %253 {strides = array<i32>} : memref<1x4x64xf32, #tpu.memory_space<vmem>>, vector<1x4x64xf32>,
    %254 = arith.truncf %250 : vector<4x64xf32> to vector<4x64xbf16>
    %c0_155 = arith.constant 0 : index
    %c0_156 = arith.constant 0 : index
    %c0_157 = arith.constant 0 : index
    %255 = vector.load %arg16[%c0_155, %c0_156, %c0_157] : memref<3x64x128xbf16, #tpu.memory_space<vmem>>, vector<1x64x128xbf16>
    %256 = vector.shape_cast %255 : vector<1x64x128xbf16> to vector<64x128xbf16>
    %cst_158 = arith.constant dense<0.000000e+00> : vector<4x128xf32>
    %257 = tpu.matmul %254, %256, %cst_158 {dimension_numbers = #tpu.dot_dimension_numbers<[1], [0], [0], [1], [0, 0, 1, 1], [], []>} : vector<4x64xbf16>, vector<64x128xbf16>, vector<4x128xf32> -> vector<4x128xf32>
    %c1_159 = arith.constant 1 : index
    %c0_160 = arith.constant 0 : index
    %c0_161 = arith.constant 0 : index
    %258 = vector.load %arg16[%c1_159, %c0_160, %c0_161] : memref<3x64x128xbf16, #tpu.memory_space<vmem>>, vector<1x64x128xbf16>
    %259 = vector.shape_cast %258 : vector<1x64x128xbf16> to vector<64x128xbf16>
    %cst_162 = arith.constant dense<0.000000e+00> : vector<4x128xf32>
    %260 = tpu.matmul %254, %259, %cst_162 {dimension_numbers = #tpu.dot_dimension_numbers<[1], [0], [0], [1], [0, 0, 1, 1], [], []>} : vector<4x64xbf16>, vector<64x128xbf16>, vector<4x128xf32> -> vector<4x128xf32>
    %c2_163 = arith.constant 2 : index
    %c0_164 = arith.constant 0 : index
    %c0_165 = arith.constant 0 : index
    %261 = vector.load %arg16[%c2_163, %c0_164, %c0_165] : memref<3x64x128xbf16, #tpu.memory_space<vmem>>, vector<1x64x128xbf16>
    %262 = vector.shape_cast %261 : vector<1x64x128xbf16> to vector<64x128xbf16>
    %cst_166 = arith.constant dense<0.000000e+00> : vector<4x128xf32>
    %263 = tpu.matmul %254, %262, %cst_166 {dimension_numbers = #tpu.dot_dimension_numbers<[1], [0], [0], [1], [0, 0, 1, 1], [], []>} : vector<4x64xbf16>, vector<64x128xbf16>, vector<4x128xf32> -> vector<4x128xf32>
    %264 = tpu.iota {dimensions = array<i32: 0>} : vector<4x4xi32>
    %265 = tpu.iota {dimensions = array<i32: 1>} : vector<4x4xi32>
    %c1_i32_167 = arith.constant 1 : i32
    %266 = vector.broadcast %c1_i32_167 : i32 to vector<4x4xi32>
    %267 = arith.subi %264, %266 : vector<4x4xi32>
    %268 = arith.cmpi eq, %265, %267 : vector<4x4xi32>
    %269 = arith.extui %268 : vector<4x4xi1> to vector<4x4xi32>
    %270 = arith.sitofp %269 : vector<4x4xi32> to vector<4x4xf32>
    %c1_i32_168 = arith.constant 1 : i32
    %271 = vector.broadcast %c1_i32_168 : i32 to vector<4x4xi32>
    %272 = arith.addi %264, %271 : vector<4x4xi32>
    %273 = arith.cmpi eq, %265, %272 : vector<4x4xi32>
    %274 = arith.extui %273 : vector<4x4xi1> to vector<4x4xi32>
    %275 = arith.sitofp %274 : vector<4x4xi32> to vector<4x4xf32>
    %cst_169 = arith.constant dense<0.000000e+00> : vector<4x128xf32>
    %276 = tpu.matmul %270, %257, %cst_169 {dimension_numbers = #tpu.dot_dimension_numbers<[1], [0], [0], [1], [0, 0, 1, 1], [], []>} : vector<4x4xf32>, vector<4x128xf32>, vector<4x128xf32> -> vector<4x128xf32>
    %277 = arith.addf %260, %276 : vector<4x128xf32>
    %cst_170 = arith.constant dense<0.000000e+00> : vector<4x128xf32>
    %278 = tpu.matmul %275, %263, %cst_170 {dimension_numbers = #tpu.dot_dimension_numbers<[1], [0], [0], [1], [0, 0, 1, 1], [], []>} : vector<4x4xf32>, vector<4x128xf32>, vector<4x128xf32> -> vector<4x128xf32>
    %279 = arith.addf %277, %278 : vector<4x128xf32>
    %c0_171 = arith.constant 0 : index
    %c0_172 = arith.constant 0 : index
    %280 = vector.load %arg17[%c0_171, %c0_172] : memref<1x128xf32, #tpu.memory_space<vmem>>, vector<1x128xf32>
    %281 = vector.broadcast %280 : vector<1x128xf32> to vector<4x128xf32>
    %282 = arith.addf %279, %281 : vector<4x128xf32>
    %cst_173 = arith.constant 0.000000e+00 : f32
    %283 = vector.broadcast %cst_173 : f32 to vector<4x128xf32>
    %284 = arith.maximumf %282, %283 : vector<4x128xf32>
    %285 = arith.truncf %284 : vector<4x128xf32> to vector<4x128xbf16>
    %c0_174 = arith.constant 0 : index
    %c0_175 = arith.constant 0 : index
    %c0_176 = arith.constant 0 : index
    %286 = vector.load %arg18[%c0_174, %c0_175, %c0_176] : memref<3x128x128xbf16, #tpu.memory_space<vmem>>, vector<1x128x128xbf16>
    %287 = vector.shape_cast %286 : vector<1x128x128xbf16> to vector<128x128xbf16>
    %cst_177 = arith.constant dense<0.000000e+00> : vector<4x128xf32>
    %288 = tpu.matmul %285, %287, %cst_177 {dimension_numbers = #tpu.dot_dimension_numbers<[1], [0], [0], [1], [0, 0, 1, 1], [], []>} : vector<4x128xbf16>, vector<128x128xbf16>, vector<4x128xf32> -> vector<4x128xf32>
    %c1_178 = arith.constant 1 : index
    %c0_179 = arith.constant 0 : index
    %c0_180 = arith.constant 0 : index
    %289 = vector.load %arg18[%c1_178, %c0_179, %c0_180] : memref<3x128x128xbf16, #tpu.memory_space<vmem>>, vector<1x128x128xbf16>
    %290 = vector.shape_cast %289 : vector<1x128x128xbf16> to vector<128x128xbf16>
    %cst_181 = arith.constant dense<0.000000e+00> : vector<4x128xf32>
    %291 = tpu.matmul %285, %290, %cst_181 {dimension_numbers = #tpu.dot_dimension_numbers<[1], [0], [0], [1], [0, 0, 1, 1], [], []>} : vector<4x128xbf16>, vector<128x128xbf16>, vector<4x128xf32> -> vector<4x128xf32>
    %c2_182 = arith.constant 2 : index
    %c0_183 = arith.constant 0 : index
    %c0_184 = arith.constant 0 : index
    %292 = vector.load %arg18[%c2_182, %c0_183, %c0_184] : memref<3x128x128xbf16, #tpu.memory_space<vmem>>, vector<1x128x128xbf16>
    %293 = vector.shape_cast %292 : vector<1x128x128xbf16> to vector<128x128xbf16>
    %cst_185 = arith.constant dense<0.000000e+00> : vector<4x128xf32>
    %294 = tpu.matmul %285, %293, %cst_185 {dimension_numbers = #tpu.dot_dimension_numbers<[1], [0], [0], [1], [0, 0, 1, 1], [], []>} : vector<4x128xbf16>, vector<128x128xbf16>, vector<4x128xf32> -> vector<4x128xf32>
    %cst_186 = arith.constant dense<0.000000e+00> : vector<4x128xf32>
    %295 = tpu.matmul %270, %288, %cst_186 {dimension_numbers = #tpu.dot_dimension_numbers<[1], [0], [0], [1], [0, 0, 1, 1], [], []>} : vector<4x4xf32>, vector<4x128xf32>, vector<4x128xf32> -> vector<4x128xf32>
    %296 = arith.addf %291, %295 : vector<4x128xf32>
    %cst_187 = arith.constant dense<0.000000e+00> : vector<4x128xf32>
    %297 = tpu.matmul %275, %294, %cst_187 {dimension_numbers = #tpu.dot_dimension_numbers<[1], [0], [0], [1], [0, 0, 1, 1], [], []>} : vector<4x4xf32>, vector<4x128xf32>, vector<4x128xf32> -> vector<4x128xf32>
    %298 = arith.addf %296, %297 : vector<4x128xf32>
    %c0_188 = arith.constant 0 : index
    %c0_189 = arith.constant 0 : index
    %299 = vector.load %arg19[%c0_188, %c0_189] : memref<1x128xf32, #tpu.memory_space<vmem>>, vector<1x128xf32>
    %300 = vector.broadcast %299 : vector<1x128xf32> to vector<4x128xf32>
    %301 = arith.addf %298, %300 : vector<4x128xf32>
    %cst_190 = arith.constant 0.000000e+00 : f32
    %302 = vector.broadcast %cst_190 : f32 to vector<4x128xf32>
    %303 = arith.maximumf %301, %302 : vector<4x128xf32>
    %304 = arith.truncf %303 : vector<4x128xf32> to vector<4x128xbf16>
    %c0_191 = arith.constant 0 : index
    %c0_192 = arith.constant 0 : index
    %c0_193 = arith.constant 0 : index
    %305 = vector.load %arg20[%c0_191, %c0_192, %c0_193] : memref<3x128x128xbf16, #tpu.memory_space<vmem>>, vector<1x128x128xbf16>
    %306 = vector.shape_cast %305 : vector<1x128x128xbf16> to vector<128x128xbf16>
    %cst_194 = arith.constant dense<0.000000e+00> : vector<4x128xf32>
    %307 = tpu.matmul %304, %306, %cst_194 {dimension_numbers = #tpu.dot_dimension_numbers<[1], [0], [0], [1], [0, 0, 1, 1], [], []>} : vector<4x128xbf16>, vector<128x128xbf16>, vector<4x128xf32> -> vector<4x128xf32>
    %c1_195 = arith.constant 1 : index
    %c0_196 = arith.constant 0 : index
    %c0_197 = arith.constant 0 : index
    %308 = vector.load %arg20[%c1_195, %c0_196, %c0_197] : memref<3x128x128xbf16, #tpu.memory_space<vmem>>, vector<1x128x128xbf16>
    %309 = vector.shape_cast %308 : vector<1x128x128xbf16> to vector<128x128xbf16>
    %cst_198 = arith.constant dense<0.000000e+00> : vector<4x128xf32>
    %310 = tpu.matmul %304, %309, %cst_198 {dimension_numbers = #tpu.dot_dimension_numbers<[1], [0], [0], [1], [0, 0, 1, 1], [], []>} : vector<4x128xbf16>, vector<128x128xbf16>, vector<4x128xf32> -> vector<4x128xf32>
    %c2_199 = arith.constant 2 : index
    %c0_200 = arith.constant 0 : index
    %c0_201 = arith.constant 0 : index
    %311 = vector.load %arg20[%c2_199, %c0_200, %c0_201] : memref<3x128x128xbf16, #tpu.memory_space<vmem>>, vector<1x128x128xbf16>
    %312 = vector.shape_cast %311 : vector<1x128x128xbf16> to vector<128x128xbf16>
    %cst_202 = arith.constant dense<0.000000e+00> : vector<4x128xf32>
    %313 = tpu.matmul %304, %312, %cst_202 {dimension_numbers = #tpu.dot_dimension_numbers<[1], [0], [0], [1], [0, 0, 1, 1], [], []>} : vector<4x128xbf16>, vector<128x128xbf16>, vector<4x128xf32> -> vector<4x128xf32>
    %cst_203 = arith.constant dense<0.000000e+00> : vector<4x128xf32>
    %314 = tpu.matmul %270, %307, %cst_203 {dimension_numbers = #tpu.dot_dimension_numbers<[1], [0], [0], [1], [0, 0, 1, 1], [], []>} : vector<4x4xf32>, vector<4x128xf32>, vector<4x128xf32> -> vector<4x128xf32>
    %315 = arith.addf %310, %314 : vector<4x128xf32>
    %cst_204 = arith.constant dense<0.000000e+00> : vector<4x128xf32>
    %316 = tpu.matmul %275, %313, %cst_204 {dimension_numbers = #tpu.dot_dimension_numbers<[1], [0], [0], [1], [0, 0, 1, 1], [], []>} : vector<4x4xf32>, vector<4x128xf32>, vector<4x128xf32> -> vector<4x128xf32>
    %317 = arith.addf %315, %316 : vector<4x128xf32>
    %c0_205 = arith.constant 0 : index
    %c0_206 = arith.constant 0 : index
    %318 = vector.load %arg21[%c0_205, %c0_206] : memref<1x128xf32, #tpu.memory_space<vmem>>, vector<1x128xf32>
    %319 = vector.broadcast %318 : vector<1x128xf32> to vector<4x128xf32>
    %320 = arith.addf %317, %319 : vector<4x128xf32>
    %cst_207 = arith.constant 0.000000e+00 : f32
    %321 = vector.broadcast %cst_207 : f32 to vector<4x128xf32>
    %322 = arith.maximumf %320, %321 : vector<4x128xf32>
    %cst_208 = arith.constant dense<0.000000e+00> : vector<4x64xf32>
    %323 = tpu.matmul %322, %58, %cst_208 {dimension_numbers = #tpu.dot_dimension_numbers<[1], [0], [0], [1], [0, 0, 1, 1], [], []>} : vector<4x128xf32>, vector<128x64xf32>, vector<4x64xf32> -> vector<4x64xf32>
    %cst_209 = arith.constant dense<0.000000e+00> : vector<4x64xf32>
    %324 = tpu.matmul %322, %65, %cst_209 {dimension_numbers = #tpu.dot_dimension_numbers<[1], [0], [0], [1], [0, 0, 1, 1], [], []>} : vector<4x128xf32>, vector<128x64xf32>, vector<4x64xf32> -> vector<4x64xf32>
    %325 = arith.maximumf %323, %324 : vector<4x64xf32>
    %326 = tpu.iota {dimensions = array<i32: 0>} : vector<2x4xi32>
    %327 = tpu.iota {dimensions = array<i32: 1>} : vector<2x4xi32>
    %c2_i32_210 = arith.constant 2 : i32
    %328 = vector.broadcast %c2_i32_210 : i32 to vector<2x4xi32>
    %329 = arith.muli %328, %326 : vector<2x4xi32>
    %330 = arith.cmpi eq, %327, %329 : vector<2x4xi32>
    %331 = arith.extui %330 : vector<2x4xi1> to vector<2x4xi32>
    %332 = arith.sitofp %331 : vector<2x4xi32> to vector<2x4xf32>
    %c2_i32_211 = arith.constant 2 : i32
    %333 = vector.broadcast %c2_i32_211 : i32 to vector<2x4xi32>
    %334 = arith.muli %333, %326 : vector<2x4xi32>
    %c1_i32_212 = arith.constant 1 : i32
    %335 = vector.broadcast %c1_i32_212 : i32 to vector<2x4xi32>
    %336 = arith.addi %334, %335 : vector<2x4xi32>
    %337 = arith.cmpi eq, %327, %336 : vector<2x4xi32>
    %338 = arith.extui %337 : vector<2x4xi1> to vector<2x4xi32>
    %339 = arith.sitofp %338 : vector<2x4xi32> to vector<2x4xf32>
    %cst_213 = arith.constant dense<0.000000e+00> : vector<2x64xf32>
    %340 = tpu.matmul %332, %325, %cst_213 {dimension_numbers = #tpu.dot_dimension_numbers<[1], [0], [0], [1], [0, 0, 1, 1], [], []>} : vector<2x4xf32>, vector<4x64xf32>, vector<2x64xf32> -> vector<2x64xf32>
    %cst_214 = arith.constant dense<0.000000e+00> : vector<2x64xf32>
    %341 = tpu.matmul %339, %325, %cst_214 {dimension_numbers = #tpu.dot_dimension_numbers<[1], [0], [0], [1], [0, 0, 1, 1], [], []>} : vector<2x4xf32>, vector<4x64xf32>, vector<2x64xf32> -> vector<2x64xf32>
    %342 = arith.maximumf %340, %341 : vector<2x64xf32>
    %c0_215 = arith.constant 0 : index
    %c0_216 = arith.constant 0 : index
    %c0_217 = arith.constant 0 : index
    %343 = vector.load %arg37[%c0_215, %c0_216, %c0_217] : memref<1x2x64xf32, #tpu.memory_space<vmem>>, vector<1x2x64xf32>
    %344 = vector.shape_cast %343 : vector<1x2x64xf32> to vector<2x64xf32>
    %345 = vector.shape_cast %342 : vector<2x64xf32> to vector<1x2x64xf32>
    tpu.vector_store %arg37[%c0_215, %c0_216, %c0_217], %345 {strides = array<i32>} : memref<1x2x64xf32, #tpu.memory_space<vmem>>, vector<1x2x64xf32>,
    %346 = arith.truncf %342 : vector<2x64xf32> to vector<2x64xbf16>
    %c0_218 = arith.constant 0 : index
    %c0_219 = arith.constant 0 : index
    %c0_220 = arith.constant 0 : index
    %347 = vector.load %arg22[%c0_218, %c0_219, %c0_220] : memref<3x64x64xbf16, #tpu.memory_space<vmem>>, vector<1x64x64xbf16>
    %348 = vector.shape_cast %347 : vector<1x64x64xbf16> to vector<64x64xbf16>
    %cst_221 = arith.constant dense<0.000000e+00> : vector<2x64xf32>
    %349 = tpu.matmul %346, %348, %cst_221 {dimension_numbers = #tpu.dot_dimension_numbers<[1], [0], [0], [1], [0, 0, 1, 1], [], []>} : vector<2x64xbf16>, vector<64x64xbf16>, vector<2x64xf32> -> vector<2x64xf32>
    %c1_222 = arith.constant 1 : index
    %c0_223 = arith.constant 0 : index
    %c0_224 = arith.constant 0 : index
    %350 = vector.load %arg22[%c1_222, %c0_223, %c0_224] : memref<3x64x64xbf16, #tpu.memory_space<vmem>>, vector<1x64x64xbf16>
    %351 = vector.shape_cast %350 : vector<1x64x64xbf16> to vector<64x64xbf16>
    %cst_225 = arith.constant dense<0.000000e+00> : vector<2x64xf32>
    %352 = tpu.matmul %346, %351, %cst_225 {dimension_numbers = #tpu.dot_dimension_numbers<[1], [0], [0], [1], [0, 0, 1, 1], [], []>} : vector<2x64xbf16>, vector<64x64xbf16>, vector<2x64xf32> -> vector<2x64xf32>
    %c2_226 = arith.constant 2 : index
    %c0_227 = arith.constant 0 : index
    %c0_228 = arith.constant 0 : index
    %353 = vector.load %arg22[%c2_226, %c0_227, %c0_228] : memref<3x64x64xbf16, #tpu.memory_space<vmem>>, vector<1x64x64xbf16>
    %354 = vector.shape_cast %353 : vector<1x64x64xbf16> to vector<64x64xbf16>
    %cst_229 = arith.constant dense<0.000000e+00> : vector<2x64xf32>
    %355 = tpu.matmul %346, %354, %cst_229 {dimension_numbers = #tpu.dot_dimension_numbers<[1], [0], [0], [1], [0, 0, 1, 1], [], []>} : vector<2x64xbf16>, vector<64x64xbf16>, vector<2x64xf32> -> vector<2x64xf32>
    %356 = tpu.iota {dimensions = array<i32: 0>} : vector<2x2xi32>
    %357 = tpu.iota {dimensions = array<i32: 1>} : vector<2x2xi32>
    %c1_i32_230 = arith.constant 1 : i32
    %358 = vector.broadcast %c1_i32_230 : i32 to vector<2x2xi32>
    %359 = arith.subi %356, %358 : vector<2x2xi32>
    %360 = arith.cmpi eq, %357, %359 : vector<2x2xi32>
    %361 = arith.extui %360 : vector<2x2xi1> to vector<2x2xi32>
    %362 = arith.sitofp %361 : vector<2x2xi32> to vector<2x2xf32>
    %c1_i32_231 = arith.constant 1 : i32
    %363 = vector.broadcast %c1_i32_231 : i32 to vector<2x2xi32>
    %364 = arith.addi %356, %363 : vector<2x2xi32>
    %365 = arith.cmpi eq, %357, %364 : vector<2x2xi32>
    %366 = arith.extui %365 : vector<2x2xi1> to vector<2x2xi32>
    %367 = arith.sitofp %366 : vector<2x2xi32> to vector<2x2xf32>
    %cst_232 = arith.constant dense<0.000000e+00> : vector<2x64xf32>
    %368 = tpu.matmul %362, %349, %cst_232 {dimension_numbers = #tpu.dot_dimension_numbers<[1], [0], [0], [1], [0, 0, 1, 1], [], []>} : vector<2x2xf32>, vector<2x64xf32>, vector<2x64xf32> -> vector<2x64xf32>
    %369 = arith.addf %352, %368 : vector<2x64xf32>
    %cst_233 = arith.constant dense<0.000000e+00> : vector<2x64xf32>
    %370 = tpu.matmul %367, %355, %cst_233 {dimension_numbers = #tpu.dot_dimension_numbers<[1], [0], [0], [1], [0, 0, 1, 1], [], []>} : vector<2x2xf32>, vector<2x64xf32>, vector<2x64xf32> -> vector<2x64xf32>
    %371 = arith.addf %369, %370 : vector<2x64xf32>
    %c0_234 = arith.constant 0 : index
    %c0_235 = arith.constant 0 : index
    %372 = vector.load %arg23[%c0_234, %c0_235] : memref<1x64xf32, #tpu.memory_space<vmem>>, vector<1x64xf32>
    %373 = vector.broadcast %372 : vector<1x64xf32> to vector<2x64xf32>
    %374 = arith.addf %371, %373 : vector<2x64xf32>
    %cst_236 = arith.constant 0.000000e+00 : f32
    %375 = vector.broadcast %cst_236 : f32 to vector<2x64xf32>
    %376 = arith.maximumf %374, %375 : vector<2x64xf32>
    %377 = arith.truncf %376 : vector<2x64xf32> to vector<2x64xbf16>
    %c0_237 = arith.constant 0 : index
    %c0_238 = arith.constant 0 : index
    %c0_239 = arith.constant 0 : index
    %378 = vector.load %arg24[%c0_237, %c0_238, %c0_239] : memref<3x64x64xbf16, #tpu.memory_space<vmem>>, vector<1x64x64xbf16>
    %379 = vector.shape_cast %378 : vector<1x64x64xbf16> to vector<64x64xbf16>
    %cst_240 = arith.constant dense<0.000000e+00> : vector<2x64xf32>
    %380 = tpu.matmul %377, %379, %cst_240 {dimension_numbers = #tpu.dot_dimension_numbers<[1], [0], [0], [1], [0, 0, 1, 1], [], []>} : vector<2x64xbf16>, vector<64x64xbf16>, vector<2x64xf32> -> vector<2x64xf32>
    %c1_241 = arith.constant 1 : index
    %c0_242 = arith.constant 0 : index
    %c0_243 = arith.constant 0 : index
    %381 = vector.load %arg24[%c1_241, %c0_242, %c0_243] : memref<3x64x64xbf16, #tpu.memory_space<vmem>>, vector<1x64x64xbf16>
    %382 = vector.shape_cast %381 : vector<1x64x64xbf16> to vector<64x64xbf16>
    %cst_244 = arith.constant dense<0.000000e+00> : vector<2x64xf32>
    %383 = tpu.matmul %377, %382, %cst_244 {dimension_numbers = #tpu.dot_dimension_numbers<[1], [0], [0], [1], [0, 0, 1, 1], [], []>} : vector<2x64xbf16>, vector<64x64xbf16>, vector<2x64xf32> -> vector<2x64xf32>
    %c2_245 = arith.constant 2 : index
    %c0_246 = arith.constant 0 : index
    %c0_247 = arith.constant 0 : index
    %384 = vector.load %arg24[%c2_245, %c0_246, %c0_247] : memref<3x64x64xbf16, #tpu.memory_space<vmem>>, vector<1x64x64xbf16>
    %385 = vector.shape_cast %384 : vector<1x64x64xbf16> to vector<64x64xbf16>
    %cst_248 = arith.constant dense<0.000000e+00> : vector<2x64xf32>
    %386 = tpu.matmul %377, %385, %cst_248 {dimension_numbers = #tpu.dot_dimension_numbers<[1], [0], [0], [1], [0, 0, 1, 1], [], []>} : vector<2x64xbf16>, vector<64x64xbf16>, vector<2x64xf32> -> vector<2x64xf32>
    %cst_249 = arith.constant dense<0.000000e+00> : vector<2x64xf32>
    %387 = tpu.matmul %362, %380, %cst_249 {dimension_numbers = #tpu.dot_dimension_numbers<[1], [0], [0], [1], [0, 0, 1, 1], [], []>} : vector<2x2xf32>, vector<2x64xf32>, vector<2x64xf32> -> vector<2x64xf32>
    %388 = arith.addf %383, %387 : vector<2x64xf32>
    %cst_250 = arith.constant dense<0.000000e+00> : vector<2x64xf32>
    %389 = tpu.matmul %367, %386, %cst_250 {dimension_numbers = #tpu.dot_dimension_numbers<[1], [0], [0], [1], [0, 0, 1, 1], [], []>} : vector<2x2xf32>, vector<2x64xf32>, vector<2x64xf32> -> vector<2x64xf32>
    %390 = arith.addf %388, %389 : vector<2x64xf32>
    %c0_251 = arith.constant 0 : index
    %c0_252 = arith.constant 0 : index
    %391 = vector.load %arg25[%c0_251, %c0_252] : memref<1x64xf32, #tpu.memory_space<vmem>>, vector<1x64xf32>
    %392 = vector.broadcast %391 : vector<1x64xf32> to vector<2x64xf32>
    %393 = arith.addf %390, %392 : vector<2x64xf32>
    %cst_253 = arith.constant 0.000000e+00 : f32
    %394 = vector.broadcast %cst_253 : f32 to vector<2x64xf32>
    %395 = arith.maximumf %393, %394 : vector<2x64xf32>
    %396 = arith.truncf %395 : vector<2x64xf32> to vector<2x64xbf16>
    %c0_254 = arith.constant 0 : index
    %c0_255 = arith.constant 0 : index
    %c0_256 = arith.constant 0 : index
    %397 = vector.load %arg26[%c0_254, %c0_255, %c0_256] : memref<3x64x64xbf16, #tpu.memory_space<vmem>>, vector<1x64x64xbf16>
    %398 = vector.shape_cast %397 : vector<1x64x64xbf16> to vector<64x64xbf16>
    %cst_257 = arith.constant dense<0.000000e+00> : vector<2x64xf32>
    %399 = tpu.matmul %396, %398, %cst_257 {dimension_numbers = #tpu.dot_dimension_numbers<[1], [0], [0], [1], [0, 0, 1, 1], [], []>} : vector<2x64xbf16>, vector<64x64xbf16>, vector<2x64xf32> -> vector<2x64xf32>
    %c1_258 = arith.constant 1 : index
    %c0_259 = arith.constant 0 : index
    %c0_260 = arith.constant 0 : index
    %400 = vector.load %arg26[%c1_258, %c0_259, %c0_260] : memref<3x64x64xbf16, #tpu.memory_space<vmem>>, vector<1x64x64xbf16>
    %401 = vector.shape_cast %400 : vector<1x64x64xbf16> to vector<64x64xbf16>
    %cst_261 = arith.constant dense<0.000000e+00> : vector<2x64xf32>
    %402 = tpu.matmul %396, %401, %cst_261 {dimension_numbers = #tpu.dot_dimension_numbers<[1], [0], [0], [1], [0, 0, 1, 1], [], []>} : vector<2x64xbf16>, vector<64x64xbf16>, vector<2x64xf32> -> vector<2x64xf32>
    %c2_262 = arith.constant 2 : index
    %c0_263 = arith.constant 0 : index
    %c0_264 = arith.constant 0 : index
    %403 = vector.load %arg26[%c2_262, %c0_263, %c0_264] : memref<3x64x64xbf16, #tpu.memory_space<vmem>>, vector<1x64x64xbf16>
    %404 = vector.shape_cast %403 : vector<1x64x64xbf16> to vector<64x64xbf16>
    %cst_265 = arith.constant dense<0.000000e+00> : vector<2x64xf32>
    %405 = tpu.matmul %396, %404, %cst_265 {dimension_numbers = #tpu.dot_dimension_numbers<[1], [0], [0], [1], [0, 0, 1, 1], [], []>} : vector<2x64xbf16>, vector<64x64xbf16>, vector<2x64xf32> -> vector<2x64xf32>
    %cst_266 = arith.constant dense<0.000000e+00> : vector<2x64xf32>
    %406 = tpu.matmul %362, %399, %cst_266 {dimension_numbers = #tpu.dot_dimension_numbers<[1], [0], [0], [1], [0, 0, 1, 1], [], []>} : vector<2x2xf32>, vector<2x64xf32>, vector<2x64xf32> -> vector<2x64xf32>
    %407 = arith.addf %402, %406 : vector<2x64xf32>
    %cst_267 = arith.constant dense<0.000000e+00> : vector<2x64xf32>
    %408 = tpu.matmul %367, %405, %cst_267 {dimension_numbers = #tpu.dot_dimension_numbers<[1], [0], [0], [1], [0, 0, 1, 1], [], []>} : vector<2x2xf32>, vector<2x64xf32>, vector<2x64xf32> -> vector<2x64xf32>
    %409 = arith.addf %407, %408 : vector<2x64xf32>
    %c0_268 = arith.constant 0 : index
    %c0_269 = arith.constant 0 : index
    %410 = vector.load %arg27[%c0_268, %c0_269] : memref<1x64xf32, #tpu.memory_space<vmem>>, vector<1x64xf32>
    %411 = vector.broadcast %410 : vector<1x64xf32> to vector<2x64xf32>
    %412 = arith.addf %409, %411 : vector<2x64xf32>
    %cst_270 = arith.constant 0.000000e+00 : f32
    %413 = vector.broadcast %cst_270 : f32 to vector<2x64xf32>
    %414 = arith.maximumf %412, %413 : vector<2x64xf32>
    %415 = tpu.iota {dimensions = array<i32: 0>} : vector<64x32xi32>
    %416 = tpu.iota {dimensions = array<i32: 1>} : vector<64x32xi32>
    %c2_i32_271 = arith.constant 2 : i32
    %417 = vector.broadcast %c2_i32_271 : i32 to vector<64x32xi32>
    %418 = arith.muli %417, %416 : vector<64x32xi32>
    %419 = arith.cmpi eq, %415, %418 : vector<64x32xi32>
    %420 = arith.extui %419 : vector<64x32xi1> to vector<64x32xi32>
    %421 = arith.sitofp %420 : vector<64x32xi32> to vector<64x32xf32>
    %c2_i32_272 = arith.constant 2 : i32
    %422 = vector.broadcast %c2_i32_272 : i32 to vector<64x32xi32>
    %423 = arith.muli %422, %416 : vector<64x32xi32>
    %c1_i32_273 = arith.constant 1 : i32
    %424 = vector.broadcast %c1_i32_273 : i32 to vector<64x32xi32>
    %425 = arith.addi %423, %424 : vector<64x32xi32>
    %426 = arith.cmpi eq, %415, %425 : vector<64x32xi32>
    %427 = arith.extui %426 : vector<64x32xi1> to vector<64x32xi32>
    %428 = arith.sitofp %427 : vector<64x32xi32> to vector<64x32xf32>
    %cst_274 = arith.constant dense<0.000000e+00> : vector<2x32xf32>
    %429 = tpu.matmul %414, %421, %cst_274 {dimension_numbers = #tpu.dot_dimension_numbers<[1], [0], [0], [1], [0, 0, 1, 1], [], []>} : vector<2x64xf32>, vector<64x32xf32>, vector<2x32xf32> -> vector<2x32xf32>
    %cst_275 = arith.constant dense<0.000000e+00> : vector<2x32xf32>
    %430 = tpu.matmul %414, %428, %cst_275 {dimension_numbers = #tpu.dot_dimension_numbers<[1], [0], [0], [1], [0, 0, 1, 1], [], []>} : vector<2x64xf32>, vector<64x32xf32>, vector<2x32xf32> -> vector<2x32xf32>
    %431 = arith.maximumf %429, %430 : vector<2x32xf32>
    %432 = tpu.iota {dimensions = array<i32: 0>} : vector<1x2xi32>
    %433 = tpu.iota {dimensions = array<i32: 1>} : vector<1x2xi32>
    %c2_i32_276 = arith.constant 2 : i32
    %434 = vector.broadcast %c2_i32_276 : i32 to vector<1x2xi32>
    %435 = arith.muli %434, %432 : vector<1x2xi32>
    %436 = arith.cmpi eq, %433, %435 : vector<1x2xi32>
    %437 = arith.extui %436 : vector<1x2xi1> to vector<1x2xi32>
    %438 = arith.sitofp %437 : vector<1x2xi32> to vector<1x2xf32>
    %c2_i32_277 = arith.constant 2 : i32
    %439 = vector.broadcast %c2_i32_277 : i32 to vector<1x2xi32>
    %440 = arith.muli %439, %432 : vector<1x2xi32>
    %c1_i32_278 = arith.constant 1 : i32
    %441 = vector.broadcast %c1_i32_278 : i32 to vector<1x2xi32>
    %442 = arith.addi %440, %441 : vector<1x2xi32>
    %443 = arith.cmpi eq, %433, %442 : vector<1x2xi32>
    %444 = arith.extui %443 : vector<1x2xi1> to vector<1x2xi32>
    %445 = arith.sitofp %444 : vector<1x2xi32> to vector<1x2xf32>
    %cst_279 = arith.constant dense<0.000000e+00> : vector<1x32xf32>
    %446 = tpu.matmul %438, %431, %cst_279 {dimension_numbers = #tpu.dot_dimension_numbers<[1], [0], [0], [1], [0, 0, 1, 1], [], []>} : vector<1x2xf32>, vector<2x32xf32>, vector<1x32xf32> -> vector<1x32xf32>
    %cst_280 = arith.constant dense<0.000000e+00> : vector<1x32xf32>
    %447 = tpu.matmul %445, %431, %cst_280 {dimension_numbers = #tpu.dot_dimension_numbers<[1], [0], [0], [1], [0, 0, 1, 1], [], []>} : vector<1x2xf32>, vector<2x32xf32>, vector<1x32xf32> -> vector<1x32xf32>
    %448 = arith.maximumf %446, %447 : vector<1x32xf32>
    %c0_281 = arith.constant 0 : index
    %c0_282 = arith.constant 0 : index
    %c0_283 = arith.constant 0 : index
    %449 = vector.load %arg38[%c0_281, %c0_282, %c0_283] : memref<1x1x32xf32, #tpu.memory_space<vmem>>, vector<1x1x32xf32>
    %450 = vector.shape_cast %449 : vector<1x1x32xf32> to vector<1x32xf32>
    %451 = vector.shape_cast %448 : vector<1x32xf32> to vector<1x1x32xf32>
    tpu.vector_store %arg38[%c0_281, %c0_282, %c0_283], %451 {strides = array<i32>} : memref<1x1x32xf32, #tpu.memory_space<vmem>>, vector<1x1x32xf32>,
    %452 = arith.truncf %448 : vector<1x32xf32> to vector<1x32xbf16>
    %c0_284 = arith.constant 0 : index
    %c0_285 = arith.constant 0 : index
    %453 = vector.load %arg29[%c0_284, %c0_285] : memref<1x256xf32, #tpu.memory_space<vmem>>, vector<1x256xf32>
    %c0_286 = arith.constant 0 : index
    %c0_287 = arith.constant 0 : index
    %c0_288 = arith.constant 0 : index
    %454 = vector.load %arg28[%c0_286, %c0_287, %c0_288] : memref<1x32x256xbf16, #tpu.memory_space<vmem>>, vector<1x32x256xbf16>
    %455 = vector.shape_cast %454 : vector<1x32x256xbf16> to vector<32x256xbf16>
    %cst_289 = arith.constant dense<0.000000e+00> : vector<1x256xf32>
    %456 = tpu.matmul %452, %455, %cst_289 {dimension_numbers = #tpu.dot_dimension_numbers<[1], [0], [0], [1], [0, 0, 1, 1], [], []>} : vector<1x32xbf16>, vector<32x256xbf16>, vector<1x256xf32> -> vector<1x256xf32>
    %457 = arith.addf %453, %456 : vector<1x256xf32>
    %cst_290 = arith.constant 0.000000e+00 : f32
    %458 = vector.broadcast %cst_290 : f32 to vector<1x256xf32>
    %459 = arith.maximumf %457, %458 : vector<1x256xf32>
    %c0_291 = arith.constant 0 : index
    %c0_292 = arith.constant 0 : index
    %c0_293 = arith.constant 0 : index
    %460 = vector.load %arg39[%c0_291, %c0_292, %c0_293] : memref<1x1x256xf32, #tpu.memory_space<vmem>>, vector<1x1x256xf32>
    %461 = vector.shape_cast %460 : vector<1x1x256xf32> to vector<1x256xf32>
    %462 = vector.shape_cast %459 : vector<1x256xf32> to vector<1x1x256xf32>
    tpu.vector_store %arg39[%c0_291, %c0_292, %c0_293], %462 {strides = array<i32>} : memref<1x1x256xf32, #tpu.memory_space<vmem>>, vector<1x1x256xf32>,
    %463 = arith.truncf %459 : vector<1x256xf32> to vector<1x256xbf16>
    %c0_294 = arith.constant 0 : index
    %c0_295 = arith.constant 0 : index
    %464 = vector.load %arg30[%c0_294, %c0_295] : memref<256x256xbf16, #tpu.memory_space<vmem>>, vector<256x256xbf16>
    %cst_296 = arith.constant dense<0.000000e+00> : vector<1x256xf32>
    %465 = tpu.matmul %463, %464, %cst_296 {dimension_numbers = #tpu.dot_dimension_numbers<[1], [0], [0], [1], [0, 0, 1, 1], [], []>} : vector<1x256xbf16>, vector<256x256xbf16>, vector<1x256xf32> -> vector<1x256xf32>
    %c0_297 = arith.constant 0 : index
    %c0_298 = arith.constant 0 : index
    %466 = vector.load %arg31[%c0_297, %c0_298] : memref<1x256xf32, #tpu.memory_space<vmem>>, vector<1x256xf32>
    %467 = arith.addf %465, %466 : vector<1x256xf32>
    %cst_299 = arith.constant 0.000000e+00 : f32
    %468 = vector.broadcast %cst_299 : f32 to vector<1x256xf32>
    %469 = arith.maximumf %467, %468 : vector<1x256xf32>
    %c0_300 = arith.constant 0 : index
    %c0_301 = arith.constant 0 : index
    %c0_302 = arith.constant 0 : index
    %470 = vector.load %arg40[%c0_300, %c0_301, %c0_302] : memref<1x1x256xf32, #tpu.memory_space<vmem>>, vector<1x1x256xf32>
    %471 = vector.shape_cast %470 : vector<1x1x256xf32> to vector<1x256xf32>
    %472 = vector.shape_cast %469 : vector<1x256xf32> to vector<1x1x256xf32>
    tpu.vector_store %arg40[%c0_300, %c0_301, %c0_302], %472 {strides = array<i32>} : memref<1x1x256xf32, #tpu.memory_space<vmem>>, vector<1x1x256xf32>,
    %473 = arith.truncf %469 : vector<1x256xf32> to vector<1x256xbf16>
    %c0_303 = arith.constant 0 : index
    %c0_304 = arith.constant 0 : index
    %474 = vector.load %arg32[%c0_303, %c0_304] : memref<256x64xbf16, #tpu.memory_space<vmem>>, vector<256x64xbf16>
    %cst_305 = arith.constant dense<0.000000e+00> : vector<1x64xf32>
    %475 = tpu.matmul %473, %474, %cst_305 {dimension_numbers = #tpu.dot_dimension_numbers<[1], [0], [0], [1], [0, 0, 1, 1], [], []>} : vector<1x256xbf16>, vector<256x64xbf16>, vector<1x64xf32> -> vector<1x64xf32>
    %c0_306 = arith.constant 0 : index
    %c0_307 = arith.constant 0 : index
    %476 = vector.load %arg33[%c0_306, %c0_307] : memref<1x64xf32, #tpu.memory_space<vmem>>, vector<1x64xf32>
    %477 = arith.addf %475, %476 : vector<1x64xf32>
    %c0_308 = arith.constant 0 : index
    %c0_309 = arith.constant 0 : index
    %c0_310 = arith.constant 0 : index
    %478 = vector.load %arg41[%c0_308, %c0_309, %c0_310] : memref<1x1x64xf32, #tpu.memory_space<vmem>>, vector<1x1x64xf32>
    %479 = vector.shape_cast %478 : vector<1x1x64xf32> to vector<1x64xf32>
    %480 = vector.shape_cast %477 : vector<1x64xf32> to vector<1x1x64xf32>
    tpu.vector_store %arg41[%c0_308, %c0_309, %c0_310], %480 {strides = array<i32>} : memref<1x1x64xf32, #tpu.memory_space<vmem>>, vector<1x1x64xf32>,
    return
  }
  func.func @transform_0(%arg0: i32) -> (i32, i32, i32) {
    %c0_i32 = arith.constant 0 : i32
    %c0_i32_0 = arith.constant 0 : i32
    %c0_i32_1 = arith.constant 0 : i32
    return %arg0, %c0_i32, %c0_i32_0 : i32, i32, i32
  }
  func.func @transform_1(%arg0: i32) -> (i32, i32, i32) {
    %c0_i32 = arith.constant 0 : i32
    %c0_i32_0 = arith.constant 0 : i32
    %c0_i32_1 = arith.constant 0 : i32
    %c0_i32_2 = arith.constant 0 : i32
    return %c0_i32, %c0_i32_0, %c0_i32_1 : i32, i32, i32
  }
  func.func @transform_2(%arg0: i32) -> (i32, i32) {
    %c0_i32 = arith.constant 0 : i32
    %c0_i32_0 = arith.constant 0 : i32
    %c0_i32_1 = arith.constant 0 : i32
    return %c0_i32, %c0_i32_0 : i32, i32
  }
  func.func @transform_3(%arg0: i32) -> (i32, i32, i32) {
    %c0_i32 = arith.constant 0 : i32
    %c0_i32_0 = arith.constant 0 : i32
    %c0_i32_1 = arith.constant 0 : i32
    %c0_i32_2 = arith.constant 0 : i32
    return %c0_i32, %c0_i32_0, %c0_i32_1 : i32, i32, i32
  }
  func.func @transform_4(%arg0: i32) -> (i32, i32) {
    %c0_i32 = arith.constant 0 : i32
    %c0_i32_0 = arith.constant 0 : i32
    %c0_i32_1 = arith.constant 0 : i32
    return %c0_i32, %c0_i32_0 : i32, i32
  }
  func.func @transform_5(%arg0: i32) -> (i32, i32, i32) {
    %c0_i32 = arith.constant 0 : i32
    %c0_i32_0 = arith.constant 0 : i32
    %c0_i32_1 = arith.constant 0 : i32
    %c0_i32_2 = arith.constant 0 : i32
    return %c0_i32, %c0_i32_0, %c0_i32_1 : i32, i32, i32
  }
  func.func @transform_6(%arg0: i32) -> (i32, i32) {
    %c0_i32 = arith.constant 0 : i32
    %c0_i32_0 = arith.constant 0 : i32
    %c0_i32_1 = arith.constant 0 : i32
    return %c0_i32, %c0_i32_0 : i32, i32
  }
  func.func @transform_7(%arg0: i32) -> (i32, i32, i32) {
    %c0_i32 = arith.constant 0 : i32
    %c0_i32_0 = arith.constant 0 : i32
    %c0_i32_1 = arith.constant 0 : i32
    %c0_i32_2 = arith.constant 0 : i32
    return %c0_i32, %c0_i32_0, %c0_i32_1 : i32, i32, i32
  }
  func.func @transform_8(%arg0: i32) -> (i32, i32) {
    %c0_i32 = arith.constant 0 : i32
    %c0_i32_0 = arith.constant 0 : i32
    %c0_i32_1 = arith.constant 0 : i32
    return %c0_i32, %c0_i32_0 : i32, i32
  }
  func.func @transform_9(%arg0: i32) -> (i32, i32, i32) {
    %c0_i32 = arith.constant 0 : i32
    %c0_i32_0 = arith.constant 0 : i32
    %c0_i32_1 = arith.constant 0 : i32
    %c0_i32_2 = arith.constant 0 : i32
    return %c0_i32, %c0_i32_0, %c0_i32_1 : i32, i32, i32
  }
  func.func @transform_10(%arg0: i32) -> (i32, i32) {
    %c0_i32 = arith.constant 0 : i32
    %c0_i32_0 = arith.constant 0 : i32
    %c0_i32_1 = arith.constant 0 : i32
    return %c0_i32, %c0_i32_0 : i32, i32
  }
  func.func @transform_11(%arg0: i32) -> (i32, i32, i32) {
    %c0_i32 = arith.constant 0 : i32
    %c0_i32_0 = arith.constant 0 : i32
    %c0_i32_1 = arith.constant 0 : i32
    %c0_i32_2 = arith.constant 0 : i32
    return %c0_i32, %c0_i32_0, %c0_i32_1 : i32, i32, i32
  }
  func.func @transform_12(%arg0: i32) -> (i32, i32) {
    %c0_i32 = arith.constant 0 : i32
    %c0_i32_0 = arith.constant 0 : i32
    %c0_i32_1 = arith.constant 0 : i32
    return %c0_i32, %c0_i32_0 : i32, i32
  }
  func.func @transform_13(%arg0: i32) -> (i32, i32, i32) {
    %c0_i32 = arith.constant 0 : i32
    %c0_i32_0 = arith.constant 0 : i32
    %c0_i32_1 = arith.constant 0 : i32
    %c0_i32_2 = arith.constant 0 : i32
    return %c0_i32, %c0_i32_0, %c0_i32_1 : i32, i32, i32
  }
  func.func @transform_14(%arg0: i32) -> (i32, i32) {
    %c0_i32 = arith.constant 0 : i32
    %c0_i32_0 = arith.constant 0 : i32
    %c0_i32_1 = arith.constant 0 : i32
    return %c0_i32, %c0_i32_0 : i32, i32
  }
  func.func @transform_15(%arg0: i32) -> (i32, i32, i32) {
    %c0_i32 = arith.constant 0 : i32
    %c0_i32_0 = arith.constant 0 : i32
    %c0_i32_1 = arith.constant 0 : i32
    %c0_i32_2 = arith.constant 0 : i32
    return %c0_i32, %c0_i32_0, %c0_i32_1 : i32, i32, i32
  }
  func.func @transform_16(%arg0: i32) -> (i32, i32) {
    %c0_i32 = arith.constant 0 : i32
    %c0_i32_0 = arith.constant 0 : i32
    %c0_i32_1 = arith.constant 0 : i32
    return %c0_i32, %c0_i32_0 : i32, i32
  }
  func.func @transform_17(%arg0: i32) -> (i32, i32, i32) {
    %c0_i32 = arith.constant 0 : i32
    %c0_i32_0 = arith.constant 0 : i32
    %c0_i32_1 = arith.constant 0 : i32
    %c0_i32_2 = arith.constant 0 : i32
    return %c0_i32, %c0_i32_0, %c0_i32_1 : i32, i32, i32
  }
  func.func @transform_18(%arg0: i32) -> (i32, i32) {
    %c0_i32 = arith.constant 0 : i32
    %c0_i32_0 = arith.constant 0 : i32
    %c0_i32_1 = arith.constant 0 : i32
    return %c0_i32, %c0_i32_0 : i32, i32
  }
  func.func @transform_19(%arg0: i32) -> (i32, i32, i32) {
    %c0_i32 = arith.constant 0 : i32
    %c0_i32_0 = arith.constant 0 : i32
    %c0_i32_1 = arith.constant 0 : i32
    %c0_i32_2 = arith.constant 0 : i32
    return %c0_i32, %c0_i32_0, %c0_i32_1 : i32, i32, i32
  }
  func.func @transform_20(%arg0: i32) -> (i32, i32) {
    %c0_i32 = arith.constant 0 : i32
    %c0_i32_0 = arith.constant 0 : i32
    %c0_i32_1 = arith.constant 0 : i32
    return %c0_i32, %c0_i32_0 : i32, i32
  }
  func.func @transform_21(%arg0: i32) -> (i32, i32, i32) {
    %c0_i32 = arith.constant 0 : i32
    %c0_i32_0 = arith.constant 0 : i32
    %c0_i32_1 = arith.constant 0 : i32
    %c0_i32_2 = arith.constant 0 : i32
    return %c0_i32, %c0_i32_0, %c0_i32_1 : i32, i32, i32
  }
  func.func @transform_22(%arg0: i32) -> (i32, i32) {
    %c0_i32 = arith.constant 0 : i32
    %c0_i32_0 = arith.constant 0 : i32
    %c0_i32_1 = arith.constant 0 : i32
    return %c0_i32, %c0_i32_0 : i32, i32
  }
  func.func @transform_23(%arg0: i32) -> (i32, i32, i32) {
    %c0_i32 = arith.constant 0 : i32
    %c0_i32_0 = arith.constant 0 : i32
    %c0_i32_1 = arith.constant 0 : i32
    %c0_i32_2 = arith.constant 0 : i32
    return %c0_i32, %c0_i32_0, %c0_i32_1 : i32, i32, i32
  }
  func.func @transform_24(%arg0: i32) -> (i32, i32) {
    %c0_i32 = arith.constant 0 : i32
    %c0_i32_0 = arith.constant 0 : i32
    %c0_i32_1 = arith.constant 0 : i32
    return %c0_i32, %c0_i32_0 : i32, i32
  }
  func.func @transform_25(%arg0: i32) -> (i32, i32, i32) {
    %c0_i32 = arith.constant 0 : i32
    %c0_i32_0 = arith.constant 0 : i32
    %c0_i32_1 = arith.constant 0 : i32
    %c0_i32_2 = arith.constant 0 : i32
    return %c0_i32, %c0_i32_0, %c0_i32_1 : i32, i32, i32
  }
  func.func @transform_26(%arg0: i32) -> (i32, i32) {
    %c0_i32 = arith.constant 0 : i32
    %c0_i32_0 = arith.constant 0 : i32
    %c0_i32_1 = arith.constant 0 : i32
    return %c0_i32, %c0_i32_0 : i32, i32
  }
  func.func @transform_27(%arg0: i32) -> (i32, i32, i32) {
    %c0_i32 = arith.constant 0 : i32
    %c0_i32_0 = arith.constant 0 : i32
    %c0_i32_1 = arith.constant 0 : i32
    %c0_i32_2 = arith.constant 0 : i32
    return %c0_i32, %c0_i32_0, %c0_i32_1 : i32, i32, i32
  }
  func.func @transform_28(%arg0: i32) -> (i32, i32) {
    %c0_i32 = arith.constant 0 : i32
    %c0_i32_0 = arith.constant 0 : i32
    %c0_i32_1 = arith.constant 0 : i32
    return %c0_i32, %c0_i32_0 : i32, i32
  }
  func.func @transform_29(%arg0: i32) -> (i32, i32) {
    %c0_i32 = arith.constant 0 : i32
    %c0_i32_0 = arith.constant 0 : i32
    %c0_i32_1 = arith.constant 0 : i32
    return %c0_i32, %c0_i32_0 : i32, i32
  }
  func.func @transform_30(%arg0: i32) -> (i32, i32) {
    %c0_i32 = arith.constant 0 : i32
    %c0_i32_0 = arith.constant 0 : i32
    %c0_i32_1 = arith.constant 0 : i32
    return %c0_i32, %c0_i32_0 : i32, i32
  }
  func.func @transform_31(%arg0: i32) -> (i32, i32) {
    %c0_i32 = arith.constant 0 : i32
    %c0_i32_0 = arith.constant 0 : i32
    %c0_i32_1 = arith.constant 0 : i32
    return %c0_i32, %c0_i32_0 : i32, i32
  }
  func.func @transform_32(%arg0: i32) -> (i32, i32) {
    %c0_i32 = arith.constant 0 : i32
    %c0_i32_0 = arith.constant 0 : i32
    %c0_i32_1 = arith.constant 0 : i32
    return %c0_i32, %c0_i32_0 : i32, i32
  }
  func.func @transform_33(%arg0: i32) -> (i32, i32, i32) {
    %c0_i32 = arith.constant 0 : i32
    %c0_i32_0 = arith.constant 0 : i32
    %c0_i32_1 = arith.constant 0 : i32
    return %arg0, %c0_i32, %c0_i32_0 : i32, i32, i32
  }
  func.func @transform_34(%arg0: i32) -> (i32, i32, i32) {
    %c0_i32 = arith.constant 0 : i32
    %c0_i32_0 = arith.constant 0 : i32
    %c0_i32_1 = arith.constant 0 : i32
    return %arg0, %c0_i32, %c0_i32_0 : i32, i32, i32
  }
  func.func @transform_35(%arg0: i32) -> (i32, i32, i32) {
    %c0_i32 = arith.constant 0 : i32
    %c0_i32_0 = arith.constant 0 : i32
    %c0_i32_1 = arith.constant 0 : i32
    return %arg0, %c0_i32, %c0_i32_0 : i32, i32, i32
  }
  func.func @transform_36(%arg0: i32) -> (i32, i32, i32) {
    %c0_i32 = arith.constant 0 : i32
    %c0_i32_0 = arith.constant 0 : i32
    %c0_i32_1 = arith.constant 0 : i32
    return %arg0, %c0_i32, %c0_i32_0 : i32, i32, i32
  }
  func.func @transform_37(%arg0: i32) -> (i32, i32, i32) {
    %c0_i32 = arith.constant 0 : i32
    %c0_i32_0 = arith.constant 0 : i32
    %c0_i32_1 = arith.constant 0 : i32
    return %arg0, %c0_i32, %c0_i32_0 : i32, i32, i32
  }
  func.func @transform_38(%arg0: i32) -> (i32, i32, i32) {
    %c0_i32 = arith.constant 0 : i32
    %c0_i32_0 = arith.constant 0 : i32
    %c0_i32_1 = arith.constant 0 : i32
    return %arg0, %c0_i32, %c0_i32_0 : i32, i32, i32
  }
  func.func @transform_39(%arg0: i32) -> (i32, i32, i32) {
    %c0_i32 = arith.constant 0 : i32
    %c0_i32_0 = arith.constant 0 : i32
    %c0_i32_1 = arith.constant 0 : i32
    return %arg0, %c0_i32, %c0_i32_0 : i32, i32, i32
  }
  func.func @transform_40(%arg0: i32) -> (i32, i32, i32) {
    %c0_i32 = arith.constant 0 : i32
    %c0_i32_0 = arith.constant 0 : i32
    %c0_i32_1 = arith.constant 0 : i32
    return %arg0, %c0_i32, %c0_i32_0 : i32, i32, i32
  }
}

</mosaic_0001>

<bundles_post_ra>
// kernel: vgg16_bn_forward.1
= control target key start
LH: loop header
LB: loop body
LE: loop exit
PB: predicated region body
PF: predicated region fallthrough
CT: control target
= control target key end

     0   :  { %s13967_s6 = smov 1   ;;  %s13968_s10 = smov 2   ;;  %s15893_s0 = inlined_call_operand.smem [shape: u32[41], index: -1, kind: input, shape index: {}] }
   0x1   :  { %s14044_s5 = sld [smem:[%s15893_s0]]   ;;  %s13969_s14 = smov 3  }
   0x2   :  { %s14049_s9 = sld [smem:[%s15893_s0 + %s13967_s6]]   ;;  %s13970_s18 = smov 4  }
   0x3   :  { %s14054_s13 = sld [smem:[%s15893_s0 + %s13968_s10]]   ;;  %s13971_s22 = smov 5  }
   0x4   :  { %s14059_s17 = sld [smem:[%s15893_s0 + %s13969_s14]]   ;;  %s13972_s26 = smov 6  }
   0x5   :  { %s14064_s21 = sld [smem:[%s15893_s0 + %s13970_s18]]   ;;  %s13973_s30 = smov 7  }
   0x6   :  { %s14069_s25 = sld [smem:[%s15893_s0 + %s13971_s22]]   ;;  %s13974_s4 = smov 8  }
   0x7   :  { %15953 = sst [smem:[#allocation43_spill]] %s14044_s5  ;;  %s13975_s10 = smov 9  }
   0x8   :  { %15954 = sst [smem:[#allocation44_spill]] %s14049_s9  ;;  %s13976_s15 = smov 10  }
   0x9   :  { %15955 = sst [smem:[#allocation45_spill]] %s14054_s13  ;;  %s13977_s20 = smov 11  }
   0xa   :  { %15956 = sst [smem:[#allocation46_spill]] %s14059_s17  ;;  %s13979_s1 = smov 13  }
   0xb   :  { %15957 = sst [smem:[#allocation47_spill]] %s14064_s21  ;;  %s13980_s7 = smov 14  }
   0xc   :  { %s14074_s29 = sld [smem:[%s15893_s0 + %s13972_s26]]   ;;  %s13978_s26 = smov 12  }
   0xd   :  { %s14079_s3 = sld [smem:[%s15893_s0 + %s13973_s30]]   ;;  %s13982_s22 = smov 16  }
   0xe   :  { %s14084_s8 = sld [smem:[%s15893_s0 + %s13974_s4]]   ;;  %s13983_s28 = smov 17  }
   0xf   :  { %s14089_s14 = sld [smem:[%s15893_s0 + %s13975_s10]]  }
  0x10   :  { %s14094_s19 = sld [smem:[%s15893_s0 + %s13976_s15]]   ;;  %s13981_s15 = smov 15  }
  0x11   :  { %s14099_s24 = sld [smem:[%s15893_s0 + %s13977_s20]]  }
  0x12   :  { %15958 = sst [smem:[#allocation48_spill]] %s14074_s29 }
  0x13   :  { %15959 = sst [smem:[#allocation49_spill]] %s14079_s3 }
  0x14   :  { %15960 = sst [smem:[#allocation50_spill]] %s14084_s8 }
  0x15   :  { %s14104_s30 = sld [smem:[%s15893_s0 + %s13978_s26]]  }
  0x16   :  { %15961 = sst [smem:[#allocation51_spill]] %s14094_s19 }
  0x17   :  { %15962 = sst [smem:[#allocation52_spill]] %s14099_s24 }
  0x18   :  { %s14109_s6 = sld [smem:[%s15893_s0 + %s13979_s1]]  }
  0x19   :  { %s14114_s12 = sld [smem:[%s15893_s0 + %s13980_s7]]   ;;  %s13984_s7 = smov 18  }
  0x1a   :  { %s14119_s20 = sld [smem:[%s15893_s0 + %s13981_s15]]   ;;  %s13985_s15 = smov 19  }
  0x1b   :  { %15963 = sst [smem:[#allocation53_spill]] %s14104_s30 }
  0x1c   :  { %s14124_s27 = sld [smem:[%s15893_s0 + %s13982_s22]]   ;;  %s13986_s22 = smov 20  }
  0x1d   :  { %s14129_s4 = sld [smem:[%s15893_s0 + %s13983_s28]]   ;;  %s13987_s28 = smov 21  }
  0x1e   :  { %15964 = sst [smem:[#allocation54_spill]] %s14109_s6 }
  0x1f   :  { %15965 = sst [smem:[#allocation55_spill]] %s14114_s12 }
  0x20   :  { %s14134_s30 = sld [smem:[%s15893_s0 + %s13984_s7]]   ;;  %s13988_s7 = smov 22  }
  0x21   :  { %s14139_s19 = sld [smem:[%s15893_s0 + %s13985_s15]]   ;;  %s13989_s15 = smov 23  }
  0x22   :  { %s14144_s24 = sld [smem:[%s15893_s0 + %s13986_s22]]   ;;  %s13990_s22 = smov 24  }
  0x23   :  { %15966 = sst [smem:[#allocation56_spill]] %s14129_s4 }
  0x24   :  { %s14149_s8 = sld [smem:[%s15893_s0 + %s13987_s28]]   ;;  %s13991_s28 = smov 25  }
  0x25   :  { %s14154_s29 = sld [smem:[%s15893_s0 + %s13988_s7]]   ;;  %s13992_s7 = smov 26  }
  0x26   :  { %s14159_s3 = sld [smem:[%s15893_s0 + %s13989_s15]]   ;;  %s13993_s15 = smov 27  }
  0x27   :  { %s14164_s21 = sld [smem:[%s15893_s0 + %s13990_s22]]   ;;  %s13994_s22 = smov 28  }
  0x28   :  { %s14169_s13 = sld [smem:[%s15893_s0 + %s13991_s28]]   ;;  %s13995_s28 = smov 29  }
  0x29   :  { %s14179_s17 = sld [smem:[%s15893_s0 + %s13993_s15]]   ;;  %s13997_s15 = smov 31  }
  0x2a   :  { %15967 = sst [smem:[#allocation57_spill]] %s14149_s8 }
  0x2b   :  { %15968 = sst [smem:[#allocation58_spill]] %s14154_s29 }
  0x2c   :  { %15969 = sst [smem:[#allocation59_spill]] %s14159_s3 }
  0x2d   :  { %15970 = sst [smem:[#allocation60_spill]] %s14164_s21 }
  0x2e   :  { %15971 = sst [smem:[#allocation61_spill]] %s14169_s13 }
  0x2f   :  { %s14174_s29 = sld [smem:[%s15893_s0 + %s13992_s7]]   ;;  %s13996_s7 = smov 30  }
  0x30   :  { %s14184_s5 = sld [smem:[%s15893_s0 + %s13994_s22]]   ;;  %s13998_s22 = smov 32  }
  0x31   :  { %s14189_s9 = sld [smem:[%s15893_s0 + %s13995_s28]]   ;;  %s13999_s28 = smov 33  }
  0x32   :  { %s14199_s21 = sld [smem:[%s15893_s0 + %s13997_s15]]   ;;  %s14001_s15 = smov 35  }
  0x35   :  { %15972 = sst [smem:[#allocation62_spill]] %s14174_s29 }
  0x36   :  { %15973 = sst [smem:[#allocation63_spill]] %s14184_s5 }
  0x37   :  { %15974 = sst [smem:[#allocation64_spill]] %s14189_s9 }
  0x38   :  { %s14194_s29 = sld [smem:[%s15893_s0 + %s13996_s7]]   ;;  %s14000_s7 = smov 34  }
  0x39   :  { %15976 = sst [smem:[#allocation66_spill]] %s14199_s21 }
  0x3a   :  { %s14204_s5 = sld [smem:[%s15893_s0 + %s13998_s22]]   ;;  %s14002_s22 = smov 36  }
  0x3b   :  { %s14209_s9 = sld [smem:[%s15893_s0 + %s13999_s28]]   ;;  %s14003_s28 = smov 37  }
  0x3c   :  { %s14219_s21 = sld [smem:[%s15893_s0 + %s14001_s15]]   ;;  %s14005_s15 = smov 39  }
  0x3e   :  { %15975 = sst [smem:[#allocation65_spill]] %s14194_s29 }
  0x3f   :  { %s14214_s29 = sld [smem:[%s15893_s0 + %s14000_s7]]   ;;  %s14004_s7 = smov 38  }
  0x40   :  { %15977 = sst [smem:[#allocation67_spill]] %s14204_s5 }
  0x41   :  { %15978 = sst [smem:[#allocation68_spill]] %s14209_s9 }
  0x42   :  { %15980 = sst [smem:[#allocation70_spill]] %s14219_s21 }
  0x43   :  { %s14224_s5 = sld [smem:[%s15893_s0 + %s14002_s22]]   ;;  %s14006_s22 = smov 40  }
  0x44   :  { %s14229_s9 = sld [smem:[%s15893_s0 + %s14003_s28]]  }
  0x45   :  { %15979 = sst [smem:[#allocation69_spill]] %s14214_s29 }
  0x46   :  { %s14234_s29 = sld [smem:[%s15893_s0 + %s14004_s7]]  }
  0x47   :  { %s14239_s21 = sld [smem:[%s15893_s0 + %s14005_s15]]  }
  0x49   :  { %15981 = sst [smem:[#allocation71_spill]] %s14224_s5 }
  0x4a   :  { %s14244_s5 = sld [smem:[%s15893_s0 + %s14006_s22]]  }
  0x50   :  { %15982 = sst [smem:[#allocation72_spill]] %s14244_s5 }
  0x51   :  { %87 = vsyncpa [#allocation3], 0 }
  0x52   :  { %88 = vsyncpa [#allocation6], 0 }
  0x53   :  { %89 = vsyncpa [#allocation9], 0 }
  0x54   :  { %90 = vsyncpa [#allocation12], 0 }
  0x55   :  { %91 = vsyncpa [#allocation15], 0 }
  0x56   :  { %92 = vsyncpa [#allocation18], 0 }
  0x57   :  { %93 = vsyncpa [#allocation21], 0 }
  0x58   :  { %94 = vsyncpa [#allocation24], 0 }
  0x59   :  { %95 = vsyncpa [#allocation27], 0 }
  0x5a   :  { %96 = vsyncpa [#allocation4], 0 }
  0x5b   :  { %98 = vsyncpa [#allocation4 + $0x1], 0 }
  0x5c   :  { %99 = vsyncpa [#allocation31], 0 }
  0x5d   :  { %101 = vsyncpa [#allocation31 + $0x1], 0  ;;  %s14246_s28 = smov 0   ;;  %s14248_s1 = smov 0  }
  0x5e   :  { %s14250_s2 = smov 0   ;;  %s14252_s0 = smov 0  }
  0x5f LB: > { %s15983_s8 = sld [smem:[#allocation57_spill]]  ;;  %s15984_s6 = sld [smem:[#allocation54_spill]]  ;;  %s13957_s1 = sphi %s14248_s1, %s16132_s1   ;;  %s13953_s28 = sphi %s14246_s28, %s16131_s28   ;;  %s13965_s0 = sphi %s14252_s0, %s16128_s0   ;;  %s13961_s2 = sphi %s14250_s2, %s16130_s2  }
  0x60   : > { %s15985_s4 = sld [smem:[#allocation56_spill]]  ;;  %s15986_s13 = sld [smem:[#allocation61_spill]] }
  0x61   : > { %s15987_s12 = sld [smem:[#allocation55_spill]]  ;;  %s15988_s3 = sld [smem:[#allocation59_spill]] }
  0x62   : > { %15989 = sst [smem:[#allocation73_spill]] %s13953_s28  ;;  %s14267_s7 = sadd.s32 4294967295, %s13965_s0  }
  0x63   : > { %15990 = sst [smem:[#allocation74_spill]] %s13961_s2  ;;  %s9946_s10 = sadd.s32 4294967294, %s13965_s0  }
  0x64   : > { %15991 = sst [smem:[#allocation75_spill]] %s13965_s0  ;;  %s14271_s11 = sadd.s32 1, %s13965_s0  }
  0x65   : > { %15992 = sst [smem:[#allocation76_spill]] %s14271_s11  ;;  %s916_s15 = sadd.s32 1, %s13961_s2 }
  0x66   : > { %s913_s16 = ssub.s32 %s13965_s0, %s14271_s11  ;;  %p926_p0 = scmp.ne.s32.totalorder %s13961_s2, %s13957_s1 }
  0x67   : > { %p914_p1 = scmp.eq.s32.totalorder %s913_s16, 0  ;;  %p927_p2 = scmp.eq.s32.totalorder %s14267_s7, 1 }
  0x68   : > { %p932_p3 = scmp.ne.s32.totalorder %s13957_s1, %s13953_s28  ;;  %p933_p4 = scmp.eq.s32.totalorder %s9946_s10, 1 }
  0x69   : > { %s14282_s18 = scalar_select %p914_p1, %s13961_s2, %s916_s15  }
  0x6a   : > { %p14284_p5 = por %p927_p2, %p926_p0  ;;  %p14288_p6 = por %p933_p4, %p932_p3 }
  0x6b   : > { %15993 = sst [smem:[#allocation77_spill]] %s14282_s18  ;;  %p9947_p7 = scmp.ge.s32.totalorder %s13965_s0, 1 }
  0x6c   : > { %s15994_s22 = scalar_select %p14284_p5, 1, 0 }
  0x6d   : > { %s15995_s23 = scalar_select %p14288_p6, 1, 0 }
  0x6e   : > { %p1018_p8 = scmp.lt.s32.totalorder %s13965_s0, 3  ;;  %p15908_p9 = scmp.eq.s32.totalorder %s14267_s7, 0 }
  0x6f   : > { %15996 = sst [smem:[#allocation78_spill]] %s15995_s23  ;;  %s14007_s10 = smov [#allocation5]  }
  0x70   : > { %p14295_p10 = pnand %p9947_p7, %p1018_p8  ;;  %s1064_s15 = sshll.u32 %s14007_s10, 4  ;;  %s14301_s15 = int_to_ptr.vmem [resolvable:$true] %s1064_s15 }
  0x71   : > { %s14008_s18 = smov [#allocation8]   ;;  %s14009_s11 = smov [#allocation11]  }
  0x72   : > { %s15997_s26 = scalar_select %p14295_p10, 1, 0 }
  0x73   : > { %p12862_p11 = pneg %p14295_p10  ;;  %s1100_s2 = sshll.u32 %s14008_s18, 4  ;;  %s14309_s2 = int_to_ptr.vmem [resolvable:$true] %s1100_s2 }
  0x74   : > { %s14311_s23 = sshll.u32 %s14009_s11, 4  ;;  %s13359_s28 = scalar_lea.hbm %s14089_s14, 1536  ;;  %s1125_s23 = int_to_ptr.vmem [resolvable:$true] %s14311_s23 }
  0x75   : > { %p14305_p12 = pnand %p15908_p9, %p12862_p11  ;;  %p13360_p13 = scmp.ne.s32.totalorder %s14089_s14, %s13359_s28 }
  0x76   : > { %p13366_p3 = scmp.lt.u32.totalorder %s13359_s28, %s14089_s14 }
  0x77   : > { %p14317_p0 = pneg %p14305_p12 }
  0x79   : > { %p13362_p1 = pnand %p14317_p0, %p13360_p13 }
  0x7b   : > { %p13363_p2 = pneg %p13362_p1 }
  0x7d   : > { %p13368_p4 = pnand %p13366_p3, %p13363_p2 }
  0x7f   : > { %13371 = shalt.err (!%p13368_p4)
}
  0x80   : > { %s13372_s11 = scalar_lea.vmem %s14301_s15, 1536  ;;  %p13380_p9 = scmp.lt.s32.totalorder %s14301_s15, %s14301_s15 }
  0x81   : > { %p13373_p7 = scmp.ne.s32.totalorder %s14301_s15, %s13372_s11  ;;  %p13381_p6 = scmp.lt.s32.totalorder %s13372_s11, %s13372_s11 }
  0x83   : > { %p13375_p8 = pnand %p13373_p7, %p14317_p0  ;;  %p13382_p5 = por %p13381_p6, %p13380_p9 }
  0x85   : > { %p13376_p11 = pneg %p13375_p8 }
  0x87   : > { %p13383_p10 = pnand %p13382_p5, %p13376_p11 }
  0x89   : > { %13386 = shalt.err (!%p13383_p10)
}
  0x8a   : > { %s15913_s18 = smov 64   ;;  %s15915_s28 = smov 4  }
  0x8b   : > { %12868 = dma.hbm_to_vmem [thread:$0]  (!%p14305_p12), %s14089_s14, 1536, %s14301_s15, [#allocation6], %s15913_s18, %s15913_s18, %s15915_s28  }
  0x8c   : > { %s13387_s0 = scalar_lea.hbm %s15987_s12, 16 }
  0x8d   : > { %p13388_p13 = scmp.ne.s32.totalorder %s15987_s12, %s13387_s0  ;;  %p13394_p9 = scmp.lt.u32.totalorder %s13387_s0, %s15987_s12 }
  0x8f   : > { %p13390_p6 = pnand %p13388_p13, %p14317_p0 }
  0x91   : > { %p13391_p5 = pneg %p13390_p6 }
  0x93   : > { %p13396_p10 = pnand %p13394_p9, %p13391_p5 }
  0x95   : > { %13399 = shalt.err (!%p13396_p10)
}
  0x96   : > { %s13400_s11 = scalar_lea.vmem %s14309_s2, 16  ;;  %s13407_s5 = scalar_lea.vmem %s14309_s2, 32 }
  0x97   : > { %p13401_p1 = scmp.ne.s32.totalorder %s14309_s2, %s13400_s11  ;;  %p13408_p4 = scmp.lt.s32.totalorder %s14309_s2, %s14309_s2 }
  0x98   : > { %p13409_p7 = scmp.lt.s32.totalorder %s13407_s5, %s13400_s11 }
  0x99   : > { %p13403_p2 = pnand %p13401_p1, %p14317_p0 }
  0x9a   : > { %p13410_p8 = por %p13409_p7, %p13408_p4 }
  0x9b   : > { %p13404_p3 = pneg %p13403_p2 }
  0x9d   : > { %p13411_p11 = pnand %p13410_p8, %p13404_p3 }
  0x9f   : > { %13414 = shalt.err (!%p13411_p11)
}
  0xa0   : > { %12874 = dma.hbm_to_vmem [thread:$0]  (!%p14305_p12), %s15987_s12, 16, %s14309_s2, [#allocation9]  }
  0xa1   : > { %s13415_s0 = scalar_lea.hbm %s14124_s27, 16 }
  0xa2   : > { %p13416_p13 = scmp.ne.s32.totalorder %s14124_s27, %s13415_s0  ;;  %p13422_p9 = scmp.lt.u32.totalorder %s13415_s0, %s14124_s27 }
  0xa4   : > { %p13418_p6 = pnand %p13416_p13, %p14317_p0 }
  0xa6   : > { %p13419_p5 = pneg %p13418_p6 }
  0xa8   : > { %p13424_p10 = pnand %p13422_p9, %p13419_p5 }
  0xaa   : > { %13427 = shalt.err (!%p13424_p10)
}
  0xab   : > { %s13428_s5 = scalar_lea.vmem %s1125_s23, 16  ;;  %s13435_s15 = scalar_lea.vmem %s1125_s23, 32 }
  0xac   : > { %p13429_p1 = scmp.ne.s32.totalorder %s1125_s23, %s13428_s5  ;;  %p13436_p4 = scmp.lt.s32.totalorder %s1125_s23, %s1125_s23 }
  0xad   : > { %p13437_p7 = scmp.lt.s32.totalorder %s13435_s15, %s13428_s5 }
  0xae   : > { %p13431_p2 = pnand %p13429_p1, %p14317_p0 }
  0xaf   : > { %p13438_p8 = por %p13437_p7, %p13436_p4 }
  0xb0   : > { %p13432_p3 = pneg %p13431_p2 }
  0xb2   : > { %p13439_p11 = pnand %p13438_p8, %p13432_p3 }
  0xb4   : > { %13442 = shalt.err (!%p13439_p11)
}
  0xb5   : > { %12880 = dma.hbm_to_vmem [thread:$0]  (!%p14305_p12), %s14124_s27, 16, %s1125_s23, [#allocation12]  }
  0xb6   : > { %s14012_s2 = smov [#allocation14]   ;;  %s14013_s0 = smov [#allocation17]  }
  0xb7   : > { %s1148_s11 = sshll.u32 %s14012_s2, 4  ;;  %s1172_s18 = sshll.u32 %s14013_s0, 4  ;;  %s1149_s11 = int_to_ptr.vmem [resolvable:$true] %s1148_s11  ;;  %s1173_s18 = int_to_ptr.vmem [resolvable:$true] %s1172_s18 }
  0xb8   : > { %s13443_s28 = scalar_lea.hbm %s14134_s30, 16 }
  0xb9   : > { %p13444_p13 = scmp.ne.s32.totalorder %s14134_s30, %s13443_s28  ;;  %p13450_p9 = scmp.lt.u32.totalorder %s13443_s28, %s14134_s30 }
  0xbb   : > { %p13446_p6 = pnand %p13444_p13, %p14317_p0 }
  0xbd   : > { %p13447_p5 = pneg %p13446_p6 }
  0xbf   : > { %p13452_p10 = pnand %p13450_p9, %p13447_p5 }
  0xc1   : > { %13455 = shalt.err (!%p13452_p10)
}
  0xc2   : > { %s13456_s5 = scalar_lea.vmem %s1149_s11, 16  ;;  %s13463_s23 = scalar_lea.vmem %s1149_s11, 32 }
  0xc3   : > { %p13457_p1 = scmp.ne.s32.totalorder %s1149_s11, %s13456_s5  ;;  %p13464_p4 = scmp.lt.s32.totalorder %s1149_s11, %s1149_s11 }
  0xc4   : > { %p13465_p7 = scmp.lt.s32.totalorder %s13463_s23, %s13456_s5 }
  0xc5   : > { %p13459_p2 = pnand %p13457_p1, %p14317_p0 }
  0xc6   : > { %p13466_p8 = por %p13465_p7, %p13464_p4 }
  0xc7   : > { %p13460_p3 = pneg %p13459_p2 }
  0xc9   : > { %p13467_p11 = pnand %p13466_p8, %p13460_p3 }
  0xcb   : > { %13470 = shalt.err (!%p13467_p11)
}
  0xcc   : > { %12886 = dma.hbm_to_vmem [thread:$0]  (!%p14305_p12), %s14134_s30, 16, %s1149_s11, [#allocation15]  }
  0xcd   : > { %s13471_s28 = scalar_lea.hbm %s14144_s24, 16 }
  0xce   : > { %p13472_p13 = scmp.ne.s32.totalorder %s14144_s24, %s13471_s28  ;;  %p13478_p9 = scmp.lt.u32.totalorder %s13471_s28, %s14144_s24 }
  0xd0   : > { %p13474_p6 = pnand %p13472_p13, %p14317_p0 }
  0xd2   : > { %p13475_p5 = pneg %p13474_p6 }
  0xd4   : > { %p13480_p10 = pnand %p13478_p9, %p13475_p5 }
  0xd6   : > { %13483 = shalt.err (!%p13480_p10)
}
  0xd7   : > { %s13484_s15 = scalar_lea.vmem %s1173_s18, 16  ;;  %s13491_s2 = scalar_lea.vmem %s1173_s18, 32 }
  0xd8   : > { %p13485_p1 = scmp.ne.s32.totalorder %s1173_s18, %s13484_s15  ;;  %p13492_p4 = scmp.lt.s32.totalorder %s1173_s18, %s1173_s18 }
  0xd9   : > { %p13493_p7 = scmp.lt.s32.totalorder %s13491_s2, %s13484_s15 }
  0xda   : > { %p13487_p2 = pnand %p13485_p1, %p14317_p0 }
  0xdb   : > { %p13494_p8 = por %p13493_p7, %p13492_p4 }
  0xdc   : > { %p13488_p3 = pneg %p13487_p2 }
  0xde   : > { %p13495_p11 = pnand %p13494_p8, %p13488_p3 }
  0xe0   : > { %13498 = shalt.err (!%p13495_p11)
}
  0xe1   : > { %12892 = dma.hbm_to_vmem [thread:$0]  (!%p14305_p12), %s14144_s24, 16, %s1173_s18, [#allocation18]  }
  0xe2   : > { %s14014_s11 = smov [#allocation20]   ;;  %s14015_s5 = smov [#allocation23]  }
  0xe3   : > { %s1198_s0 = sshll.u32 %s14014_s11, 4  ;;  %s1222_s23 = sshll.u32 %s14015_s5, 4  ;;  %s1199_s0 = int_to_ptr.vmem [resolvable:$true] %s1198_s0  ;;  %s1223_s23 = int_to_ptr.vmem [resolvable:$true] %s1222_s23 }
  0xe4   : > { %s13499_s28 = scalar_lea.hbm %s15988_s3, 1536 }
  0xe5   : > { %p13500_p13 = scmp.ne.s32.totalorder %s15988_s3, %s13499_s28  ;;  %p13506_p9 = scmp.lt.u32.totalorder %s13499_s28, %s15988_s3 }
  0xe7   : > { %p13502_p6 = pnand %p13500_p13, %p14317_p0 }
  0xe9   : > { %p13503_p5 = pneg %p13502_p6 }
  0xeb   : > { %p13508_p10 = pnand %p13506_p9, %p13503_p5 }
  0xed   : > { %13511 = shalt.err (!%p13508_p10)
}
  0xee   : > { %s13512_s15 = scalar_lea.vmem %s1199_s0, 1536  ;;  %p13520_p4 = scmp.lt.s32.totalorder %s1199_s0, %s1199_s0 }
  0xef   : > { %p13513_p1 = scmp.ne.s32.totalorder %s1199_s0, %s13512_s15  ;;  %p13521_p7 = scmp.lt.s32.totalorder %s13512_s15, %s13512_s15 }
  0xf1   : > { %p13515_p2 = pnand %p13513_p1, %p14317_p0  ;;  %p13522_p8 = por %p13521_p7, %p13520_p4 }
  0xf3   : > { %p13516_p3 = pneg %p13515_p2 }
  0xf5   : > { %p13523_p11 = pnand %p13522_p8, %p13516_p3 }
  0xf7   : > { %13526 = shalt.err (!%p13523_p11)
}
  0xf8   : > { %s16000_s18 = smov 4   ;;  %s16001_s2 = smov 64  }
  0xf9   : > { %12898 = dma.hbm_to_vmem [thread:$0]  (!%p14305_p12), %s15988_s3, 1536, %s1199_s0, [#allocation21], %s16001_s2, %s16001_s2, %s16000_s18  }
  0xfa   : > { %s13527_s11 = scalar_lea.hbm %s15986_s13, 1536 }
  0xfb   : > { %p13528_p13 = scmp.ne.s32.totalorder %s15986_s13, %s13527_s11  ;;  %p13534_p9 = scmp.lt.u32.totalorder %s13527_s11, %s15986_s13 }
  0xfd   : > { %p13530_p6 = pnand %p13528_p13, %p14317_p0 }
  0xff   : > { %p13531_p5 = pneg %p13530_p6 }
 0x101   : > { %p13536_p10 = pnand %p13534_p9, %p13531_p5 }
 0x103   : > { %13539 = shalt.err (!%p13536_p10)
}
 0x104   : > { %s13540_s5 = scalar_lea.vmem %s1223_s23, 1536  ;;  %p13548_p4 = scmp.lt.s32.totalorder %s1223_s23, %s1223_s23 }
 0x105   : > { %p13541_p1 = scmp.ne.s32.totalorder %s1223_s23, %s13540_s5  ;;  %p13549_p7 = scmp.lt.s32.totalorder %s13540_s5, %s13540_s5 }
 0x107   : > { %p13543_p2 = pnand %p13541_p1, %p14317_p0  ;;  %p13550_p8 = por %p13549_p7, %p13548_p4 }
 0x109   : > { %p13544_p3 = pneg %p13543_p2 }
 0x10b   : > { %p13551_p11 = pnand %p13550_p8, %p13544_p3 }
 0x10d   : > { %13554 = shalt.err (!%p13551_p11)
}
 0x10e   : > { %12904 = dma.hbm_to_vmem [thread:$0]  (!%p14305_p12), %s15986_s13, 1536, %s1223_s23, [#allocation24], %s16001_s2, %s16001_s2, %s16000_s18  }
 0x10f   : > { %s14016_s0 = smov [#allocation26]   ;;  %s13555_s15 = scalar_lea.hbm %s14179_s17, 512 }
 0x110   : > { %s1246_s28 = sshll.u32 %s14016_s0, 4  ;;  %p13556_p13 = scmp.ne.s32.totalorder %s14179_s17, %s13555_s15  ;;  %s1247_s28 = int_to_ptr.vmem [resolvable:$true] %s1246_s28 }
 0x111   : > { %p13562_p9 = scmp.lt.u32.totalorder %s13555_s15, %s14179_s17 }
 0x112   : > { %p13558_p6 = pnand %p13556_p13, %p14317_p0 }
 0x114   : > { %p13559_p5 = pneg %p13558_p6 }
 0x116   : > { %p13564_p10 = pnand %p13562_p9, %p13559_p5 }
 0x118   : > { %13567 = shalt.err (!%p13564_p10)
}
 0x119   : > { %s13568_s11 = scalar_lea.vmem %s1247_s28, 512  ;;  %p13576_p4 = scmp.lt.s32.totalorder %s1247_s28, %s1247_s28 }
 0x11a   : > { %p13569_p1 = scmp.ne.s32.totalorder %s1247_s28, %s13568_s11  ;;  %p13577_p7 = scmp.lt.s32.totalorder %s13568_s11, %s13568_s11 }
 0x11c   : > { %p13571_p2 = pnand %p13569_p1, %p14317_p0  ;;  %p13578_p8 = por %p13577_p7, %p13576_p4 }
 0x11e   : > { %p13572_p3 = pneg %p13571_p2 }
 0x120   : > { %p13579_p11 = pnand %p13578_p8, %p13572_p3 }
 0x122   : > { %13582 = shalt.err (!%p13579_p11)
}
 0x123   : > { %s14017_s23 = smov 128   ;;  %s14018_s5 = smov 8  }
 0x124   : > { %12910 = dma.hbm_to_vmem [thread:$0]  (!%p14305_p12), %s14179_s17, 512, %s1247_s28, [#allocation27], %s14017_s23, %s14017_s23, %s14018_s5  }
 0x125   : > { %s14019_s0 = smov [#allocation2]   ;;  %s14020_s3 = smov [#allocation7]  }
 0x126   : > { %s1042_s15 = sshll.u32 %s14019_s0, 4  ;;  %s1086_s12 = sshll.u32 %s14020_s3, 4  ;;  %s1043_s15 = int_to_ptr.vmem [resolvable:$true] %s1042_s15  ;;  %s14420_s12 = int_to_ptr.vmem [resolvable:$true] %s1086_s12 }
 0x127   : > { %s13583_s11 = scalar_lea.hbm %s14069_s25, 1536 }
 0x128   : > { %p13584_p13 = scmp.ne.s32.totalorder %s14069_s25, %s13583_s11  ;;  %p13590_p9 = scmp.lt.u32.totalorder %s13583_s11, %s14069_s25 }
 0x12a   : > { %p13586_p6 = pnand %p13584_p13, %p14317_p0 }
 0x12c   : > { %p13587_p5 = pneg %p13586_p6 }
 0x12e   : > { %p13592_p10 = pnand %p13590_p9, %p13587_p5 }
 0x130   : > { %13595 = shalt.err (!%p13592_p10)
}
 0x131   : > { %s13596_s13 = scalar_lea.vmem %s1043_s15, 1536  ;;  %p13604_p4 = scmp.lt.s32.totalorder %s1043_s15, %s1043_s15 }
 0x132   : > { %p13597_p1 = scmp.ne.s32.totalorder %s1043_s15, %s13596_s13  ;;  %p13605_p7 = scmp.lt.s32.totalorder %s13596_s13, %s13596_s13 }
 0x134   : > { %p13599_p2 = pnand %p13597_p1, %p14317_p0  ;;  %p13606_p8 = por %p13605_p7, %p13604_p4 }
 0x136   : > { %p13600_p3 = pneg %p13599_p2 }
 0x138   : > { %p13607_p11 = pnand %p13606_p8, %p13600_p3 }
 0x13a   : > { %13610 = shalt.err (!%p13607_p11)
}
 0x13b   : > { %12865 = dma.hbm_to_vmem [thread:$0]  (!%p14305_p12), %s14069_s25, 1536, %s1043_s15, [#allocation3], %s16001_s2, %s16001_s2, %s16000_s18  }
 0x13c   : > { %s13611_s3 = scalar_lea.hbm %s15984_s6, 3072 }
 0x13d   : > { %p13612_p13 = scmp.ne.s32.totalorder %s15984_s6, %s13611_s3  ;;  %p13618_p9 = scmp.lt.u32.totalorder %s13611_s3, %s15984_s6 }
 0x13f   : > { %p13614_p6 = pnand %p13612_p13, %p14317_p0 }
 0x141   : > { %p13615_p5 = pneg %p13614_p6 }
 0x143   : > { %p13620_p10 = pnand %p13618_p9, %p13615_p5 }
 0x145   : > { %13623 = shalt.err (!%p13620_p10)
}
 0x146   : > { %s13624_s13 = scalar_lea.vmem %s14420_s12, 3072  ;;  %p13632_p4 = scmp.lt.s32.totalorder %s14420_s12, %s14420_s12 }
 0x147   : > { %p13625_p1 = scmp.ne.s32.totalorder %s14420_s12, %s13624_s13  ;;  %p13633_p7 = scmp.lt.s32.totalorder %s13624_s13, %s13624_s13 }
 0x149   : > { %p13627_p2 = pnand %p13625_p1, %p14317_p0  ;;  %p13634_p8 = por %p13633_p7, %p13632_p4 }
 0x14b   : > { %p13628_p3 = pneg %p13627_p2 }
 0x14d   : > { %p13635_p11 = pnand %p13634_p8, %p13628_p3 }
 0x14f   : > { %13638 = shalt.err (!%p13635_p11)
}
 0x150   : > { %12871 = dma.hbm_to_vmem [thread:$0]  (!%p14305_p12), %s15984_s6, 3072, %s14420_s12, [#allocation6], %s16001_s2, %s16001_s2, %s16000_s18  }
 0x151   : > { %s14021_s28 = smov [#allocation10]   ;;  %s14022_s5 = smov [#allocation13]  }
 0x152   : > { %s1110_s23 = sshll.u32 %s14021_s28, 4  ;;  %s1134_s0 = sshll.u32 %s14022_s5, 4  ;;  %s1111_s23 = int_to_ptr.vmem [resolvable:$true] %s1110_s23  ;;  %s14453_s0 = int_to_ptr.vmem [resolvable:$true] %s1134_s0 }
 0x153   : > { %s13639_s15 = scalar_lea.hbm %s14119_s20, 1536 }
 0x154   : > { %p13640_p13 = scmp.ne.s32.totalorder %s14119_s20, %s13639_s15  ;;  %p13646_p9 = scmp.lt.u32.totalorder %s13639_s15, %s14119_s20 }
 0x156   : > { %p13642_p6 = pnand %p13640_p13, %p14317_p0 }
 0x158   : > { %p13643_p5 = pneg %p13642_p6 }
 0x15a   : > { %p13648_p10 = pnand %p13646_p9, %p13643_p5 }
 0x15c   : > { %13651 = shalt.err (!%p13648_p10)
}
 0x15d   : > { %s13652_s11 = scalar_lea.vmem %s1111_s23, 1536  ;;  %p13660_p4 = scmp.lt.s32.totalorder %s1111_s23, %s1111_s23 }
 0x15e   : > { %p13653_p1 = scmp.ne.s32.totalorder %s1111_s23, %s13652_s11  ;;  %p13661_p7 = scmp.lt.s32.totalorder %s13652_s11, %s13652_s11 }
 0x160   : > { %p13655_p2 = pnand %p13653_p1, %p14317_p0  ;;  %p13662_p8 = por %p13661_p7, %p13660_p4 }
 0x162   : > { %p13656_p3 = pneg %p13655_p2 }
 0x164   : > { %p13663_p11 = pnand %p13662_p8, %p13656_p3 }
 0x166   : > { %13666 = shalt.err (!%p13663_p11)
}
 0x167   : > { %12877 = dma.hbm_to_vmem [thread:$0]  (!%p14305_p12), %s14119_s20, 1536, %s1111_s23, [#allocation9], %s16001_s2, %s16001_s2, %s16000_s18  }
 0x168   : > { %s13667_s12 = scalar_lea.hbm %s15985_s4, 3072 }
 0x169   : > { %p13668_p13 = scmp.ne.s32.totalorder %s15985_s4, %s13667_s12  ;;  %p13674_p9 = scmp.lt.u32.totalorder %s13667_s12, %s15985_s4 }
 0x16b   : > { %p13670_p6 = pnand %p13668_p13, %p14317_p0 }
 0x16d   : > { %p13671_p5 = pneg %p13670_p6 }
 0x16f   : > { %p13676_p10 = pnand %p13674_p9, %p13671_p5 }
 0x171   : > { %13679 = shalt.err (!%p13676_p10)
}
 0x172   : > { %s13680_s3 = scalar_lea.vmem %s14453_s0, 3072  ;;  %p13688_p4 = scmp.lt.s32.totalorder %s14453_s0, %s14453_s0 }
 0x173   : > { %p13681_p1 = scmp.ne.s32.totalorder %s14453_s0, %s13680_s3  ;;  %p13689_p7 = scmp.lt.s32.totalorder %s13680_s3, %s13680_s3 }
 0x175   : > { %p13683_p2 = pnand %p13681_p1, %p14317_p0  ;;  %p13690_p8 = por %p13689_p7, %p13688_p4 }
 0x177   : > { %p13684_p3 = pneg %p13683_p2 }
 0x179   : > { %p13691_p11 = pnand %p13690_p8, %p13684_p3 }
 0x17b   : > { %13694 = shalt.err (!%p13691_p11)
}
 0x17c   : > { %12883 = dma.hbm_to_vmem [thread:$0]  (!%p14305_p12), %s15985_s4, 3072, %s14453_s0, [#allocation12], %s16001_s2, %s16001_s2, %s16000_s18  }
 0x17d   : > { %s14023_s13 = smov [#allocation16]   ;;  %s14024_s23 = smov [#allocation19]  }
 0x17e   : > { %s1158_s28 = sshll.u32 %s14023_s13, 4  ;;  %s1182_s5 = sshll.u32 %s14024_s23, 4  ;;  %s1159_s28 = int_to_ptr.vmem [resolvable:$true] %s1158_s28  ;;  %s14486_s5 = int_to_ptr.vmem [resolvable:$true] %s1182_s5 }
 0x17f   : > { %s13695_s15 = scalar_lea.hbm %s14139_s19, 3072 }
 0x180   : > { %p13696_p13 = scmp.ne.s32.totalorder %s14139_s19, %s13695_s15  ;;  %p13702_p9 = scmp.lt.u32.totalorder %s13695_s15, %s14139_s19 }
 0x182   : > { %p13698_p6 = pnand %p13696_p13, %p14317_p0 }
 0x184   : > { %p13699_p5 = pneg %p13698_p6 }
 0x186   : > { %p13704_p10 = pnand %p13702_p9, %p13699_p5 }
 0x188   : > { %13707 = shalt.err (!%p13704_p10)
}
 0x189   : > { %s13708_s11 = scalar_lea.vmem %s1159_s28, 3072  ;;  %p13716_p4 = scmp.lt.s32.totalorder %s1159_s28, %s1159_s28 }
 0x18a   : > { %p13709_p1 = scmp.ne.s32.totalorder %s1159_s28, %s13708_s11  ;;  %p13717_p7 = scmp.lt.s32.totalorder %s13708_s11, %s13708_s11 }
 0x18c   : > { %p13711_p2 = pnand %p13709_p1, %p14317_p0  ;;  %p13718_p8 = por %p13717_p7, %p13716_p4 }
 0x18e   : > { %p13712_p3 = pneg %p13711_p2 }
 0x190   : > { %p13719_p11 = pnand %p13718_p8, %p13712_p3 }
 0x192   : > { %13722 = shalt.err (!%p13719_p11)
}
 0x193   : > { %12889 = dma.hbm_to_vmem [thread:$0]  (!%p14305_p12), %s14139_s19, 3072, %s1159_s28, [#allocation15], %s16001_s2, %s16001_s2, %s16000_s18  }
 0x194   : > { %s13723_s0 = scalar_lea.hbm %s15983_s8, 1536 }
 0x195   : > { %p13724_p13 = scmp.ne.s32.totalorder %s15983_s8, %s13723_s0  ;;  %p13730_p9 = scmp.lt.u32.totalorder %s13723_s0, %s15983_s8 }
 0x197   : > { %p13726_p6 = pnand %p13724_p13, %p14317_p0 }
 0x199   : > { %p13727_p5 = pneg %p13726_p6 }
 0x19b   : > { %p13732_p10 = pnand %p13730_p9, %p13727_p5 }
 0x19d   : > { %13735 = shalt.err (!%p13732_p10)
}
 0x19e   : > { %s13736_s12 = scalar_lea.vmem %s14486_s5, 1536  ;;  %p13744_p4 = scmp.lt.s32.totalorder %s14486_s5, %s14486_s5 }
 0x19f   : > { %p13737_p1 = scmp.ne.s32.totalorder %s14486_s5, %s13736_s12  ;;  %p13745_p7 = scmp.lt.s32.totalorder %s13736_s12, %s13736_s12 }
 0x1a1   : > { %p13739_p2 = pnand %p13737_p1, %p14317_p0  ;;  %p13746_p8 = por %p13745_p7, %p13744_p4 }
 0x1a3   : > { %p13740_p3 = pneg %p13739_p2 }
 0x1a5   : > { %p13747_p11 = pnand %p13746_p8, %p13740_p3 }
 0x1a7   : > { %13750 = shalt.err (!%p13747_p11)
}
 0x1a8   : > { %s16002_s3 = sld [smem:[#allocation60_spill]]  ;;  %s14025_s13 = smov [#allocation22]  }
 0x1a9   : > { %12895 = dma.hbm_to_vmem [thread:$0]  (!%p14305_p12), %s15983_s8, 1536, %s14486_s5, [#allocation18], %s16001_s2, %s16001_s2, %s16000_s18  }
 0x1aa   : > { %s1212_s28 = sshll.u32 %s14025_s13, 4  ;;  %s14026_s23 = smov [#allocation25]   ;;  %s1213_s28 = int_to_ptr.vmem [resolvable:$true] %s1212_s28 }
 0x1ab   : > { %s1236_s15 = sshll.u32 %s14026_s23, 4  ;;  %s14519_s15 = int_to_ptr.vmem [resolvable:$true] %s1236_s15 }
 0x1ae   : > { %s13751_s11 = scalar_lea.hbm %s16002_s3, 16 }
 0x1af   : > { %p13752_p13 = scmp.ne.s32.totalorder %s16002_s3, %s13751_s11  ;;  %p13758_p9 = scmp.lt.u32.totalorder %s13751_s11, %s16002_s3 }
 0x1b1   : > { %p13754_p6 = pnand %p13752_p13, %p14317_p0 }
 0x1b3   : > { %p13755_p5 = pneg %p13754_p6 }
 0x1b5   : > { %p13760_p10 = pnand %p13758_p9, %p13755_p5 }
 0x1b7   : > { %13763 = shalt.err (!%p13760_p10)
}
 0x1b8   : > { %s13764_s0 = scalar_lea.vmem %s1213_s28, 16  ;;  %s13771_s18 = scalar_lea.vmem %s1213_s28, 32 }
 0x1b9   : > { %p13765_p1 = scmp.ne.s32.totalorder %s1213_s28, %s13764_s0  ;;  %p13772_p4 = scmp.lt.s32.totalorder %s1213_s28, %s1213_s28 }
 0x1ba   : > { %p13773_p7 = scmp.lt.s32.totalorder %s13771_s18, %s13764_s0 }
 0x1bb   : > { %p13767_p2 = pnand %p13765_p1, %p14317_p0 }
 0x1bc   : > { %p13774_p8 = por %p13773_p7, %p13772_p4 }
 0x1bd   : > { %p13768_p3 = pneg %p13767_p2 }
 0x1bf   : > { %p13775_p11 = pnand %p13774_p8, %p13768_p3 }
 0x1c1   : > { %13778 = shalt.err (!%p13775_p11)
}
 0x1c2   : > { %s16003_s2 = sld [smem:[#allocation62_spill]] }
 0x1c3   : > { %12901 = dma.hbm_to_vmem [thread:$0]  (!%p14305_p12), %s16002_s3, 16, %s1213_s28, [#allocation21]  }
 0x1c8   : > { %s16004_s5 = smov %s16003_s2  ;;  %s13779_s12 = scalar_lea.hbm %s16003_s2, 16 }
 0x1c9   : > { %p13780_p13 = scmp.ne.s32.totalorder %s16004_s5, %s13779_s12  ;;  %p13786_p9 = scmp.lt.u32.totalorder %s13779_s12, %s16004_s5 }
 0x1cb   : > { %p13782_p6 = pnand %p13780_p13, %p14317_p0 }
 0x1cd   : > { %p13783_p5 = pneg %p13782_p6 }
 0x1cf   : > { %p13788_p10 = pnand %p13786_p9, %p13783_p5 }
 0x1d1   : > { %13791 = shalt.err (!%p13788_p10)
}
 0x1d2   : > { %s13792_s13 = scalar_lea.vmem %s14519_s15, 16  ;;  %s13799_s23 = scalar_lea.vmem %s14519_s15, 32 }
 0x1d3   : > { %p13793_p1 = scmp.ne.s32.totalorder %s14519_s15, %s13792_s13  ;;  %p13800_p4 = scmp.lt.s32.totalorder %s14519_s15, %s14519_s15 }
 0x1d4   : > { %p13801_p7 = scmp.lt.s32.totalorder %s13799_s23, %s13792_s13 }
 0x1d5   : > { %p13795_p2 = pnand %p13793_p1, %p14317_p0 }
 0x1d6   : > { %p13802_p8 = por %p13801_p7, %p13800_p4 }
 0x1d7   : > { %p13796_p3 = pneg %p13795_p2 }
 0x1d9   : > { %p13803_p11 = pnand %p13802_p8, %p13796_p3 }
 0x1db   : > { %13806 = shalt.err (!%p13803_p11)
}
 0x1dc   : > { %s16005_s28 = sld [smem:[#allocation67_spill]]  ;;  %s14027_s0 = smov [#allocation28]  }
 0x1dd   : > { %12907 = dma.hbm_to_vmem [thread:$0]  (!%p14305_p12), %s16004_s5, 16, %s14519_s15, [#allocation24]  }
 0x1de   : > { %s1272_s18 = sshll.u32 %s14027_s0, 4  ;;  %s1273_s18 = int_to_ptr.vmem [resolvable:$true] %s1272_s18 }
 0x1e2   : > { %s16006_s11 = smov %s16005_s28  ;;  %s13807_s2 = scalar_lea.hbm %s16005_s28, 16 }
 0x1e3   : > { %p13808_p13 = scmp.ne.s32.totalorder %s16006_s11, %s13807_s2  ;;  %p13814_p9 = scmp.lt.u32.totalorder %s13807_s2, %s16006_s11 }
 0x1e5   : > { %p13810_p6 = pnand %p13808_p13, %p14317_p0 }
 0x1e7   : > { %p13811_p5 = pneg %p13810_p6 }
 0x1e9   : > { %p13816_p10 = pnand %p13814_p9, %p13811_p5 }
 0x1eb   : > { %13819 = shalt.err (!%p13816_p10)
}
 0x1ec   : > { %s13820_s12 = scalar_lea.vmem %s1273_s18, 16  ;;  %s13827_s13 = scalar_lea.vmem %s1273_s18, 32 }
 0x1ed   : > { %p13821_p1 = scmp.ne.s32.totalorder %s1273_s18, %s13820_s12  ;;  %p13828_p4 = scmp.lt.s32.totalorder %s1273_s18, %s1273_s18 }
 0x1ee   : > { %p13829_p7 = scmp.lt.s32.totalorder %s13827_s13, %s13820_s12 }
 0x1ef   : > { %p13823_p2 = pnand %p13821_p1, %p14317_p0 }
 0x1f0   : > { %p13830_p8 = por %p13829_p7, %p13828_p4 }
 0x1f1   : > { %p13824_p3 = pneg %p13823_p2 }
 0x1f3   : > { %p13831_p11 = pnand %p13830_p8, %p13824_p3 }
 0x1f5   : > { %13834 = shalt.err (!%p13831_p11)
}
 0x1f6   : > { %12913 = dma.hbm_to_vmem [thread:$0]  (!%p14305_p12), %s16006_s11, 16, %s1273_s18, [#allocation27]  }
 0x1f7   : > { %p16007_p13 = scmp.ne.s32.totalorder %s15997_s26, 0 }
 0x1f8   : > { %p16008_p6 = scmp.eq.s32.totalorder (!%p16007_p13), %s14267_s7, 0 }
 0x1f9   : > { %1293 = sbr.rel (%p16007_p13) target bundleno = 9290 (0x244a), region = 152 }
 0x200   : > { %13908 = dma.done.wait (%p16008_p6), [#allocation3], 1536   ;;  %p16009_p5 = pmov %p16008_p6 }
 0x202   : > { %13910 = vsyncadd (%p16009_p5), [#allocation3], 4294965760  ;;  %p16010_p0 = pmov %p16009_p5 }
 0x204   : > { %13912 = dma.done.wait (%p16010_p0), [#allocation6], 4608   ;;  %p16011_p9 = pmov %p16010_p0 }
 0x205   : > { %p16012_p10 = pmov %p16010_p0 }
 0x206   : > { %13914 = vsyncadd (%p16011_p9), [#allocation6], 4294962688 }
 0x207   : > { %13916 = dma.done.wait (%p16012_p10), [#allocation9], 1552   ;;  %p16013_p12 = pmov %p16010_p0 }
 0x208   : > { %p16014_p1 = pmov %p16010_p0 }
 0x209   : > { %13918 = vsyncadd (%p16013_p12), [#allocation9], 4294965744 }
 0x20a   : > { %13920 = dma.done.wait (%p16014_p1), [#allocation12], 3088   ;;  %p16015_p2 = pmov %p16010_p0 }
 0x20b   : > { %p16016_p3 = pmov %p16010_p0 }
 0x20c   : > { %13922 = vsyncadd (%p16015_p2), [#allocation12], 4294964208 }
 0x20d   : > { %13924 = dma.done.wait (%p16016_p3), [#allocation15], 3088   ;;  %p16017_p4 = pmov %p16010_p0 }
 0x20e   : > { %p16018_p7 = pmov %p16010_p0 }
 0x20f   : > { %13926 = vsyncadd (%p16017_p4), [#allocation15], 4294964208 }
 0x210   : > { %13928 = dma.done.wait (%p16018_p7), [#allocation18], 1552   ;;  %p16019_p8 = pmov %p16010_p0 }
 0x211   : > { %p16020_p11 = pmov %p16010_p0 }
 0x212   : > { %13930 = vsyncadd (%p16019_p8), [#allocation18], 4294965744 }
 0x213   : > { %13932 = dma.done.wait (%p16020_p11), [#allocation21], 1552   ;;  %p16021_p13 = pmov %p16010_p0 }
 0x214   : > { %p16022_p6 = pmov %p16010_p0 }
 0x215   : > { %13934 = vsyncadd (%p16021_p13), [#allocation21], 4294965744 }
 0x216   : > { %13936 = dma.done.wait (%p16022_p6), [#allocation24], 1552   ;;  %p16023_p5 = pmov %p16010_p0 }
 0x218   : > { %13938 = vsyncadd (%p16023_p5), [#allocation24], 4294965744 }
 0x219   : > { %13940 = dma.done.wait (%p16010_p0), [#allocation27], 528   ;;  %p16024_p9 = pmov %p16010_p0 }
 0x21a   : > { %s16025_s26 = sld [smem:[#allocation44_spill]]  ;;  %p1483_p10 = scmp.lt.s32.totalorder %s14267_s7, 1  ;;  %vm1568_vm0 = vcmask 785408   ;;  %v1735_v23 = vlaneseq  ;;  %v14028_v28 = vmov 0.0   ;;  %vm15920_vm2 = vcmask 261120  }
 0x21b   : > { %13942 = vsyncadd (%p16024_p9), [#allocation27], 4294966768  ;;  %s16026_s16 = sld [smem:[#allocation43_spill]]  ;;  %s16027_s28 = sld [smem:[#allocation46_spill]] }
 0x21c   : > { %s14599_s10 = scalar_select %p1483_p10, %s14267_s7, 1  ;;  %v14625_v25 = vshrl.u32 %v1735_v23, 7  ;;  %v14628_v26 = vand.u32 127, %v1735_v23 }
 0x21d   : > { %s16029_s0 = sld [smem:[#allocation45_spill]]  ;;  %s16062_s2 = sld [smem:[#allocation47_spill]] }
 0x21e   : > { %s10705_s15 = sshll.u32 %s14599_s10, 5  ;;  %v10033_v27 = vadd.s32 4294967295, %v14625_v25  ;;  %v14642_v34 = vadd.s32 8, %v14625_v25  ;;  %v14645_v36 = vadd.s32 16, %v14625_v25  ;;  %v14649_v45 = vadd.s32 24, %v14625_v25  ;;  %s16067_s12 = sld [smem:[#allocation68_spill]] }
 0x21f   : > { %v1758_v51 = vadd.s32 1, %v14625_v25  ;;  %s10706_s13 = sshll.u32 %s14599_s10, 4  ;;  %p16122_p1 = scmp.ne.s32.totalorder %s15994_s22, 0 }
 0x220   : > { %v13055_v0 = vld [vmem:[%s16025_s26] sm:$0xff]   ;;  %v13056_v1 = vld [vmem:[%s16025_s26 + $0x8] sm:$0xff]   ;;  %v13058_v3 = vld [vmem:[%s16025_s26 + $0x10] sm:$0xff]   ;;  %vm1746_vm1 = vcmp.eq.s32.totalorder %v14628_v26, %v10033_v27  ;;  %v10034_v44 = vadd.s32 4294967295, %v14642_v34  ;;  %v10035_v48 = vadd.s32 4294967295, %v14645_v36  ;;  %v10036_v50 = vadd.s32 4294967295, %v14649_v45 }
 0x221   : > { %11284 = vmatprep.subr.bf16.mxu0 %v13055_v0  ;;  %v13057_v2 = vld [vmem:[%s16025_s26 + $0x60] sm:$0xff]   ;;  %v13059_v4 = vld [vmem:[%s16025_s26 + $0x68] sm:$0xff]   ;;  %v13061_v5 = vld [vmem:[%s16025_s26 + $0x70] sm:$0xff]   ;;  %s1487_s23 = scalar_lea.vmem %s16026_s16, %s10705_s15  ;;  %s16028_s18 = smov %s16027_s28  ;;  %v14634_v29 = vsel %vm1746_vm1, 1.0, %v14028_v28  ;;  %v1759_v54 = vadd.s32 1, %v14642_v34  ;;  %vm1762_vm6 = vcmp.eq.s32.totalorder %v14628_v26, %v1758_v51  ;;  %v1760_v55 = vadd.s32 1, %v14645_v36 }
 0x222   : > { %11285 = vmatpush3.bf16.msra.mxu0 %v13055_v0  ;;  %11300 = vmatprep.subr.bf16.mxu1 %v13057_v2  ;;  %v13060_v6 = vld [vmem:[%s16025_s26 + $0x18] sm:$0xff]   ;;  %v1514_v8 = vld [vmem:[%s1487_s23] sm:$0xff]  ;;  %v1515_v9 = vld [vmem:[%s1487_s23 + $0x8] sm:$0xff]  ;;  %vm1747_vm3 = vcmp.eq.s32.totalorder %v14628_v26, %v10034_v44  ;;  %vm1748_vm4 = vcmp.eq.s32.totalorder %v14628_v26, %v10035_v48  ;;  %vm1749_vm5 = vcmp.eq.s32.totalorder %v14628_v26, %v10036_v50  ;;  %v14674_v57 = vsel %vm1762_vm6, 1.0, %v14028_v28  ;;  %s16068_s15 = sld [smem:[#allocation49_spill]]  ;;  %s14034_s8 = smov [#allocation29]  }
 0x223   : > { %11286 = vmatprep.subr.bf16.mxu0 %v13056_v1  ;;  %11301 = vmatpush3.bf16.msra.mxu1 %v13057_v2  ;;  %v13063_v7 = vld [vmem:[%s16025_s26 + $0x78] sm:$0xff]   ;;  %v13062_v10 = vld [vmem:[%s16025_s26 + $0x20] sm:$0xff]   ;;  %v1518_v11 = vpack.c.bf16 %v1515_v9, %v1514_v8  ;;  %v13064_v13 = vld [vmem:[%s16025_s26 + $0x28] sm:$0xff]   ;;  %v14657_v52 = vsel %vm1747_vm3, 1.0, %v14028_v28  ;;  %v14660_v53 = vsel %vm1748_vm4, 1.0, %v14028_v28  ;;  %v14671_v56 = vsel %vm1749_vm5, 1.0, %v14028_v28 }
 0x224   : > { %11302 = vmatprep.subr.bf16.mxu1 %v13059_v4  ;;  %v13065_v12 = vld [vmem:[%s16025_s26 + $0x80] sm:$0xff]   ;;  %v1516_v14 = vld [vmem:[%s1487_s23 + $0x10] sm:$0xff]  ;;  %v1517_v15 = vld [vmem:[%s1487_s23 + $0x18] sm:$0xff]  ;;  %vm1763_vm7 = vcmp.eq.s32.totalorder %v14628_v26, %v1759_v54  ;;  %v1761_v58 = vadd.s32 1, %v14649_v45  ;;  %vm1764_vm8 = vcmp.eq.s32.totalorder %v14628_v26, %v1760_v55  ;;  %s1492_s16 = scalar_lea.vmem %s16067_s12, %s10706_s13  ;;  %s16069_s23 = sld [smem:[#allocation48_spill]] }
 0x225   : > { %11296 = vmatprep.mubr.msk.bf16.mxu0 %vm1568_vm0, %v1518_v11  ;;  %11312 = vmatprep.mubr.msk.bf16.mxu1 %vm1568_vm0, %v1518_v11  ;;  %v13066_v16 = vld [vmem:[%s16025_s26 + $0x88] sm:$0xff]   ;;  %v13067_v17 = vld [vmem:[%s16025_s26 + $0x30] sm:$0xff]   ;;  %v1519_v18 = vpack.c.bf16 %v1517_v15, %v1516_v14  ;;  %v13068_v19 = vld [vmem:[%s16025_s26 + $0x38] sm:$0xff]   ;;  %v14685_v60 = vsel %vm1763_vm7, 1.0, %v14028_v28  ;;  %v14688_v61 = vsel %vm1764_vm8, 1.0, %v14028_v28  ;;  %s16083_s13 = sld [smem:[#allocation52_spill]] }
 0x226   : > { %11287 = vmatpush3.bf16.msra.mxu0 %v13056_v1  ;;  %v13069_v20 = vld [vmem:[%s16025_s26 + $0x40] sm:$0xff]   ;;  %v13070_v21 = vld [vmem:[%s16025_s26 + $0x48] sm:$0xff]   ;;  %v13071_v22 = vld [vmem:[%s16025_s26 + $0x50] sm:$0xff]   ;;  %vm1765_vm9 = vcmp.eq.s32.totalorder %v14628_v26, %v1761_v58 }
 0x227   : > { %11288 = vmatprep.subr.bf16.mxu0 %v13058_v3  ;;  %11303 = vmatpush3.bf16.msra.mxu1 %v13059_v4  ;;  %v13072_v24 = vld [vmem:[%s16025_s26 + $0x58] sm:$0xff]   ;;  %v13074_v30 = vld [vmem:[%s16027_s28 + $0x80] sm:$0xff]   ;;  %v13076_v31 = vld [vmem:[%s16028_s18 + $0x88] sm:$0xff]   ;;  %v14697_v63 = vsel %vm1765_vm9, 1.0, %v14028_v28  ;;  %s16073_s28 = sld [smem:[#allocation50_spill]] }
 0x228   : > { %11304 = vmatprep.subr.bf16.mxu1 %v13061_v5  ;;  %v13078_v32 = vld [vmem:[%s16028_s18 + $0x90] sm:$0xff]   ;;  %v13073_v59 = vld [vmem:[%s16028_s18] sm:$0xff]   ;;  %v13075_v62 = vld [vmem:[%s16028_s18 + $0x8] sm:$0xff]  }
 0x229   : > { %v13077_v0 = vld [vmem:[%s16028_s18 + $0x10] sm:$0xff]   ;;  %v13082_v8 = vld [vmem:[%s16028_s18 + $0xa0] sm:$0xff]   ;;  %v13083_v9 = vld [vmem:[%s16028_s18 + $0x28] sm:$0xff]  }
 0x22a   : > { %11289 = vmatpush3.bf16.msra.mxu0 %v13058_v3  ;;  %v13088_v14 = vld [vmem:[%s16028_s18 + $0xb8] sm:$0xff]   ;;  %v10061_v27 = vld [vmem:[%s16029_s0] ss:$0 sm:$0xff]  ;;  %s16079_s0 = sld [smem:[#allocation69_spill]] }
 0x22b   : > { %11290 = vmatprep.subr.bf16.mxu0 %v13060_v6  ;;  %11305 = vmatpush3.bf16.msra.mxu1 %v13061_v5  ;;  %v13079_v5 = vld [vmem:[%s16028_s18 + $0x18] sm:$0xff]  }
 0x22c   : > { %11306 = vmatprep.subr.bf16.mxu1 %v13063_v7 }
 0x22e   : > { %11291 = vmatpush3.bf16.msra.mxu0 %v13060_v6  ;;  %v13080_v6 = vld [vmem:[%s16028_s18 + $0x98] sm:$0xff]  }
 0x22f   : > { %11292 = vmatprep.subr.bf16.mxu0 %v13062_v10  ;;  %11307 = vmatpush3.bf16.msra.mxu1 %v13063_v7  ;;  %v13081_v7 = vld [vmem:[%s16028_s18 + $0x20] sm:$0xff]  }
 0x230   : > { %11308 = vmatprep.subr.bf16.mxu1 %v13065_v12 }
 0x232   : > { %11293 = vmatpush3.bf16.msra.mxu0 %v13062_v10  ;;  %v13084_v10 = vld [vmem:[%s16028_s18 + $0xa8] sm:$0xff]  }
 0x233   : > { %11294 = vmatprep.subr.bf16.mxu0 %v13064_v13  ;;  %11309 = vmatpush3.bf16.msra.mxu1 %v13065_v12  ;;  %v13086_v12 = vld [vmem:[%s16028_s18 + $0xb0] sm:$0xff]  }
 0x234   : > { %11310 = vmatprep.subr.bf16.mxu1 %v13066_v16 }
 0x236   : > { %11295 = vmatpush3.bf16.msra.mxu0 %v13064_v13  ;;  %v13087_v13 = vld [vmem:[%s16028_s18 + $0x38] sm:$0xff]  }
 0x237   : > { %11311 = vmatpush3.bf16.msra.mxu1 %v13066_v16 }
 0x238   : > { %11330 = vmatprep.subr.bf16.mxu1 %v13067_v17 }
 0x239   : > { %11297 = vmatmul.mubr.msk.bf16.vlgmr.msra.gmra.mrb[0].mxu0 %vm1568_vm0, %v1519_v18 }
 0x23a   : > { %11313 = vmatmul.mubr.msk.bf16.vlgmr.msra.gmra.mrb[0].mxu1 %vm1568_vm0, %v1519_v18  ;;  %11324 = vmatprep.mubr.msk.f32.mxu0 %vm15920_vm2, %v14634_v29 }
 0x23b   : > { %11331 = vmatpush3.bf16.msra.mxu1 %v13067_v17  ;;  %11342 = vmatprep.mubr.msk.bf16.mxu1 %vm1568_vm0, %v1518_v11  ;;  %v13085_v11 = vld [vmem:[%s16028_s18 + $0x30] sm:$0xff]  }
 0x23c   : > { %11332 = vmatprep.subr.bf16.mxu1 %v13068_v19 }
 0x23f   : > { %11333 = vmatpush3.bf16.msra.mxu1 %v13068_v19 }
 0x240   : > { %11334 = vmatprep.subr.bf16.mxu1 %v13069_v20 }
 0x243   : > { %11335 = vmatpush3.bf16.msra.mxu1 %v13069_v20 }
 0x244   : > { %11336 = vmatprep.subr.bf16.mxu1 %v13070_v21 }
 0x247   : > { %11337 = vmatpush3.bf16.msra.mxu1 %v13070_v21 }
 0x248   : > { %11338 = vmatprep.subr.bf16.mxu1 %v13071_v22 }
 0x24b   : > { %11339 = vmatpush3.bf16.msra.mxu1 %v13071_v22 }
 0x24c   : > { %11340 = vmatprep.subr.bf16.mxu1 %v13072_v24 }
 0x24f   : > { %11341 = vmatpush3.bf16.msra.mxu1 %v13072_v24 }
 0x250   : > { %11380 = vmatprep.subr.bf16.mxu1 %v13074_v30 }
 0x252   : > { %11343 = vmatmul.mubr.msk.bf16.vlgmr.msra.gmra.mrb[4].mxu1 %vm1568_vm0, %v1519_v18 }
 0x253   : > { %11381 = vmatpush3.bf16.msra.mxu1 %v13074_v30 }
 0x254   : > { %11382 = vmatprep.subr.bf16.mxu1 %v13076_v31 }
 0x257   : > { %11383 = vmatpush3.bf16.msra.mxu1 %v13076_v31 }
 0x258   : > { %11384 = vmatprep.subr.bf16.mxu1 %v13078_v32 }
 0x25b   : > { %11385 = vmatpush3.bf16.msra.mxu1 %v13078_v32 }
 0x25c   : > { %11386 = vmatprep.subr.bf16.mxu1 %v13080_v6 }
 0x25f   : > { %11387 = vmatpush3.bf16.msra.mxu1 %v13080_v6  ;;  %v13090_v6 = vld [vmem:[%s16028_s18 + $0x48] sm:$0xff]  }
 0x260   : > { %11388 = vmatprep.subr.bf16.mxu1 %v13082_v8 }
 0x263   : > { %11389 = vmatpush3.bf16.msra.mxu1 %v13082_v8  ;;  %v13092_v8 = vld [vmem:[%s16028_s18 + $0x58] sm:$0xff]  }
 0x264   : > { %11390 = vmatprep.subr.bf16.mxu1 %v13084_v10 }
 0x267   : > { %11391 = vmatpush3.bf16.msra.mxu1 %v13084_v10  ;;  %v13094_v10 = vld [vmem:[%s16028_s18 + $0x68] sm:$0xff]  }
 0x268   : > { %11392 = vmatprep.subr.bf16.mxu1 %v13086_v12 }
 0x26b   : > { %11393 = vmatpush3.bf16.msra.mxu1 %v13086_v12  ;;  %v2605_v12 = vadd.s32 32, %v14625_v25 }
 0x26c   : > { %11394 = vmatprep.subr.bf16.mxu1 %v13088_v14 }
 0x26f   : > { %11395 = vmatpush3.bf16.msra.mxu1 %v13088_v14 }
 0x30c   : > { %v11298_v33 = vpop.f32.mrb[0].mxu0 }
 0x30d   : > { %v1609_v35 = vpop.f32.mrb[1].mxu0  ;;  %v11314_v38 = vpop.f32.mrb[0].mxu1 }
 0x30e   : > { %v11299_v37 = vpop.f32.mrb[2].mxu0  ;;  %v1720_v41 = vpop.f32.mrb[1].mxu1 }
 0x30f   : > { %v12476_v39 = vpack.c.bf16 %v11299_v37, %v11298_v33  ;;  %v1612_v40 = vpop.f32.mrb[3].mxu0  ;;  %v11315_v43 = vpop.f32.mrb[2].mxu1 }
 0x310   : > { %v12472_v42 = vpack.c.bf16 %v1612_v40, %v1609_v35  ;;  %v12484_v46 = vpack.c.bf16 %v11315_v43, %v11314_v38  ;;  %v1723_v47 = vpop.f32.mrb[3].mxu1 }
 0x311   : > { %v12480_v49 = vpack.c.bf16 %v1723_v47, %v1720_v41 }
 0x312   : > { %12473 = vmatprep.subr.bf16.mxu0 %v12472_v42 }
 0x313   : > { %12475 = vmatpush3.bf16.msra.mxu0 %v12472_v42 }
 0x314   : > { %12477 = vmatprep.subr.bf16.mxu0 %v12476_v39 }
 0x317   : > { %12479 = vmatpush3.bf16.msra.mxu0 %v12476_v39 }
 0x318   : > { %12481 = vmatprep.subr.bf16.mxu0 %v12480_v49 }
 0x31a   : > { %11325 = vmatmul.mubr.msk.f32.vlgmr.msra.gmra.mrb[4].mxu0 %vm15920_vm2, %v14657_v52 }
 0x31b   : > { %12483 = vmatpush3.bf16.msra.mxu0 %v12480_v49  ;;  %11327 = vmatprep.mubr.msk.f32.mxu0 %vm15920_vm2, %v14660_v53 }
 0x31c   : > { %12485 = vmatprep.subr.bf16.mxu0 %v12484_v46 }
 0x31e   : > { %11328 = vmatmul.mubr.msk.f32.gmra.mrb[6].mxu0 %vm15920_vm2, %v14671_v56 }
 0x31f   : > { %12487 = vmatpush3.bf16.msra.mxu0 %v12484_v46  ;;  %11354 = vmatprep.mubr.msk.f32.mxu0 %vm15920_vm2, %v14674_v57 }
 0x320   : > { %11360 = vmatprep.subr.bf16.mxu0 %v13073_v59 }
 0x322   : > { %11355 = vmatmul.mubr.msk.f32.vlgmr.msra.gmra.mrb[8].mxu0 %vm15920_vm2, %v14685_v60 }
 0x323   : > { %11357 = vmatprep.mubr.msk.f32.mxu0 %vm15920_vm2, %v14688_v61  ;;  %11361 = vmatpush3.bf16.msra.mxu0 %v13073_v59 }
 0x324   : > { %11362 = vmatprep.subr.bf16.mxu0 %v13075_v62 }
 0x325   : > { %v11344_v1 = vpop.f32.mrb[4].mxu1 }
 0x326   : > { %11358 = vmatmul.mubr.msk.f32.gmra.mrb[10].mxu0 %vm15920_vm2, %v14697_v63  ;;  %v1942_v2 = vpop.f32.mrb[5].mxu1 }
 0x327   : > { %11363 = vmatpush3.bf16.msra.mxu0 %v13075_v62  ;;  %v11345_v3 = vpop.f32.mrb[6].mxu1 }
 0x328   : > { %11364 = vmatprep.subr.bf16.mxu0 %v13077_v0  ;;  %v1945_v4 = vpop.f32.mrb[7].mxu1 }
 0x32b   : > { %11365 = vmatpush3.bf16.msra.mxu0 %v13077_v0 }
 0x32c   : > { %11366 = vmatprep.subr.bf16.mxu0 %v13079_v5 }
 0x32f   : > { %11367 = vmatpush3.bf16.msra.mxu0 %v13079_v5  ;;  %v13089_v5 = vld [vmem:[%s16028_s18 + $0x40] sm:$0xff]  }
 0x330   : > { %11368 = vmatprep.subr.bf16.mxu0 %v13081_v7 }
 0x333   : > { %11369 = vmatpush3.bf16.msra.mxu0 %v13081_v7  ;;  %v13091_v7 = vld [vmem:[%s16028_s18 + $0x50] sm:$0xff]  }
 0x334   : > { %11370 = vmatprep.subr.bf16.mxu0 %v13083_v9 }
 0x337   : > { %11371 = vmatpush3.bf16.msra.mxu0 %v13083_v9  ;;  %v13093_v9 = vld [vmem:[%s16028_s18 + $0x60] sm:$0xff]  }
 0x338   : > { %11372 = vmatprep.subr.bf16.mxu0 %v13085_v11 }
 0x33b   : > { %11373 = vmatpush3.bf16.msra.mxu0 %v13085_v11  ;;  %v13096_v11 = vld [vmem:[%s16028_s18 + $0x78] sm:$0xff]  }
 0x33c   : > { %11374 = vmatprep.subr.bf16.mxu0 %v13087_v13 }
 0x33f   : > { %11375 = vmatpush3.bf16.msra.mxu0 %v13087_v13  ;;  %v2606_v13 = vadd.s32 40, %v14625_v25 }
 0x3ed   : > { %v11326_v15 = vpop.f32.mrb[4].mxu0 }
 0x3ee   : > { %v1946_v16 = vadd.f32 %v11326_v15, %v1945_v4  ;;  %v1853_v17 = vpop.f32.mrb[5].mxu0 }
 0x3ef   : > { %v1943_v18 = vadd.f32 %v1942_v2, %v1853_v17  ;;  %v2607_v17 = vadd.s32 48, %v14625_v25 }
 0x3f1   : > { %v11329_v19 = vpop.f32.mrb[6].mxu0 }
 0x3f2   : > { %v1954_v20 = vadd.f32 %v11345_v3, %v11329_v19  ;;  %v1863_v21 = vpop.f32.mrb[7].mxu0 }
 0x3f3   : > { %v1951_v22 = vadd.f32 %v11344_v1, %v1863_v21  ;;  %v16044_v21 = vmov 0 }
 0x3f5   : > { %v11356_v24 = vpop.f32.mrb[8].mxu0 }
 0x3f6   : > { %v2055_v30 = vadd.f32 %v11356_v24, %v1946_v16  ;;  %v2035_v31 = vpop.f32.mrb[9].mxu0  ;;  %v2610_v24 = vadd.s32 72, %v14625_v25 }
 0x3f7   : > { %v2054_v32 = vadd.f32 %v2035_v31, %v1943_v18  ;;  %v2608_v18 = vadd.s32 56, %v14625_v25  ;;  %v2611_v31 = vadd.s32 80, %v14625_v25 }
 0x3f8   : > { %v2066_v33 = vadd.f32 %v10061_v27, %v2055_v30  ;;  %v16048_v30 = vmov 0 }
 0x3f9   : > { %v2065_v35 = vadd.f32 %v10061_v27, %v2054_v32  ;;  %v11359_v37 = vpop.f32.mrb[10].mxu0  ;;  %v2612_v32 = vadd.s32 88, %v14625_v25 }
 0x3fa   : > { %v2070_v38 = vmax.f32 %v2066_v33, 0.0  ;;  %v2057_v39 = vadd.f32 %v11359_v37, %v1954_v20  ;;  %v2045_v40 = vpop.f32.mrb[11].mxu0  ;;  %v16042_v20 = vmov 0  ;;  %v16050_v33 = vmov 0 }
 0x3fb   : > { %v2069_v41 = vmax.f32 %v2065_v35, 0.0  ;;  %v2056_v42 = vadd.f32 %v2045_v40, %v1951_v22  ;;  %v2609_v22 = vadd.s32 64, %v14625_v25  ;;  %v16052_v35 = vmov 0 }
 0x3fc   : > { %v2068_v43 = vadd.f32 %v10061_v27, %v2057_v39  ;;  %v2613_v37 = vadd.s32 96, %v14625_v25  ;;  %v16054_v39 = vmov 0  ;;  %v16056_v40 = vmov 0 }
 0x3fd   : > { %v2067_v44 = vadd.f32 %v10061_v27, %v2056_v42  ;;  %v2073_v46 = vpack.c.bf16 %v2070_v38, %v2069_v41  ;;  %v16046_v27 = vmov 0  ;;  %v2614_v38 = vadd.s32 104, %v14625_v25 }
 0x3fe   : > { %v2072_v47 = vmax.f32 %v2068_v43, 0.0  ;;  %v2615_v41 = vadd.s32 112, %v14625_v25  ;;  %v2616_v42 = vadd.s32 120, %v14625_v25  ;;  %v16058_v43 = vmov 0 }
 0x3ff   : > { %v2071_v48 = vmax.f32 %v2067_v44, 0.0  ;;  %11376 = vmatprep.mubr.bf16.mxu0 %v2073_v46  ;;  %11396 = vmatprep.mubr.bf16.mxu1 %v2073_v46  ;;  %v16060_v44 = vmov 0 }
 0x401   : > { %v2074_v49 = vpack.c.bf16 %v2072_v47, %v2071_v48 }
 0x403   : > { %11377 = vmatmul.mubr.bf16.vlgmr.msra.gmra.mrb[12].mxu0 %v2074_v49  ;;  %11397 = vmatmul.mubr.bf16.vlgmr.msra.gmra.mrb[8].mxu1 %v2074_v49 }
 0x404   : > { %11408 = vmatprep.mubr.msk.f32.mxu0 %vm15920_vm2, %v14634_v29 }
 0x4d6   : > { %v11378_v50 = vpop.f32.mrb[12].mxu0  ;;  %v11398_v51 = vpop.f32.mrb[8].mxu1 }
 0x4d7   : > { %v2173_v54 = vpop.f32.mrb[13].mxu0  ;;  %v2304_v55 = vpop.f32.mrb[9].mxu1 }
 0x4d8   : > { %v11379_v58 = vpop.f32.mrb[14].mxu0  ;;  %v11399_v59 = vpop.f32.mrb[10].mxu1 }
 0x4d9   : > { %v12492_v62 = vpack.c.bf16 %v11379_v58, %v11378_v50  ;;  %v12500_v0 = vpack.c.bf16 %v11399_v59, %v11398_v51  ;;  %v2176_v1 = vpop.f32.mrb[15].mxu0  ;;  %v2307_v2 = vpop.f32.mrb[11].mxu1 }
 0x4da   : > { %v12488_v3 = vpack.c.bf16 %v2176_v1, %v2173_v54  ;;  %v12496_v4 = vpack.c.bf16 %v2307_v2, %v2304_v55  ;;  %v10126_v2 = vld [vmem:[%s16062_s2] ss:$0 sm:$0xff]  ;;  %s9988_s2 = sshll.u32 %s14599_s10, 3 }
 0x4db   : > { %s1496_s12 = scalar_lea.vmem %s16079_s0, %s9988_s2  ;;  %s9989_s0 = sshll.u32 %s14599_s10, 2 }
 0x4dc   : > { %12489 = vmatprep.subr.bf16.mxu0 %v12488_v3 }
 0x4dd   : > { %12491 = vmatpush3.bf16.msra.mxu0 %v12488_v3 }
 0x4de   : > { %12493 = vmatprep.subr.bf16.mxu0 %v12492_v62 }
 0x4e1   : > { %12495 = vmatpush3.bf16.msra.mxu0 %v12492_v62 }
 0x4e2   : > { %11414 = vmatprep.subr.bf16.mxu0 %v13089_v5 }
 0x4e4   : > { %11409 = vmatmul.mubr.msk.f32.vlgmr.msra.gmra.mrb[16].mxu0 %vm15920_vm2, %v14657_v52 }
 0x4e5   : > { %11415 = vmatpush3.bf16.msra.mxu0 %v13089_v5  ;;  %11411 = vmatprep.mubr.msk.f32.mxu0 %vm15920_vm2, %v14660_v53  ;;  %v13095_v53 = vld [vmem:[%s16028_s18 + $0x70] sm:$0xff]  }
 0x4e6   : > { %11416 = vmatprep.subr.bf16.mxu0 %v13090_v6 }
 0x4e8   : > { %11412 = vmatmul.mubr.msk.f32.gmra.mrb[18].mxu0 %vm15920_vm2, %v14671_v56  ;;  %v14738_v56 = vmul.u32 2, %v14628_v26 }
 0x4e9   : > { %11417 = vmatpush3.bf16.msra.mxu0 %v13090_v6  ;;  %11430 = vmatprep.mubr.bf16.mxu0 %v2073_v46 }
 0x4ea   : > { %11418 = vmatprep.subr.bf16.mxu0 %v13091_v7  ;;  %vm2618_vm10 = vcmp.eq.s32.totalorder %v14625_v25, %v14738_v56  ;;  %vm2619_vm11 = vcmp.eq.s32.totalorder %v14642_v34, %v14738_v56  ;;  %v14747_v14 = vadd.s32 1, %v14738_v56  ;;  %vm2620_vm12 = vcmp.eq.s32.totalorder %v14645_v36, %v14738_v56 }
 0x4eb   : > { %vm14751_vm13 = vmpackc.low %vm2619_vm11, %vm2618_vm10  ;;  %vm2621_vm14 = vcmp.eq.s32.totalorder %v14649_v45, %v14738_v56  ;;  %vm2622_vm15 = vcmp.eq.s32.totalorder %v2605_v12, %v14738_v56  ;;  %vm2623_vm0 = vcmp.eq.s32.totalorder %v2606_v13, %v14738_v56 }
 0x4ec   : > { %vm2667_vm1 = vcmp.eq.s32.totalorder %v14625_v25, %v14747_v14  ;;  %vm2668_vm3 = vcmp.eq.s32.totalorder %v14642_v34, %v14747_v14  ;;  %vm14766_vm4 = vmpackc.low %vm2621_vm14, %vm2620_vm12  ;;  %vm2669_vm5 = vcmp.eq.s32.totalorder %v14645_v36, %v14747_v14  ;;  %vm2670_vm6 = vcmp.eq.s32.totalorder %v14649_v45, %v14747_v14 }
 0x4ed   : > { %11419 = vmatpush3.bf16.msra.mxu0 %v13091_v7  ;;  %vm14774_vm7 = vmpackc.low %vm2668_vm3, %vm2667_vm1  ;;  %vm2671_vm9 = vcmp.eq.s32.totalorder %v2605_v12, %v14747_v14  ;;  %vm2672_vm10 = vcmp.eq.s32.totalorder %v2606_v13, %v14747_v14  ;;  %vm2624_vm12 = vcmp.eq.s32.totalorder %v2607_v17, %v14738_v56  ;;  %vm2625_vm14 = vcmp.eq.s32.totalorder %v2608_v18, %v14738_v56 }
 0x4ee   : > { %11420 = vmatprep.subr.bf16.mxu0 %v13092_v8  ;;  %vm14789_vm8 = vmpackc.low %vm2670_vm6, %vm2669_vm5  ;;  %vm2626_vm6 = vcmp.eq.s32.totalorder %v2609_v22, %v14738_v56 }
 0x4ef   : > { %vm14802_vm11 = vmpackc.low %vm2623_vm0, %vm2622_vm15  ;;  %vm2673_vm15 = vcmp.eq.s32.totalorder %v2607_v17, %v14747_v14  ;;  %vm2674_vm0 = vcmp.eq.s32.totalorder %v2608_v18, %v14747_v14  ;;  %v2889_v18 = vmul.u32 2, %v14625_v25 }
 0x4f0   : > { %vm14814_vm1 = vmpackc.low %vm2672_vm10, %vm2671_vm9  ;;  %vm2627_vm9 = vcmp.eq.s32.totalorder %v2610_v24, %v14738_v56  ;;  %vm2675_vm10 = vcmp.eq.s32.totalorder %v2609_v22, %v14747_v14 }
 0x4f1   : > { %11421 = vmatpush3.bf16.msra.mxu0 %v13092_v8  ;;  %vm14826_vm3 = vmpackc.low %vm2625_vm14, %vm2624_vm12  ;;  %vm2676_vm12 = vcmp.eq.s32.totalorder %v2610_v24, %v14747_v14  ;;  %v13097_v24 = vld [vmem:[#allocation2 + $0x40] sm:$0xff]  }
 0x4f2   : > { %11422 = vmatprep.subr.bf16.mxu0 %v13093_v9  ;;  %v16043_v20 = vsel %vm14826_vm3, 4294967295, %v16042_v20  ;;  %vm14836_vm5 = vmpackc.low %vm2674_vm0, %vm2673_vm15  ;;  %vm2628_vm0 = vcmp.eq.s32.totalorder %v2611_v31, %v14738_v56 }
 0x4f3   : > { %v16045_v21 = vsel %vm14836_vm5, 4294967295, %v16044_v21  ;;  %vm14861_vm14 = vmpackc.low %vm2627_vm9, %vm2626_vm6  ;;  %vm2629_vm6 = vcmp.eq.s32.totalorder %v2612_v32, %v14738_v56  ;;  %vm2677_vm9 = vcmp.eq.s32.totalorder %v2611_v31, %v14747_v14 }
 0x4f4   : > { %v16047_v27 = vsel %vm14861_vm14, 4294967295, %v16046_v27  ;;  %vm14868_vm15 = vmpackc.low %vm2676_vm12, %vm2675_vm10  ;;  %vm2678_vm10 = vcmp.eq.s32.totalorder %v2612_v32, %v14747_v14 }
 0x4f5   : > { %11423 = vmatpush3.bf16.msra.mxu0 %v13093_v9  ;;  %v16049_v30 = vsel %vm14868_vm15, 4294967295, %v16048_v30  ;;  %vm14887_vm12 = vmpackc.low %vm2629_vm6, %vm2628_vm0  ;;  %vm2630_vm0 = vcmp.eq.s32.totalorder %v2613_v37, %v14738_v56  ;;  %vm2631_vm6 = vcmp.eq.s32.totalorder %v2614_v38, %v14738_v56 }
 0x4f6   : > { %11424 = vmatprep.subr.bf16.mxu0 %v13094_v10  ;;  %v16051_v33 = vsel %vm14887_vm12, 4294967295, %v16050_v33 }
 0x4f9   : > { %11425 = vmatpush3.bf16.msra.mxu0 %v13094_v10 }
 0x4fa   : > { %11426 = vmatprep.subr.bf16.mxu0 %v13095_v53 }
 0x4fd   : > { %11427 = vmatpush3.bf16.msra.mxu0 %v13095_v53 }
 0x4fe   : > { %11428 = vmatprep.subr.bf16.mxu0 %v13096_v11 }
 0x501   : > { %11429 = vmatpush3.bf16.msra.mxu0 %v13096_v11 }
 0x502   : > { %12497 = vmatprep.subr.bf16.mxu0 %v12496_v4 }
 0x504   : > { %11431 = vmatmul.mubr.bf16.vlgmr.msra.gmra.mrb[20].mxu0 %v2074_v49 }
 0x505   : > { %12499 = vmatpush3.bf16.msra.mxu0 %v12496_v4  ;;  %11442 = vmatprep.mubr.msk.f32.mxu0 %vm15920_vm2, %v14674_v57 }
 0x506   : > { %12501 = vmatprep.subr.bf16.mxu0 %v12500_v0 }
 0x509   : > { %12503 = vmatpush3.bf16.msra.mxu0 %v12500_v0 }
 0x50c   : > { %11443 = vmatmul.mubr.msk.f32.vlgmr.msra.gmra.mrb[24].mxu0 %vm15920_vm2, %v14685_v60 }
 0x50d   : > { %11445 = vmatprep.mubr.msk.f32.mxu0 %vm15920_vm2, %v14688_v61 }
 0x510   : > { %11446 = vmatmul.mubr.msk.f32.gmra.mrb[26].mxu0 %vm15920_vm2, %v14697_v63  ;;  %v14029_v63 = vmov 1.0|1.0   ;;  %vm14894_vm2 = vmpackc.low %vm2678_vm10, %vm2677_vm9  ;;  %vm2679_vm9 = vcmp.eq.s32.totalorder %v2613_v37, %v14747_v14  ;;  %vm2680_vm10 = vcmp.eq.s32.totalorder %v2614_v38, %v14747_v14 }
 0x511   : > { %12505 = vmatprep.subr.msk.bf16.mxu1 %vm14751_vm13, %v14029_v63  ;;  %12537 = vmatprep.subr.msk.bf16.mxu0 %vm14774_vm7, %v14029_v63  ;;  %v16053_v35 = vsel %vm14894_vm2, 4294967295, %v16052_v35 }
 0x512   : > { %12507 = vmatpush3.bf16.msk.msra.mxu1 %vm14751_vm13, %v14029_v63  ;;  %12539 = vmatpush3.bf16.msk.msra.mxu0 %vm14774_vm7, %v14029_v63 }
 0x513   : > { %12509 = vmatprep.subr.msk.bf16.mxu1 %vm14766_vm4, %v14029_v63  ;;  %12541 = vmatprep.subr.msk.bf16.mxu0 %vm14789_vm8, %v14029_v63 }
 0x516   : > { %12511 = vmatpush3.bf16.msk.msra.mxu1 %vm14766_vm4, %v14029_v63  ;;  %12543 = vmatpush3.bf16.msk.msra.mxu0 %vm14789_vm8, %v14029_v63 }
 0x517   : > { %12513 = vmatprep.subr.msk.bf16.mxu1 %vm14802_vm11, %v14029_v63  ;;  %12545 = vmatprep.subr.msk.bf16.mxu0 %vm14814_vm1, %v14029_v63 }
 0x51a   : > { %12515 = vmatpush3.bf16.msk.msra.mxu1 %vm14802_vm11, %v14029_v63  ;;  %12547 = vmatpush3.bf16.msk.msra.mxu0 %vm14814_vm1, %v14029_v63 }
 0x51b   : > { %12517 = vmatprep.subr.msk.bf16.mxu1 %vm14826_vm3, %v14029_v63  ;;  %12549 = vmatprep.subr.msk.bf16.mxu0 %vm14836_vm5, %v14029_v63 }
 0x51e   : > { %12519 = vmatpush3.bf16.msk.msra.mxu1 %vm14826_vm3, %v14029_v63  ;;  %12551 = vmatpush3.bf16.msk.msra.mxu0 %vm14836_vm5, %v14029_v63 }
 0x51f   : > { %12521 = vmatprep.subr.msk.bf16.mxu1 %vm14861_vm14, %v14029_v63  ;;  %12553 = vmatprep.subr.msk.bf16.mxu0 %vm14868_vm15, %v14029_v63 }
 0x522   : > { %12523 = vmatpush3.bf16.msk.msra.mxu1 %vm14861_vm14, %v14029_v63  ;;  %12555 = vmatpush3.bf16.msk.msra.mxu0 %vm14868_vm15, %v14029_v63  ;;  %vm14913_vm14 = vmpackc.low %vm2631_vm6, %vm2630_vm0  ;;  %vm2632_vm0 = vcmp.eq.s32.totalorder %v2615_v41, %v14738_v56  ;;  %vm2633_vm6 = vcmp.eq.s32.totalorder %v2616_v42, %v14738_v56 }
 0x523   : > { %12525 = vmatprep.subr.msk.bf16.mxu1 %vm14887_vm12, %v14029_v63  ;;  %12557 = vmatprep.subr.msk.bf16.mxu0 %vm14894_vm2, %v14029_v63  ;;  %v16055_v39 = vsel %vm14913_vm14, 4294967295, %v16054_v39  ;;  %vm14939_vm3 = vmpackc.low %vm2633_vm6, %vm2632_vm0  ;;  %vm2891_vm0 = vcmp.eq.s32.totalorder %v14628_v26, %v2889_v18  ;;  %vm16063_vm6 = vcmask 261120  }
 0x524   : > { %v16059_v43 = vsel %vm14939_vm3, 4294967295, %v16058_v43  ;;  %v14964_v22 = vsel %vm2891_vm0, 1.0, %v14028_v28  ;;  %vm16064_vm0 = vmmov %vm16063_vm6 }
 0x526   : > { %12527 = vmatpush3.bf16.msk.msra.mxu1 %vm14887_vm12, %v14029_v63  ;;  %12559 = vmatpush3.bf16.msk.msra.mxu0 %vm14894_vm2, %v14029_v63  ;;  %vm14920_vm12 = vmpackc.low %vm2680_vm10, %vm2679_vm9  ;;  %vm2681_vm9 = vcmp.eq.s32.totalorder %v2615_v41, %v14747_v14  ;;  %vm2682_vm10 = vcmp.eq.s32.totalorder %v2616_v42, %v14747_v14 }
 0x527   : > { %12529 = vmatprep.subr.msk.bf16.mxu1 %vm14913_vm14, %v14029_v63  ;;  %v16057_v40 = vsel %vm14920_vm12, 4294967295, %v16056_v40  ;;  %12561 = vmatprep.subr.msk.bf16.mxu0 %vm14920_vm12, %v14029_v63 }
 0x52a   : > { %12531 = vmatpush3.bf16.msk.msra.mxu1 %vm14913_vm14, %v14029_v63  ;;  %12563 = vmatpush3.bf16.msk.msra.mxu0 %vm14920_vm12, %v14029_v63  ;;  %vm14946_vm14 = vmpackc.low %vm2682_vm10, %vm2681_vm9 }
 0x52b   : > { %12533 = vmatprep.subr.msk.bf16.mxu1 %vm14939_vm3, %v14029_v63  ;;  %v16061_v44 = vsel %vm14946_vm14, 4294967295, %v16060_v44  ;;  %12565 = vmatprep.subr.msk.bf16.mxu0 %vm14946_vm14, %v14029_v63 }
 0x52e   : > { %12535 = vmatpush3.bf16.msk.msra.mxu1 %vm14939_vm3, %v14029_v63  ;;  %12567 = vmatpush3.bf16.msk.msra.mxu0 %vm14946_vm14, %v14029_v63 }
 0x52f   : > { %11558 = vmatprep.subr.bf16.mxu0 %v14028_v28 }
 0x5b7   : > { %v11410_v46 = vpop.f32.mrb[16].mxu0 }
 0x5b8   : > { %v2385_v47 = vpop.f32.mrb[17].mxu0 }
 0x5bb   : > { %v11413_v48 = vpop.f32.mrb[18].mxu0 }
 0x5bc   : > { %v2395_v49 = vpop.f32.mrb[19].mxu0 }
 0x5d7   : > { %v11432_v50 = vpop.f32.mrb[20].mxu0 }
 0x5d8   : > { %v2495_v51 = vadd.f32 %v11432_v50, %v2395_v49  ;;  %v2486_v54 = vpop.f32.mrb[21].mxu0  ;;  %v2890_v49 = vmul.u32 2, %v14642_v34 }
 0x5d9   : > { %v2487_v55 = vadd.f32 %v2486_v54, %v2385_v47  ;;  %v11433_v58 = vpop.f32.mrb[22].mxu0 }
 0x5da   : > { %v2498_v59 = vadd.f32 %v11433_v58, %v11413_v48  ;;  %v2489_v62 = vpop.f32.mrb[23].mxu0  ;;  %vm2892_vm9 = vcmp.eq.s32.totalorder %v14628_v26, %v2890_v49  ;;  %v2898_v34 = vadd.s32 1, %v2890_v49 }
 0x5db   : > { %v2490_v0 = vadd.f32 %v11410_v46, %v2489_v62  ;;  %v10192_v62 = vsel %vm2892_vm9, 1.0, %v14028_v28  ;;  %vm16066_vm9 = vmmov %vm16064_vm0 }
 0x5dc   : > { %vm2900_vm3 = vcmp.eq.s32.totalorder %v14628_v26, %v2898_v34 }
 0x5df   : > { %v11444_v1 = vpop.f32.mrb[24].mxu0 }
 0x5e0   : > { %v2587_v3 = vadd.f32 %v11444_v1, %v2490_v0  ;;  %v2567_v4 = vpop.f32.mrb[25].mxu0  ;;  %v10194_v1 = vsel %vm2900_vm3, 1.0, %v14028_v28  ;;  %vm15933_vm3 = vmmov 0  }
 0x5e1   : > { %v2586_v5 = vadd.f32 %v2567_v4, %v2487_v55  ;;  %v2897_v55 = vadd.s32 1, %v2889_v18  ;;  %v13100_v4 = vld [vmem:[#allocation2 + $0x8] sm:$0xff]   ;;  %v13108_v18 = vld [vmem:[#allocation2 + $0x38] sm:$0xff]  }
 0x5e2   : > { %v2598_v6 = vadd.f32 %v10126_v2, %v2587_v3  ;;  %v13099_v3 = vld [vmem:[#allocation2 + $0x48] sm:$0xff]  }
 0x5e3   : > { %v2597_v7 = vadd.f32 %v10126_v2, %v2586_v5  ;;  %v11447_v8 = vpop.f32.mrb[26].mxu0  ;;  %vm2899_vm10 = vcmp.eq.s32.totalorder %v14628_v26, %v2897_v55  ;;  %v13101_v5 = vld [vmem:[#allocation2 + $0x50] sm:$0xff]   ;;  %v13103_v26 = vld [vmem:[#allocation2 + $0x58] sm:$0xff]  }
 0x5e4   : > { %v2589_v9 = vadd.f32 %v11447_v8, %v2498_v59  ;;  %v2577_v10 = vpop.f32.mrb[27].mxu0  ;;  %v2602_v56 = vmax.f32 %v2598_v6, 0.0  ;;  %v14974_v0 = vsel %vm2899_vm10, 1.0, %v14028_v28  ;;  %v13102_v6 = vld [vmem:[#allocation2 + $0x10] sm:$0xff]   ;;  %vm15931_vm10 = vcmask 523264  }
 0x5e5   : > { %v2601_v53 = vmax.f32 %v2597_v7, 0.0  ;;  %v2588_v11 = vadd.f32 %v2577_v10, %v2495_v51  ;;  %v13104_v7 = vld [vmem:[#allocation2 + $0x18] sm:$0xff]  }
 0x5e6   : > { %v2600_v12 = vadd.f32 %v10126_v2, %v2589_v9 }
 0x5e7   : > { %v2599_v13 = vadd.f32 %v10126_v2, %v2588_v11  ;;  %11480 = vmatprep.mubr.f32.mxu1 %v2601_v53  ;;  %11518 = vmatprep.mubr.f32.mxu0 %v2601_v53  ;;  %v13098_v2 = vld [vmem:[#allocation2] sm:$0xff]  }
 0x5e8   : > { %11481 = vmatmul.mubr.f32.vlgmr.msra.gmra.mrb[12].mxu1 %v2602_v56  ;;  %11519 = vmatmul.mubr.f32.vlgmr.msra.gmra.mrb[28].mxu0 %v2602_v56  ;;  %v2604_v17 = vmax.f32 %v2600_v12, 0.0  ;;  %v13105_v12 = vld [vmem:[#allocation2 + $0x20] sm:$0xff]  }
 0x5e9   : > { %v2603_v14 = vmax.f32 %v2599_v13, 0.0  ;;  %11559 = vmatpush3.bf16.msra.mxu0 %v13097_v24  ;;  %v13110_v24 = vld [vmem:[%s16068_s15 + $0x80] sm:$0xff]  }
 0x5ea   : > { %11560 = vmatprep.subr.bf16.mxu0 %v14028_v28 }
 0x5eb   : > { %11483 = vmatprep.mubr.f32.mxu1 %v2603_v14  ;;  %11521 = vmatprep.mubr.f32.mxu0 %v2603_v14  ;;  %v13106_v14 = vld [vmem:[#allocation2 + $0x28] sm:$0xff]  }
 0x5ec   : > { %11484 = vmatmul.mubr.f32.gmra.mrb[14].mxu1 %v2604_v17  ;;  %11522 = vmatmul.mubr.f32.gmra.mrb[30].mxu0 %v2604_v17  ;;  %v13107_v17 = vld [vmem:[#allocation2 + $0x30] sm:$0xff]  }
 0x5ed   : > { %11532 = vmatprep.mubr.msk.f32.mxu1 %vm16063_vm6, %v14964_v22  ;;  %vm16065_vm6 = vmmov %vm16064_vm0  ;;  %11561 = vmatpush3.bf16.msra.mxu0 %v13099_v3 }
 0x5ee   : > { %11562 = vmatprep.subr.bf16.mxu0 %v14028_v28  ;;  %11566 = vmatprep.mubr.msk.bf16.mxu0 %vm15933_vm3, %v14028_v28 }
 0x5f1   : > { %11563 = vmatpush3.bf16.msra.mxu0 %v13101_v5  ;;  %v13117_v5 = vld [vmem:[%s16068_s15 + $0x20] sm:$0xff]  }
 0x5f2   : > { %11564 = vmatprep.subr.bf16.mxu0 %v14028_v28 }
 0x5f5   : > { %11565 = vmatpush3.bf16.msra.mxu0 %v13103_v26  ;;  %v13120_v26 = vld [vmem:[%s16068_s15 + $0xa8] sm:$0xff]  }
 0x5f6   : > { %11577 = vmatprep.subr.bf16.mxu0 %v14028_v28 }
 0x6bb   : > { %v11482_v31 = vpop.f32.mrb[12].mxu1  ;;  %v11520_v32 = vpop.f32.mrb[28].mxu0 }
 0x6bc   : > { %v2886_v37 = vmax.f32 %v11482_v31, %v11520_v32  ;;  %v2781_v38 = vpop.f32.mrb[13].mxu1  ;;  %v2866_v41 = vpop.f32.mrb[29].mxu0  ;;  %v13112_v31 = vld [vmem:[%s16068_s15 + $0x88] sm:$0xff]   ;;  %v13114_v32 = vld [vmem:[%s16068_s15 + $0x90] sm:$0xff]  }
 0x6bd   : > { %v2885_v42 = vmax.f32 %v2781_v38, %v2866_v41  ;;  %v13118_v38 = vld [vmem:[%s16068_s15 + $0xa0] sm:$0xff]  }
 0x6bf   : > { %v12568_v46 = vpack.c.bf16 %v2886_v37, %v2885_v42  ;;  %v11485_v47 = vpop.f32.mrb[14].mxu1  ;;  %v11523_v48 = vpop.f32.mrb[30].mxu0  ;;  %v13116_v37 = vld [vmem:[%s16068_s15 + $0x98] sm:$0xff]  }
 0x6c0   : > { %v2888_v50 = vmax.f32 %v11485_v47, %v11523_v48  ;;  %v2791_v51 = vpop.f32.mrb[15].mxu1  ;;  %v2876_v54 = vpop.f32.mrb[31].mxu0 }
 0x6c1   : > { %v2887_v58 = vmax.f32 %v2791_v51, %v2876_v54  ;;  %12569 = vmatprep.subr.bf16.mxu1 %v12568_v46 }
 0x6c2   : > { %12571 = vmatpush3.bf16.msra.mxu1 %v12568_v46 }
 0x6c3   : > { %v12572_v59 = vpack.c.bf16 %v2888_v50, %v2887_v58  ;;  %v13109_v58 = vld [vmem:[%s16068_s15] sm:$0xff]  }
 0x6c5   : > { %12573 = vmatprep.subr.bf16.mxu1 %v12572_v59 }
 0x6c6   : > { %12575 = vmatpush3.bf16.msra.mxu1 %v12572_v59 }
 0x6c7   : > { %12577 = vmatprep.subr.bf16.mxu1 %v12568_v46 }
 0x6c9   : > { %11533 = vmatmul.mubr.msk.f32.vlgmr.msra.gmra.mrb[16].mxu1 %vm16064_vm0, %v10192_v62  ;;  %vm15932_vm0 = vcmask 130048  }
 0x6ca   : > { %12579 = vmatpush3.bf16.msra.mxu1 %v12568_v46  ;;  %11543 = vmatprep.mubr.msk.f32.mxu1 %vm16065_vm6, %v14974_v0  ;;  %vm16070_vm6 = vnez %v16043_v20 }
 0x6cb   : > { %12581 = vmatprep.subr.bf16.mxu1 %v12572_v59 }
 0x6ce   : > { %12583 = vmatpush3.bf16.msra.mxu1 %v12572_v59  ;;  %v13111_v59 = vld [vmem:[%s16068_s15 + $0x8] sm:$0xff]  }
 0x6cf   : > { %11546 = vmatprep.subr.bf16.mxu1 %v14028_v28 }
 0x6d1   : > { %11544 = vmatmul.mubr.msk.f32.vlgmr.msra.gmra.mrb[18].mxu1 %vm16066_vm9, %v10194_v1  ;;  %vm16071_vm9 = vnez %v16047_v27 }
 0x6d2   : > { %11547 = vmatpush3.bf16.msra.mxu1 %v13098_v2  ;;  %11554 = vmatprep.mubr.msk.bf16.mxu1 %vm15933_vm3, %v14028_v28  ;;  %v13113_v2 = vld [vmem:[%s16068_s15 + $0x10] sm:$0xff]  }
 0x6d3   : > { %11548 = vmatprep.subr.bf16.mxu1 %v14028_v28 }
 0x6d6   : > { %11549 = vmatpush3.bf16.msra.mxu1 %v13100_v4  ;;  %v13115_v4 = vld [vmem:[%s16068_s15 + $0x18] sm:$0xff]  }
 0x6d7   : > { %11550 = vmatprep.subr.bf16.mxu1 %v14028_v28 }
 0x6da   : > { %11551 = vmatpush3.bf16.msra.mxu1 %v13102_v6  ;;  %v13119_v6 = vld [vmem:[%s16068_s15 + $0x28] sm:$0xff]  }
 0x6db   : > { %11552 = vmatprep.subr.bf16.mxu1 %v14028_v28 }
 0x6de   : > { %11553 = vmatpush3.bf16.msra.mxu1 %v13104_v7  ;;  %v13121_v7 = vld [vmem:[%s16068_s15 + $0x30] sm:$0xff]  }
 0x79c   : > { %v11534_v8 = vpop.f32.mrb[16].mxu1 }
 0x79d   : > { %v2977_v9 = vpop.f32.mrb[17].mxu1 }
 0x7a4   : > { %v11545_v10 = vpop.f32.mrb[18].mxu1 }
 0x7a5   : > { %v3068_v53 = vmax.f32 %v11534_v8, %v11545_v10  ;;  %v3058_v11 = vpop.f32.mrb[19].mxu1  ;;  %v13122_v8 = vld [vmem:[%s16068_s15 + $0xb0] sm:$0xff]   ;;  %v13124_v10 = vld [vmem:[%s16068_s15 + $0xb8] sm:$0xff]  }
 0x7a6   : > { %v3067_v56 = vmax.f32 %v2977_v9, %v3058_v11  ;;  %v13123_v9 = vld [vmem:[%s16068_s15 + $0x38] sm:$0xff]  }
 0x7a7   : > { %3071 = vst.msk [vmem:[%s1492_s16 + $0x8] sm:$0xff] %vm15931_vm10, %v3068_v53 }
 0x7a8   : > { %3070 = vst.msk [vmem:[%s1492_s16] sm:$0xff] %vm15931_vm10, %v3067_v56  ;;  %v3072_v13 = vpack.c.bf16 %v3068_v53, %v3067_v56  ;;  %s16085_s16 = sld [smem:[#allocation51_spill]] }
 0x7aa   : > { %11555 = vmatmul.mubr.msk.bf16.vlgmr.msra.gmra.mrb[20].mxu1 %vm15931_vm10, %v3072_v13  ;;  %11567 = vmatmul.mubr.msk.bf16.vlgmr.msra.gmra.mrb[32].mxu0 %vm15931_vm10, %v3072_v13 }
 0x7ab   : > { %11578 = vmatpush3.bf16.msra.mxu0 %v13105_v12  ;;  %11585 = vmatprep.mubr.msk.bf16.mxu0 %vm15933_vm3, %v14028_v28 }
 0x7ac   : > { %11579 = vmatprep.subr.bf16.mxu0 %v14028_v28  ;;  %11574 = vmatprep.mubr.msk.f32.mxu1 %vm15932_vm0, %v14634_v29 }
 0x7af   : > { %11580 = vmatpush3.bf16.msra.mxu0 %v13106_v14  ;;  %v10218_v14 = vld [vmem:[%s16069_s23] ss:$0 sm:$0xff]  ;;  %s16086_s23 = sld [smem:[#allocation53_spill]] }
 0x7b0   : > { %11581 = vmatprep.subr.bf16.mxu0 %v14028_v28 }
 0x7b3   : > { %11582 = vmatpush3.bf16.msra.mxu0 %v13107_v17 }
 0x7b4   : > { %11583 = vmatprep.subr.bf16.mxu0 %v14028_v28 }
 0x7b7   : > { %11584 = vmatpush3.bf16.msra.mxu0 %v13108_v18 }
 0x7b8   : > { %11616 = vmatprep.subr.bf16.mxu0 %v14028_v28 }
 0x7ba   : > { %11586 = vmatmul.mubr.msk.bf16.vlgmr.msra.gmra.mrb[36].mxu0 %vm15931_vm10, %v3072_v13  ;;  %vm16072_vm10 = vnez %v16051_v33 }
 0x7bb   : > { %11632 = vmatprep.mubr.msk.bf16.mxu0 %vm15933_vm3, %v14028_v28  ;;  %11617 = vmatpush3.bf16.msra.mxu0 %v13110_v24 }
 0x7bc   : > { %11618 = vmatprep.subr.bf16.mxu0 %v14028_v28 }
 0x7bf   : > { %11619 = vmatpush3.bf16.msra.mxu0 %v13112_v31 }
 0x7c0   : > { %11620 = vmatprep.subr.bf16.mxu0 %v14028_v28 }
 0x7c3   : > { %11621 = vmatpush3.bf16.msra.mxu0 %v13114_v32 }
 0x7c4   : > { %11622 = vmatprep.subr.bf16.mxu0 %v14028_v28 }
 0x7c7   : > { %11623 = vmatpush3.bf16.msra.mxu0 %v13116_v37 }
 0x7c8   : > { %11624 = vmatprep.subr.bf16.mxu0 %v14028_v28 }
 0x7cb   : > { %11625 = vmatpush3.bf16.msra.mxu0 %v13118_v38 }
 0x7cc   : > { %11626 = vmatprep.subr.bf16.mxu0 %v14028_v28 }
 0x7cf   : > { %11627 = vmatpush3.bf16.msra.mxu0 %v13120_v26 }
 0x7d0   : > { %11628 = vmatprep.subr.bf16.mxu0 %v14028_v28 }
 0x7d3   : > { %11629 = vmatpush3.bf16.msra.mxu0 %v13122_v8 }
 0x7d4   : > { %11630 = vmatprep.subr.bf16.mxu0 %v14028_v28 }
 0x7d7   : > { %11631 = vmatpush3.bf16.msra.mxu0 %v13124_v10 }
 0x87d   : > { %v3142_v41 = vpop.f32.mrb[20].mxu1  ;;  %v3225_v42 = vpop.f32.mrb[32].mxu0 }
 0x87e   : > { %v11556_v46 = vpop.f32.mrb[21].mxu1  ;;  %v11568_v47 = vpop.f32.mrb[33].mxu0 }
 0x87f   : > { %v3145_v48 = vpop.f32.mrb[22].mxu1  ;;  %v3228_v49 = vpop.f32.mrb[34].mxu0  ;;  %v13126_v46 = vld [vmem:[%s16068_s15 + $0x48] sm:$0xff]   ;;  %v13127_v47 = vld [vmem:[%s16068_s15 + $0x50] sm:$0xff]  }
 0x880   : > { %v12584_v50 = vpack.c.bf16 %v3145_v48, %v3142_v41  ;;  %v12588_v51 = vpack.c.bf16 %v3228_v49, %v3225_v42  ;;  %v11557_v54 = vpop.f32.mrb[23].mxu1  ;;  %v11569_v55 = vpop.f32.mrb[35].mxu0  ;;  %v13125_v41 = vld [vmem:[%s16068_s15 + $0x40] sm:$0xff]   ;;  %v13128_v48 = vld [vmem:[%s16068_s15 + $0x58] sm:$0xff]  }
 0x881   : > { %v13129_v49 = vld [vmem:[%s16068_s15 + $0x60] sm:$0xff]   ;;  %v13132_v54 = vld [vmem:[%s16068_s15 + $0x78] sm:$0xff]  }
 0x882   : > { %12585 = vmatprep.subr.bf16.mxu1 %v12584_v50 }
 0x883   : > { %12587 = vmatpush3.bf16.msra.mxu1 %v12584_v50  ;;  %v13130_v50 = vld [vmem:[%s16068_s15 + $0x68] sm:$0xff]  }
 0x884   : > { %12589 = vmatprep.subr.bf16.mxu1 %v12588_v51 }
 0x886   : > { %11575 = vmatmul.mubr.msk.f32.vlgmr.msra.gmra.mrb[24].mxu1 %vm15932_vm0, %v14657_v52 }
 0x887   : > { %12591 = vmatpush3.bf16.msra.mxu1 %v12588_v51  ;;  %11593 = vmatprep.mubr.msk.f32.mxu1 %vm15932_vm0, %v14674_v57  ;;  %v13131_v51 = vld [vmem:[%s16068_s15 + $0x70] sm:$0xff]  }
 0x888   : > { %11596 = vmatprep.subr.bf16.mxu1 %v14028_v28 }
 0x88a   : > { %11594 = vmatmul.mubr.msk.f32.vlgmr.msra.gmra.mrb[26].mxu1 %vm15932_vm0, %v14685_v60 }
 0x88b   : > { %11597 = vmatpush3.bf16.msra.mxu1 %v13109_v58  ;;  %11612 = vmatprep.mubr.msk.bf16.mxu1 %vm15933_vm3, %v14028_v28 }
 0x88c   : > { %11598 = vmatprep.subr.bf16.mxu1 %v14028_v28 }
 0x88d   : > { %v3370_v62 = vpop.f32.mrb[36].mxu0 }
 0x88e   : > { %v11587_v34 = vpop.f32.mrb[37].mxu0 }
 0x88f   : > { %v3373_v1 = vpop.f32.mrb[38].mxu0  ;;  %11599 = vmatpush3.bf16.msra.mxu1 %v13111_v59 }
 0x890   : > { %v11588_v3 = vpop.f32.mrb[39].mxu0  ;;  %11600 = vmatprep.subr.bf16.mxu1 %v14028_v28 }
 0x893   : > { %11601 = vmatpush3.bf16.msra.mxu1 %v13113_v2 }
 0x894   : > { %11602 = vmatprep.subr.bf16.mxu1 %v14028_v28 }
 0x897   : > { %11603 = vmatpush3.bf16.msra.mxu1 %v13115_v4 }
 0x898   : > { %11604 = vmatprep.subr.bf16.mxu1 %v14028_v28 }
 0x89b   : > { %11605 = vmatpush3.bf16.msra.mxu1 %v13117_v5 }
 0x89c   : > { %11606 = vmatprep.subr.bf16.mxu1 %v14028_v28 }
 0x89f   : > { %11607 = vmatpush3.bf16.msra.mxu1 %v13119_v6 }
 0x8a0   : > { %11608 = vmatprep.subr.bf16.mxu1 %v14028_v28 }
 0x8a3   : > { %11609 = vmatpush3.bf16.msra.mxu1 %v13121_v7 }
 0x8a4   : > { %11610 = vmatprep.subr.bf16.mxu1 %v14028_v28 }
 0x8a7   : > { %11611 = vmatpush3.bf16.msra.mxu1 %v13123_v9 }
 0x8a8   : > { %11643 = vmatprep.subr.bf16.mxu1 %v14028_v28 }
 0x959   : > { %v11576_v53 = vpop.f32.mrb[24].mxu1 }
 0x95a   : > { %v3374_v11 = vadd.f32 %v11576_v53, %v3373_v1  ;;  %v3303_v56 = vpop.f32.mrb[25].mxu1 }
 0x95b   : > { %v3371_v12 = vadd.f32 %v3370_v62, %v3303_v56 }
 0x95d   : > { %v11595_v13 = vpop.f32.mrb[26].mxu1 }
 0x95e   : > { %v3457_v17 = vadd.f32 %v11595_v13, %v3374_v11  ;;  %v3447_v18 = vpop.f32.mrb[27].mxu1  ;;  %v10279_v11 = vld [vmem:[%s16073_s28] ss:$0 sm:$0xff]  ;;  %s16094_s28 = sld [smem:[#allocation70_spill]] }
 0x95f   : > { %v3456_v24 = vadd.f32 %v3447_v18, %v3371_v12 }
 0x960   : > { %v3466_v31 = vadd.f32 %v10218_v14, %v3457_v17 }
 0x961   : > { %v3465_v32 = vadd.f32 %v10218_v14, %v3456_v24 }
 0x962   : > { %v3468_v37 = vmax.f32 %v3466_v31, 0.0  ;;  %v14031_v31 = vmov 0.0|0.0  }
 0x963   : > { %v3467_v38 = vmax.f32 %v3465_v32, 0.0  ;;  %v13134_v32 = vld [vmem:[#allocation5 + $0x40] sm:$0xff]  }
 0x964   : > { %s1500_s2 = scalar_lea.vmem %s16094_s28, %s9989_s0  ;;  %s16113_s28 = sld [smem:[#allocation64_spill]] }
 0x965   : > { %v3469_v42 = vpack.c.bf16 %v3468_v37, %v3467_v38  ;;  %v13136_v37 = vld [vmem:[#allocation5 + $0x48] sm:$0xff]   ;;  %s15780_s0 = sand.u32 1, %s13957_s1  }
 0x966   : > { %s16121_s3 = scalar_lea.vmem [#allocation29], %s15780_s0  ;;  %s9459_s5 = scalar_lea.sflag [#allocation4], %s15780_s0 }
 0x967   : > { %11613 = vmatmul.mubr.bf16.vlgmr.msra.gmra.mrb[28].mxu1 %v3469_v42  ;;  %11633 = vmatmul.mubr.bf16.vlgmr.msra.gmra.mrb[40].mxu0 %v3469_v42  ;;  %s9495_s4 = sshll.u32 %s16121_s3, 4  ;;  %s9496_s4 = int_to_ptr.vmem [resolvable:$true] %s9495_s4 }
 0x968   : > { %11644 = vmatpush3.bf16.msra.mxu1 %v13125_v41  ;;  %11659 = vmatprep.mubr.msk.bf16.mxu1 %vm15933_vm3, %v14028_v28  ;;  %vm16075_vm3 = vnez %v16059_v43  ;;  %s13835_s6 = scalar_lea.vmem %s9496_s4, 16 }
 0x969   : > { %11645 = vmatprep.subr.bf16.mxu1 %v14028_v28  ;;  %11640 = vmatprep.mubr.msk.f32.mxu0 %vm15932_vm0, %v14634_v29  ;;  %p13836_p12 = scmp.ne.s32.totalorder %s9496_s4, %s13835_s6 }
 0x96b   : > { %p13837_p2 = pnand %p13836_p12, %p16122_p1 }
 0x96c   : > { %11646 = vmatpush3.bf16.msra.mxu1 %v13126_v46 }
 0x96d   : > { %11647 = vmatprep.subr.bf16.mxu1 %v14028_v28  ;;  %p13838_p3 = pneg %p13837_p2 }
 0x970   : > { %11648 = vmatpush3.bf16.msra.mxu1 %v13127_v47 }
 0x971   : > { %11649 = vmatprep.subr.bf16.mxu1 %v14028_v28 }
 0x974   : > { %11650 = vmatpush3.bf16.msra.mxu1 %v13128_v48 }
 0x975   : > { %11651 = vmatprep.subr.bf16.mxu1 %v14028_v28 }
 0x978   : > { %11652 = vmatpush3.bf16.msra.mxu1 %v13129_v49 }
 0x979   : > { %11653 = vmatprep.subr.bf16.mxu1 %v14028_v28 }
 0x97c   : > { %11654 = vmatpush3.bf16.msra.mxu1 %v13130_v50  ;;  %v13133_v50 = vld [vmem:[#allocation5] sm:$0xff]  }
 0x97d   : > { %11655 = vmatprep.subr.bf16.mxu1 %v14028_v28 }
 0x980   : > { %11656 = vmatpush3.bf16.msra.mxu1 %v13131_v51  ;;  %v13135_v51 = vld [vmem:[#allocation5 + $0x8] sm:$0xff]  }
 0x981   : > { %11657 = vmatprep.subr.bf16.mxu1 %v14028_v28 }
 0x984   : > { %11658 = vmatpush3.bf16.msra.mxu1 %v13132_v54  ;;  %v13137_v54 = vld [vmem:[#allocation5 + $0x10] sm:$0xff]  }
 0x985   : > { %12633 = vmatprep.subr.msk.bf16.mxu1 %vm14774_vm7, %v14029_v63 }
 0x987   : > { %11660 = vmatmul.mubr.bf16.vlgmr.msra.gmra.mrb[32].mxu1 %v3469_v42 }
 0x988   : > { %12635 = vmatpush3.bf16.msk.msra.mxu1 %vm14774_vm7, %v14029_v63 }
 0x989   : > { %12637 = vmatprep.subr.msk.bf16.mxu1 %vm14789_vm8, %v14029_v63 }
 0x98c   : > { %12639 = vmatpush3.bf16.msk.msra.mxu1 %vm14789_vm8, %v14029_v63 }
 0x98d   : > { %12641 = vmatprep.subr.msk.bf16.mxu1 %vm14814_vm1, %v14029_v63 }
 0x990   : > { %12643 = vmatpush3.bf16.msk.msra.mxu1 %vm14814_vm1, %v14029_v63 }
 0x991   : > { %12645 = vmatprep.subr.msk.bf16.mxu1 %vm14836_vm5, %v14029_v63 }
 0x994   : > { %12647 = vmatpush3.bf16.msk.msra.mxu1 %vm14836_vm5, %v14029_v63  ;;  %vm15945_vm5 = vcmask 64512  }
 0x995   : > { %12649 = vmatprep.subr.msk.bf16.mxu1 %vm14868_vm15, %v14029_v63 }
 0x998   : > { %12651 = vmatpush3.bf16.msk.msra.mxu1 %vm14868_vm15, %v14029_v63 }
 0x999   : > { %12653 = vmatprep.subr.msk.bf16.mxu1 %vm14894_vm2, %v14029_v63 }
 0x99c   : > { %12655 = vmatpush3.bf16.msk.msra.mxu1 %vm14894_vm2, %v14029_v63 }
 0x99d   : > { %12657 = vmatprep.subr.msk.bf16.mxu1 %vm14920_vm12, %v14029_v63 }
 0x9a0   : > { %12659 = vmatpush3.bf16.msk.msra.mxu1 %vm14920_vm12, %v14029_v63  ;;  %vm16077_vm12 = vcmask 130048  }
 0x9a1   : > { %12661 = vmatprep.subr.msk.bf16.mxu1 %vm14946_vm14, %v14029_v63  ;;  %vm16078_vm2 = vmmov %vm16077_vm12 }
 0x9a4   : > { %12663 = vmatpush3.bf16.msk.msra.mxu1 %vm14946_vm14, %v14029_v63  ;;  %vm16076_vm14 = vmmov 0  }
 0x9a5   : > { %11766 = vmatprep.subr.bf16.mxu1 %v14028_v28 }
 0xa3a   : > { %v3568_v55 = vpop.f32.mrb[28].mxu1  ;;  %v3691_v58 = vpop.f32.mrb[40].mxu0 }
 0xa3b   : > { %v11614_v59 = vpop.f32.mrb[29].mxu1  ;;  %v11634_v62 = vpop.f32.mrb[41].mxu0 }
 0xa3c   : > { %v3571_v34 = vpop.f32.mrb[30].mxu1  ;;  %v3694_v1 = vpop.f32.mrb[42].mxu0  ;;  %v13140_v59 = vld [vmem:[#allocation5 + $0x58] sm:$0xff]  }
 0xa3d   : > { %v12592_v2 = vpack.c.bf16 %v3571_v34, %v3568_v55  ;;  %v12596_v3 = vpack.c.bf16 %v3694_v1, %v3691_v58  ;;  %v11615_v4 = vpop.f32.mrb[31].mxu1  ;;  %v11635_v5 = vpop.f32.mrb[43].mxu0  ;;  %v13138_v55 = vld [vmem:[#allocation5 + $0x50] sm:$0xff]   ;;  %v13139_v58 = vld [vmem:[#allocation5 + $0x18] sm:$0xff]  }
 0xa3e   : > { %v13141_v5 = vld [vmem:[#allocation5 + $0x20] sm:$0xff]  }
 0xa3f   : > { %12593 = vmatprep.subr.bf16.mxu0 %v12592_v2 }
 0xa40   : > { %12595 = vmatpush3.bf16.msra.mxu0 %v12592_v2 }
 0xa41   : > { %12597 = vmatprep.subr.bf16.mxu0 %v12596_v3 }
 0xa43   : > { %11641 = vmatmul.mubr.msk.f32.vlgmr.msra.gmra.mrb[44].mxu0 %vm15932_vm0, %v14657_v52 }
 0xa44   : > { %12599 = vmatpush3.bf16.msra.mxu0 %v12596_v3  ;;  %11667 = vmatprep.mubr.msk.f32.mxu0 %vm15932_vm0, %v14674_v57 }
 0xa45   : > { %12601 = vmatprep.subr.msk.bf16.mxu0 %vm14751_vm13, %v14029_v63 }
 0xa47   : > { %11668 = vmatmul.mubr.msk.f32.vlgmr.msra.gmra.mrb[46].mxu0 %vm15932_vm0, %v14685_v60  ;;  %vm16074_vm0 = vnez %v16055_v39 }
 0xa48   : > { %12603 = vmatpush3.bf16.msk.msra.mxu0 %vm14751_vm13, %v14029_v63 }
 0xa49   : > { %12605 = vmatprep.subr.msk.bf16.mxu0 %vm14766_vm4, %v14029_v63 }
 0xa4c   : > { %12607 = vmatpush3.bf16.msk.msra.mxu0 %vm14766_vm4, %v14029_v63 }
 0xa4d   : > { %12609 = vmatprep.subr.msk.bf16.mxu0 %vm14802_vm11, %v14029_v63 }
 0xa50   : > { %12611 = vmatpush3.bf16.msk.msra.mxu0 %vm14802_vm11, %v14029_v63 }
 0xa51   : > { %12613 = vmatprep.subr.msk.bf16.mxu0 %vm16070_vm6, %v14029_v63 }
 0xa54   : > { %12615 = vmatpush3.bf16.msk.msra.mxu0 %vm16070_vm6, %v14029_v63 }
 0xa55   : > { %12617 = vmatprep.subr.msk.bf16.mxu0 %vm16071_vm9, %v14029_v63 }
 0xa58   : > { %12619 = vmatpush3.bf16.msk.msra.mxu0 %vm16071_vm9, %v14029_v63 }
 0xa59   : > { %12621 = vmatprep.subr.msk.bf16.mxu0 %vm16072_vm10, %v14029_v63 }
 0xa5a   : > { %v3855_v52 = vpop.f32.mrb[32].mxu1 }
 0xa5b   : > { %v11661_v60 = vpop.f32.mrb[33].mxu1 }
 0xa5c   : > { %v3858_v6 = vpop.f32.mrb[34].mxu1  ;;  %12623 = vmatpush3.bf16.msk.msra.mxu0 %vm16072_vm10, %v14029_v63 }
 0xa5d   : > { %v11662_v26 = vpop.f32.mrb[35].mxu1  ;;  %12625 = vmatprep.subr.msk.bf16.mxu0 %vm16074_vm0, %v14029_v63 }
 0xa60   : > { %12627 = vmatpush3.bf16.msk.msra.mxu0 %vm16074_vm0, %v14029_v63 }
 0xa61   : > { %12629 = vmatprep.subr.msk.bf16.mxu0 %vm16075_vm3, %v14029_v63 }
 0xa64   : > { %12631 = vmatpush3.bf16.msk.msra.mxu0 %vm16075_vm3, %v14029_v63 }
 0xa65   : > { %12664 = vmatprep.subr.bf16.mxu0 %v14031_v31 }
 0xb16   : > { %v11642_v7 = vpop.f32.mrb[44].mxu0 }
 0xb17   : > { %v3859_v8 = vadd.f32 %v11642_v7, %v3858_v6  ;;  %v3764_v9 = vpop.f32.mrb[45].mxu0 }
 0xb18   : > { %v3856_v10 = vadd.f32 %v3855_v52, %v3764_v9  ;;  %v13146_v9 = vld [vmem:[%s16083_s13] sm:$0xff]  }
 0xb1a   : > { %v11669_v53 = vpop.f32.mrb[46].mxu0 }
 0xb1b   : > { %v3938_v56 = vadd.f32 %v11669_v53, %v3859_v8  ;;  %v3928_v12 = vpop.f32.mrb[47].mxu0 }
 0xb1c   : > { %v3937_v13 = vadd.f32 %v3928_v12, %v3856_v10  ;;  %v13144_v12 = vld [vmem:[#allocation5 + $0x38] sm:$0xff]  }
 0xb1d   : > { %v3947_v14 = vadd.f32 %v10279_v11, %v3938_v56  ;;  %v13143_v56 = vld [vmem:[#allocation5 + $0x30] sm:$0xff]  }
 0xb1e   : > { %v3946_v17 = vadd.f32 %v10279_v11, %v3937_v13  ;;  %v13142_v11 = vld [vmem:[#allocation5 + $0x28] sm:$0xff]   ;;  %v13145_v13 = vld [vmem:[%s16083_s13 + $0x80] sm:$0xff]  }
 0xb1f   : > { %v3949_v24 = vmax.f32 %v3947_v14, 0.0  ;;  %v13147_v14 = vld [vmem:[%s16083_s13 + $0x88] sm:$0xff]  }
 0xb20   : > { %v3948_v18 = vmax.f32 %v3946_v17, 0.0  ;;  %v13148_v17 = vld [vmem:[%s16083_s13 + $0x8] sm:$0xff]  }
 0xb22   : > { %11702 = vmatprep.mubr.f32.mxu0 %v3948_v18  ;;  %11737 = vmatprep.mubr.f32.mxu1 %v3948_v18  ;;  %v13149_v18 = vld [vmem:[%s16083_s13 + $0x90] sm:$0xff]  }
 0xb23   : > { %11703 = vmatmul.mubr.f32.vlgmr.msra.gmra.mrb[48].mxu0 %v3949_v24  ;;  %11738 = vmatmul.mubr.f32.vlgmr.msra.gmra.mrb[36].mxu1 %v3949_v24  ;;  %v13150_v24 = vld [vmem:[%s16083_s13 + $0x10] sm:$0xff]  }
 0xb24   : > { %11744 = vmatprep.mubr.msk.f32.mxu0 %vm16076_vm14, %v14028_v28  ;;  %11774 = vmatprep.mubr.msk.bf16.mxu1 %vm16076_vm14, %v14028_v28 }
 0xb25   : > { %11767 = vmatpush3.bf16.msra.mxu1 %v13134_v32  ;;  %v13151_v32 = vld [vmem:[%s16083_s13 + $0x98] sm:$0xff]  }
 0xb26   : > { %11768 = vmatprep.subr.bf16.mxu1 %v14028_v28 }
 0xb29   : > { %11769 = vmatpush3.bf16.msra.mxu1 %v13136_v37  ;;  %v13152_v37 = vld [vmem:[%s16083_s13 + $0x18] sm:$0xff]  }
 0xb2a   : > { %11770 = vmatprep.subr.bf16.mxu1 %v14028_v28 }
 0xb2d   : > { %11771 = vmatpush3.bf16.msra.mxu1 %v13138_v55 }
 0xb2e   : > { %11772 = vmatprep.subr.bf16.mxu1 %v14028_v28 }
 0xb31   : > { %11773 = vmatpush3.bf16.msra.mxu1 %v13140_v59 }
 0xb32   : > { %11795 = vmatprep.subr.mxu1 %v14028_v28 }
 0xbf6   : > { %v11704_v38 = vpop.f32.mrb[48].mxu0  ;;  %v11739_v41 = vpop.f32.mrb[36].mxu1 }
 0xbf7   : > { %v4101_v42 = vmax.f32 %v11704_v38, %v11739_v41  ;;  %v4016_v46 = vpop.f32.mrb[49].mxu0  ;;  %v4091_v47 = vpop.f32.mrb[37].mxu1  ;;  %v13153_v38 = vld [vmem:[%s16083_s13 + $0xa0] sm:$0xff]  }
 0xbf8   : > { %v4100_v48 = vmax.f32 %v4016_v46, %v4091_v47  ;;  %v13154_v41 = vld [vmem:[%s16083_s13 + $0x20] sm:$0xff]   ;;  %v13156_v46 = vld [vmem:[%s16083_s13 + $0x28] sm:$0xff]   ;;  %v13157_v47 = vld [vmem:[%s16083_s13 + $0xb0] sm:$0xff]  }
 0xbfa   : > { %v12665_v49 = vpack.c.bf16 %v4101_v42, %v4100_v48  ;;  %v13155_v42 = vld [vmem:[%s16083_s13 + $0xa8] sm:$0xff]   ;;  %v13158_v48 = vld [vmem:[%s16083_s13 + $0x30] sm:$0xff]  }
 0xbfc   : > { %12666 = vmatpush3.bf16.msra.mxu0 %v12665_v49 }
 0xbfd   : > { %12667 = vmatprep.subr.bf16.mxu0 %v14031_v31 }
 0xbff   : > { %11745 = vmatmul.mubr.msk.f32.vlgmr.msra.gmra.mrb[50].mxu0 %vm16077_vm12, %v14964_v22 }
 0xc00   : > { %12669 = vmatpush3.bf16.msra.mxu0 %v12665_v49  ;;  %11751 = vmatprep.mubr.msk.f32.mxu0 %vm16076_vm14, %v14028_v28  ;;  %v13159_v49 = vld [vmem:[%s16083_s13 + $0xb8] sm:$0xff]  }
 0xc01   : > { %11754 = vmatprep.subr.bf16.mxu0 %v14028_v28 }
 0xc03   : > { %11752 = vmatmul.mubr.msk.f32.vlgmr.msra.gmra.mrb[52].mxu0 %vm16078_vm2, %v14974_v0  ;;  %vm16080_vm2 = vcmask 523264  }
 0xc04   : > { %11755 = vmatpush3.bf16.msra.mxu0 %v13133_v50  ;;  %11762 = vmatprep.mubr.msk.bf16.mxu0 %vm16076_vm14, %v14028_v28  ;;  %vm16081_vm12 = vmmov %vm16080_vm2  ;;  %v13160_v50 = vld [vmem:[%s16083_s13 + $0x38] sm:$0xff]  }
 0xc05   : > { %11756 = vmatprep.subr.bf16.mxu0 %v14028_v28  ;;  %vm16082_vm15 = vmmov %vm16080_vm2 }
 0xc08   : > { %11757 = vmatpush3.bf16.msra.mxu0 %v13135_v51 }
 0xc09   : > { %11758 = vmatprep.subr.bf16.mxu0 %v14028_v28 }
 0xc0c   : > { %11759 = vmatpush3.bf16.msra.mxu0 %v13137_v54 }
 0xc0d   : > { %11760 = vmatprep.subr.bf16.mxu0 %v14028_v28 }
 0xc10   : > { %11761 = vmatpush3.bf16.msra.mxu0 %v13139_v58 }
 0xc11   : > { %11778 = vmatprep.subr.mxu0 %v14028_v28 }
 0xcd2   : > { %v4170_v62 = vpop.f32.mrb[50].mxu0 }
 0xcd3   : > { %v11746_v34 = vpop.f32.mrb[51].mxu0 }
 0xcd6   : > { %v4242_v1 = vpop.f32.mrb[52].mxu0 }
 0xcd7   : > { %v4246_v2 = vmax.f32 %v4170_v62, %v4242_v1  ;;  %v11753_v3 = vpop.f32.mrb[53].mxu0  ;;  %v10331_v1 = vld [vmem:[%s16085_s16] ss:$0 sm:$0xff]  ;;  %s15615_s16 = sshll.u32 %s14599_s10, 1  ;;  %s16105_s10 = sld [smem:[#allocation58_spill]] }
 0xcd9   : > { %4247 = vst.msk [vmem:[%s1496_s12] sm:$0xff] %vm16080_vm2, %v4246_v2  ;;  %v4248_v4 = vpack.c.bf16 %v4246_v2, %v4246_v2  ;;  %s16102_s12 = sld [smem:[#allocation71_spill]] }
 0xcdb   : > { %11763 = vmatmul.mubr.msk.bf16.vlgmr.msra.gmra.mrb[56].mxu0 %vm16081_vm12, %v4248_v4  ;;  %11775 = vmatmul.mubr.msk.bf16.vlgmr.msra.gmra.mrb[40].mxu1 %vm16082_vm15, %v4248_v4  ;;  %vm16084_vm15 = vmmov %vm16080_vm2  ;;  %vm16087_vm2 = vnez %v16045_v21  ;;  %vm16088_vm12 = vnez %v16049_v30 }
 0xcdc   : > { %11780 = vmatprep.mubr.msk.f32.mxu0 %vm16076_vm14, %v14028_v28  ;;  %11797 = vmatprep.mubr.msk.f32.mxu1 %vm16076_vm14, %v14028_v28 }
 0xdae   : > { %v4318_v52 = vpop.f32.mrb[56].mxu0  ;;  %v4400_v60 = vpop.f32.mrb[40].mxu1 }
 0xdaf   : > { %v11764_v6 = vpop.f32.mrb[57].mxu0  ;;  %v11776_v26 = vpop.f32.mrb[41].mxu1  ;;  %11779 = vmatpush3.msra.mxu0 %v4318_v52  ;;  %11796 = vmatpush3.msra.mxu1 %v4400_v60  ;;  %v13161_v60 = vld [vmem:[%s16083_s13 + $0x40] sm:$0xff]  }
 0xdb0   : > { %v4321_v7 = vpop.f32.mrb[58].mxu0  ;;  %v4403_v8 = vpop.f32.mrb[42].mxu1  ;;  %11781 = vmatmul.mubr.msk.f32.vlgmr.msra.gmra.mrb[54].mxu0 %vm15945_vm5, %v14634_v29  ;;  %11783 = vmatprep.subr.bf16.mxu0 %v14028_v28  ;;  %v13162_v26 = vld [vmem:[%s16083_s13 + $0x48] sm:$0xff]  }
 0xdb1   : > { %v11765_v10 = vpop.f32.mrb[59].mxu0  ;;  %v11777_v53 = vpop.f32.mrb[43].mxu1  ;;  %11784 = vmatpush3.bf16.msra.mxu0 %v13141_v5  ;;  %11791 = vmatprep.mubr.msk.bf16.mxu0 %vm16076_vm14, %v14028_v28  ;;  %v13163_v7 = vld [vmem:[%s16083_s13 + $0x50] sm:$0xff]   ;;  %v13164_v8 = vld [vmem:[%s16083_s13 + $0x58] sm:$0xff]  }
 0xdb2   : > { %11785 = vmatprep.subr.bf16.mxu0 %v14028_v28  ;;  %11798 = vmatmul.mubr.msk.f32.vlgmr.msra.gmra.mrb[38].mxu1 %vm15945_vm5, %v14674_v57  ;;  %v13166_v10 = vld [vmem:[%s16083_s13 + $0x68] sm:$0xff]   ;;  %v13167_v53 = vld [vmem:[%s16083_s13 + $0x70] sm:$0xff]  }
 0xdb3   : > { %11800 = vmatprep.subr.bf16.mxu1 %v14028_v28  ;;  %11816 = vmatprep.mubr.msk.bf16.mxu1 %vm16076_vm14, %v14028_v28 }
 0xdb4   : > { %11801 = vmatpush3.bf16.msra.mxu1 %v13146_v9  ;;  %v13165_v9 = vld [vmem:[%s16083_s13 + $0x60] sm:$0xff]  }
 0xdb5   : > { %11786 = vmatpush3.bf16.msra.mxu0 %v13142_v11  ;;  %11802 = vmatprep.subr.bf16.mxu1 %v14028_v28  ;;  %v13168_v11 = vld [vmem:[%s16083_s13 + $0x78] sm:$0xff]  }
 0xdb6   : > { %11787 = vmatprep.subr.bf16.mxu0 %v14028_v28 }
 0xdb8   : > { %11803 = vmatpush3.bf16.msra.mxu1 %v13148_v17  ;;  %v13178_v17 = vld [vmem:[#allocation7 + $0xa0] sm:$0xff]  }
 0xdb9   : > { %11788 = vmatpush3.bf16.msra.mxu0 %v13143_v56  ;;  %11804 = vmatprep.subr.bf16.mxu1 %v14028_v28  ;;  %v13170_v56 = vld [vmem:[#allocation7 + $0x80] sm:$0xff]  }
 0xdba   : > { %11789 = vmatprep.subr.bf16.mxu0 %v14028_v28 }
 0xdbc   : > { %11805 = vmatpush3.bf16.msra.mxu1 %v13150_v24 }
 0xdbd   : > { %11790 = vmatpush3.bf16.msra.mxu0 %v13144_v12  ;;  %11806 = vmatprep.subr.bf16.mxu1 %v14028_v28  ;;  %v13172_v12 = vld [vmem:[#allocation7 + $0x88] sm:$0xff]  }
 0xdbe   : > { %11820 = vmatprep.subr.bf16.mxu0 %v14028_v28 }
 0xdc0   : > { %11792 = vmatmul.mubr.msk.bf16.vlgmr.msra.gmra.mrb[60].mxu0 %vm16084_vm15, %v4248_v4  ;;  %11807 = vmatpush3.bf16.msra.mxu1 %v13152_v37  ;;  %vm16089_vm15 = vnez %v16053_v35 }
 0xdc1   : > { %11821 = vmatpush3.bf16.msra.mxu0 %v13145_v13  ;;  %11836 = vmatprep.mubr.msk.bf16.mxu0 %vm16076_vm14, %v14028_v28  ;;  %v13174_v13 = vld [vmem:[#allocation7 + $0x90] sm:$0xff]  }
 0xdc2   : > { %11822 = vmatprep.subr.bf16.mxu0 %v14028_v28  ;;  %11808 = vmatprep.subr.bf16.mxu1 %v14028_v28 }
 0xdc4   : > { %11809 = vmatpush3.bf16.msra.mxu1 %v13154_v41 }
 0xdc5   : > { %11823 = vmatpush3.bf16.msra.mxu0 %v13147_v14  ;;  %11810 = vmatprep.subr.bf16.mxu1 %v14028_v28  ;;  %v13176_v14 = vld [vmem:[#allocation7 + $0x98] sm:$0xff]  }
 0xdc6   : > { %11824 = vmatprep.subr.bf16.mxu0 %v14028_v28 }
 0xdc8   : > { %11811 = vmatpush3.bf16.msra.mxu1 %v13156_v46 }
 0xdc9   : > { %11825 = vmatpush3.bf16.msra.mxu0 %v13149_v18  ;;  %11812 = vmatprep.subr.bf16.mxu1 %v14028_v28 }
 0xdca   : > { %11826 = vmatprep.subr.bf16.mxu0 %v14028_v28 }
 0xdcc   : > { %11813 = vmatpush3.bf16.msra.mxu1 %v13158_v48  ;;  %v13171_v48 = vld [vmem:[#allocation7 + $0x8] sm:$0xff]  }
 0xdcd   : > { %11827 = vmatpush3.bf16.msra.mxu0 %v13151_v32  ;;  %11814 = vmatprep.subr.bf16.mxu1 %v14028_v28 }
 0xdce   : > { %11828 = vmatprep.subr.bf16.mxu0 %v14028_v28 }
 0xdd0   : > { %11815 = vmatpush3.bf16.msra.mxu1 %v13160_v50  ;;  %v13175_v50 = vld [vmem:[#allocation7 + $0x18] sm:$0xff]  }
 0xdd1   : > { %11829 = vmatpush3.bf16.msra.mxu0 %v13153_v38  ;;  %11840 = vmatprep.subr.mxu1 %v14028_v28 }
 0xdd2   : > { %11830 = vmatprep.subr.bf16.mxu0 %v14028_v28 }
 0xdd5   : > { %11831 = vmatpush3.bf16.msra.mxu0 %v13155_v42 }
 0xdd6   : > { %11832 = vmatprep.subr.bf16.mxu0 %v14028_v28 }
 0xdd9   : > { %11833 = vmatpush3.bf16.msra.mxu0 %v13157_v47  ;;  %v13169_v47 = vld [vmem:[#allocation7] sm:$0xff]  }
 0xdda   : > { %11834 = vmatprep.subr.bf16.mxu0 %v14028_v28 }
 0xddd   : > { %11835 = vmatpush3.bf16.msra.mxu0 %v13159_v49  ;;  %v13173_v49 = vld [vmem:[#allocation7 + $0x10] sm:$0xff]  }
 0xdde   : > { %11845 = vmatprep.subr.bf16.mxu0 %v14028_v28 }
 0xe83   : > { %v4475_v51 = vpop.f32.mrb[54].mxu0 }
 0xe84   : > { %v11782_v54 = vpop.f32.mrb[55].mxu0 }
 0xe85   : > { %v4611_v55 = vpop.f32.mrb[38].mxu1 }
 0xe86   : > { %v11799_v58 = vpop.f32.mrb[39].mxu1 }
 0xe93   : > { %v4537_v59 = vpop.f32.mrb[60].mxu0 }
 0xe94   : > { %v4538_v62 = vadd.f32 %v4537_v59, %v4475_v51  ;;  %v11793_v34 = vpop.f32.mrb[61].mxu0  ;;  %v13177_v51 = vld [vmem:[#allocation7 + $0x20] sm:$0xff]  }
 0xe95   : > { %v4540_v2 = vpop.f32.mrb[62].mxu0  ;;  %v13180_v34 = vld [vmem:[#allocation7 + $0xa8] sm:$0xff]  }
 0xe96   : > { %v4615_v3 = vadd.f32 %v4611_v55, %v4538_v62  ;;  %v11794_v4 = vpop.f32.mrb[63].mxu0  ;;  %v13179_v62 = vld [vmem:[#allocation7 + $0x28] sm:$0xff]   ;;  %v13182_v2 = vld [vmem:[#allocation7 + $0xb0] sm:$0xff]  }
 0xe97   : > { %v13184_v4 = vld [vmem:[#allocation7 + $0xb8] sm:$0xff]  }
 0xe98   : > { %v4623_v5 = vadd.f32 %v10331_v1, %v4615_v3  ;;  %v13181_v1 = vld [vmem:[#allocation7 + $0x30] sm:$0xff]   ;;  %v13183_v3 = vld [vmem:[#allocation7 + $0x38] sm:$0xff]  }
 0xe9a   : > { %v4624_v52 = vmax.f32 %v4623_v5, 0.0 }
 0xe9c   : > { %v4625_v6 = vpack.c.bf16 %v4624_v52, %v4624_v52 }
 0xe9e   : > { %11817 = vmatmul.mubr.bf16.vlgmr.msra.gmra.mrb[44].mxu1 %v4625_v6  ;;  %11837 = vmatmul.mubr.bf16.vlgmr.msra.gmra.mrb[64].mxu0 %v4625_v6 }
 0xe9f   : > { %11846 = vmatpush3.bf16.msra.mxu0 %v13161_v60  ;;  %11861 = vmatprep.mubr.msk.bf16.mxu0 %vm16076_vm14, %v14028_v28 }
 0xea0   : > { %11847 = vmatprep.subr.bf16.mxu0 %v14028_v28  ;;  %11842 = vmatprep.mubr.msk.f32.mxu1 %vm16076_vm14, %v14028_v28 }
 0xea3   : > { %11848 = vmatpush3.bf16.msra.mxu0 %v13162_v26  ;;  %v10390_v26 = vld [vmem:[%s16086_s23] ss:$0 sm:$0xff]  ;;  %s1504_s23 = scalar_lea.vmem %s16102_s12, %s15615_s16  ;;  %s16114_s12 = smov %s16113_s28 }
 0xea4   : > { %11849 = vmatprep.subr.bf16.mxu0 %v14028_v28 }
 0xea7   : > { %11850 = vmatpush3.bf16.msra.mxu0 %v13163_v7 }
 0xea8   : > { %11851 = vmatprep.subr.bf16.mxu0 %v14028_v28 }
 0xeab   : > { %11852 = vmatpush3.bf16.msra.mxu0 %v13164_v8 }
 0xeac   : > { %11853 = vmatprep.subr.bf16.mxu0 %v14028_v28 }
 0xeaf   : > { %11854 = vmatpush3.bf16.msra.mxu0 %v13165_v9 }
 0xeb0   : > { %11855 = vmatprep.subr.bf16.mxu0 %v14028_v28 }
 0xeb3   : > { %11856 = vmatpush3.bf16.msra.mxu0 %v13166_v10 }
 0xeb4   : > { %11857 = vmatprep.subr.bf16.mxu0 %v14028_v28 }
 0xeb7   : > { %11858 = vmatpush3.bf16.msra.mxu0 %v13167_v53 }
 0xeb8   : > { %11859 = vmatprep.subr.bf16.mxu0 %v14028_v28 }
 0xebb   : > { %11860 = vmatpush3.bf16.msra.mxu0 %v13168_v11  ;;  %v13185_v11 = vld [vmem:[#allocation7 + $0x40] sm:$0xff]  }
 0xebc   : > { %11890 = vmatprep.subr.bf16.mxu0 %v14028_v28 }
 0xebe   : > { %11862 = vmatmul.mubr.bf16.vlgmr.msra.gmra.mrb[68].mxu0 %v4625_v6 }
 0xebf   : > { %11906 = vmatprep.mubr.msk.bf16.mxu0 %vm16076_vm14, %v14028_v28  ;;  %11891 = vmatpush3.bf16.msra.mxu0 %v13170_v56 }
 0xec0   : > { %11892 = vmatprep.subr.bf16.mxu0 %v14028_v28 }
 0xec3   : > { %11893 = vmatpush3.bf16.msra.mxu0 %v13172_v12 }
 0xec4   : > { %11894 = vmatprep.subr.bf16.mxu0 %v14028_v28 }
 0xec7   : > { %11895 = vmatpush3.bf16.msra.mxu0 %v13174_v13 }
 0xec8   : > { %11896 = vmatprep.subr.bf16.mxu0 %v14028_v28 }
 0xecb   : > { %11897 = vmatpush3.bf16.msra.mxu0 %v13176_v14 }
 0xecc   : > { %11898 = vmatprep.subr.bf16.mxu0 %v14028_v28 }
 0xecf   : > { %11899 = vmatpush3.bf16.msra.mxu0 %v13178_v17 }
 0xed0   : > { %11900 = vmatprep.subr.bf16.mxu0 %v14028_v28 }
 0xed3   : > { %11901 = vmatpush3.bf16.msra.mxu0 %v13180_v34 }
 0xed4   : > { %11902 = vmatprep.subr.bf16.mxu0 %v14028_v28 }
 0xed7   : > { %11903 = vmatpush3.bf16.msra.mxu0 %v13182_v2 }
 0xed8   : > { %11904 = vmatprep.subr.bf16.mxu0 %v14028_v28 }
 0xedb   : > { %11905 = vmatpush3.bf16.msra.mxu0 %v13184_v4 }
 0xedc   : > { %11935 = vmatprep.subr.mxu0 %v14028_v28 }
 0xf71   : > { %v4724_v18 = vpop.f32.mrb[44].mxu1  ;;  %v4846_v24 = vpop.f32.mrb[64].mxu0 }
 0xf72   : > { %v11818_v32 = vpop.f32.mrb[45].mxu1  ;;  %v11838_v37 = vpop.f32.mrb[65].mxu0  ;;  %11841 = vmatpush3.msra.mxu1 %v4724_v18 }
 0xf73   : > { %v4727_v38 = vpop.f32.mrb[46].mxu1  ;;  %v4849_v41 = vpop.f32.mrb[66].mxu0  ;;  %11843 = vmatmul.mubr.msk.f32.vlgmr.msra.gmra.mrb[48].mxu1 %vm15945_vm5, %v14634_v29  ;;  %11865 = vmatprep.subr.mxu1 %v14028_v28  ;;  %v13186_v37 = vld [vmem:[#allocation7 + $0x48] sm:$0xff]  }
 0xf74   : > { %v11819_v42 = vpop.f32.mrb[47].mxu1  ;;  %v11839_v46 = vpop.f32.mrb[67].mxu0  ;;  %11866 = vmatpush3.msra.mxu1 %v4846_v24  ;;  %11867 = vmatprep.mubr.msk.f32.mxu1 %vm16076_vm14, %v14028_v28  ;;  %v13187_v38 = vld [vmem:[#allocation7 + $0x50] sm:$0xff]   ;;  %v13188_v41 = vld [vmem:[#allocation7 + $0x58] sm:$0xff]  }
 0xf75   : > { %11870 = vmatprep.subr.bf16.mxu1 %v14028_v28  ;;  %v13189_v42 = vld [vmem:[#allocation7 + $0x60] sm:$0xff]   ;;  %v13190_v46 = vld [vmem:[#allocation7 + $0x68] sm:$0xff]  }
 0xf77   : > { %11868 = vmatmul.mubr.msk.f32.vlgmr.msra.gmra.mrb[50].mxu1 %vm15945_vm5, %v14674_v57 }
 0xf78   : > { %11871 = vmatpush3.bf16.msra.mxu1 %v13169_v47  ;;  %11886 = vmatprep.mubr.msk.bf16.mxu1 %vm16076_vm14, %v14028_v28  ;;  %v13191_v47 = vld [vmem:[#allocation7 + $0x70] sm:$0xff]  }
 0xf79   : > { %11872 = vmatprep.subr.bf16.mxu1 %v14028_v28 }
 0xf7c   : > { %11873 = vmatpush3.bf16.msra.mxu1 %v13171_v48  ;;  %v13192_v48 = vld [vmem:[#allocation7 + $0x78] sm:$0xff]  }
 0xf7d   : > { %11874 = vmatprep.subr.bf16.mxu1 %v14028_v28 }
 0xf80   : > { %11875 = vmatpush3.bf16.msra.mxu1 %v13173_v49 }
 0xf81   : > { %11876 = vmatprep.subr.bf16.mxu1 %v14028_v28 }
 0xf84   : > { %11877 = vmatpush3.bf16.msra.mxu1 %v13175_v50 }
 0xf85   : > { %11878 = vmatprep.subr.bf16.mxu1 %v14028_v28 }
 0xf88   : > { %11879 = vmatpush3.bf16.msra.mxu1 %v13177_v51 }
 0xf89   : > { %11880 = vmatprep.subr.bf16.mxu1 %v14028_v28 }
 0xf8c   : > { %11881 = vmatpush3.bf16.msra.mxu1 %v13179_v62  ;;  %v10417_v62 = vld [vmem:[#allocation8] ss:$0 sm:$0xff] }
 0xf8d   : > { %11882 = vmatprep.subr.bf16.mxu1 %v14028_v28 }
 0xf90   : > { %11883 = vmatpush3.bf16.msra.mxu1 %v13181_v1 }
 0xf91   : > { %v5004_v54 = vpop.f32.mrb[68].mxu0  ;;  %11884 = vmatprep.subr.bf16.mxu1 %v14028_v28 }
 0xf92   : > { %v11863_v55 = vpop.f32.mrb[69].mxu0 }
 0xf93   : > { %v5007_v58 = vpop.f32.mrb[70].mxu0 }
 0xf94   : > { %v11864_v59 = vpop.f32.mrb[71].mxu0  ;;  %11885 = vmatpush3.bf16.msra.mxu1 %v13183_v3 }
 0xf95   : > { %11910 = vmatprep.subr.mxu1 %v14028_v28 }
0x1046   : > { %v4918_v5 = vpop.f32.mrb[48].mxu1 }
0x1047   : > { %v5005_v52 = vadd.f32 %v5004_v54, %v4918_v5  ;;  %v11844_v60 = vpop.f32.mrb[49].mxu1  ;;  %v13193_v5 = vld [vmem:[#allocation10 + $0x40] sm:$0xff]  }
0x104a   : > { %v5076_v6 = vpop.f32.mrb[50].mxu1 }
0x104b   : > { %v5080_v7 = vadd.f32 %v5076_v6, %v5005_v52  ;;  %v11869_v8 = vpop.f32.mrb[51].mxu1  ;;  %v13195_v52 = vld [vmem:[#allocation10 + $0x48] sm:$0xff]  }
0x104d   : > { %v5088_v9 = vadd.f32 %v10390_v26, %v5080_v7 }
0x104f   : > { %v5089_v10 = vmax.f32 %v5088_v9, 0.0  ;;  %v13194_v9 = vld [vmem:[#allocation10] sm:$0xff]  }
0x1051   : > { %v5090_v53 = vpack.c.bf16 %v5089_v10, %v5089_v10  ;;  %v13196_v10 = vld [vmem:[#allocation10 + $0x8] sm:$0xff]  }
0x1053   : > { %11887 = vmatmul.mubr.bf16.vlgmr.msra.gmra.mrb[52].mxu1 %v5090_v53  ;;  %11907 = vmatmul.mubr.bf16.vlgmr.msra.gmra.mrb[72].mxu0 %v5090_v53 }
0x1054   : > { %11912 = vmatprep.mubr.msk.f32.mxu1 %vm16076_vm14, %v14028_v28  ;;  %11937 = vmatprep.mubr.msk.f32.mxu0 %vm16076_vm14, %v14028_v28 }
0x1126   : > { %v5189_v56 = vpop.f32.mrb[52].mxu1  ;;  %v5311_v12 = vpop.f32.mrb[72].mxu0 }
0x1127   : > { %v11888_v13 = vpop.f32.mrb[53].mxu1  ;;  %v11908_v14 = vpop.f32.mrb[73].mxu0  ;;  %11911 = vmatpush3.msra.mxu1 %v5189_v56  ;;  %11936 = vmatpush3.msra.mxu0 %v5311_v12  ;;  %v13199_v56 = vld [vmem:[#allocation10 + $0x58] sm:$0xff]  }
0x1128   : > { %v5192_v17 = vpop.f32.mrb[54].mxu1  ;;  %v5314_v18 = vpop.f32.mrb[74].mxu0  ;;  %11913 = vmatmul.mubr.msk.f32.vlgmr.msra.gmra.mrb[56].mxu1 %vm15945_vm5, %v14634_v29  ;;  %11915 = vmatprep.subr.bf16.mxu1 %v14028_v28  ;;  %v13200_v12 = vld [vmem:[#allocation10 + $0x18] sm:$0xff]  }
0x1129   : > { %v11889_v24 = vpop.f32.mrb[55].mxu1  ;;  %v11909_v32 = vpop.f32.mrb[75].mxu0  ;;  %11916 = vmatpush3.bf16.msra.mxu1 %v13185_v11  ;;  %11931 = vmatprep.mubr.msk.bf16.mxu1 %vm16076_vm14, %v14028_v28  ;;  %v13198_v11 = vld [vmem:[#allocation10 + $0x10] sm:$0xff]  }
0x112a   : > { %11917 = vmatprep.subr.bf16.mxu1 %v14028_v28  ;;  %11938 = vmatmul.mubr.msk.f32.vlgmr.msra.gmra.mrb[76].mxu0 %vm15945_vm5, %v14674_v57  ;;  %vm16090_vm5 = vnez %v16057_v40  ;;  %v13201_v32 = vld [vmem:[#allocation10 + $0x20] sm:$0xff]  }
0x112b   : > { %12670 = vmatprep.subr.bf16.mxu0 %v14031_v31  ;;  %11972 = vmatprep.mubr.msk.f32.mxu0 %vm16076_vm14, %v14028_v28 }
0x112c   : > { %12672 = vmatpush3.bf16.msk.msra.mxu0 %vm14751_vm13, %v14029_v63 }
0x112d   : > { %11918 = vmatpush3.bf16.msra.mxu1 %v13186_v37  ;;  %12673 = vmatprep.subr.bf16.mxu0 %v14031_v31 }
0x112e   : > { %11919 = vmatprep.subr.bf16.mxu1 %v14028_v28 }
0x1130   : > { %12675 = vmatpush3.bf16.msk.msra.mxu0 %vm14766_vm4, %v14029_v63 }
0x1131   : > { %11920 = vmatpush3.bf16.msra.mxu1 %v13187_v38  ;;  %12676 = vmatprep.subr.bf16.mxu0 %v14031_v31  ;;  %v13202_v38 = vld [vmem:[#allocation10 + $0x28] sm:$0xff]  }
0x1132   : > { %11921 = vmatprep.subr.bf16.mxu1 %v14028_v28 }
0x1134   : > { %12678 = vmatpush3.bf16.msk.msra.mxu0 %vm14802_vm11, %v14029_v63 }
0x1135   : > { %11922 = vmatpush3.bf16.msra.mxu1 %v13188_v41  ;;  %12679 = vmatprep.subr.bf16.mxu0 %v14031_v31  ;;  %v13203_v41 = vld [vmem:[#allocation10 + $0x30] sm:$0xff]  }
0x1136   : > { %11923 = vmatprep.subr.bf16.mxu1 %v14028_v28 }
0x1138   : > { %12681 = vmatpush3.bf16.msk.msra.mxu0 %vm16070_vm6, %v14029_v63 }
0x1139   : > { %11924 = vmatpush3.bf16.msra.mxu1 %v13189_v42  ;;  %12682 = vmatprep.subr.bf16.mxu0 %v14031_v31  ;;  %v13204_v42 = vld [vmem:[#allocation10 + $0x38] sm:$0xff]  }
0x113a   : > { %11925 = vmatprep.subr.bf16.mxu1 %v14028_v28 }
0x113c   : > { %12684 = vmatpush3.bf16.msk.msra.mxu0 %vm16071_vm9, %v14029_v63 }
0x113d   : > { %11926 = vmatpush3.bf16.msra.mxu1 %v13190_v46  ;;  %12685 = vmatprep.subr.bf16.mxu0 %v14031_v31  ;;  %v13205_v46 = vld [vmem:[#allocation13 + $0x80] sm:$0xff]  }
0x113e   : > { %11927 = vmatprep.subr.bf16.mxu1 %v14028_v28 }
0x1140   : > { %12687 = vmatpush3.bf16.msk.msra.mxu0 %vm16072_vm10, %v14029_v63 }
0x1141   : > { %11928 = vmatpush3.bf16.msra.mxu1 %v13191_v47  ;;  %12688 = vmatprep.subr.bf16.mxu0 %v14031_v31  ;;  %v13207_v47 = vld [vmem:[#allocation13 + $0x88] sm:$0xff]  }
0x1142   : > { %11929 = vmatprep.subr.bf16.mxu1 %v14028_v28 }
0x1144   : > { %12690 = vmatpush3.bf16.msk.msra.mxu0 %vm16074_vm0, %v14029_v63 }
0x1145   : > { %11930 = vmatpush3.bf16.msra.mxu1 %v13192_v48  ;;  %12691 = vmatprep.subr.bf16.mxu0 %v14031_v31  ;;  %v13209_v48 = vld [vmem:[#allocation13 + $0x90] sm:$0xff]  }
0x1146   : > { %12694 = vmatprep.subr.bf16.mxu1 %v14031_v31 }
0x1148   : > { %11932 = vmatmul.mubr.bf16.vlgmr.msra.gmra.mrb[60].mxu1 %v5090_v53  ;;  %12693 = vmatpush3.bf16.msk.msra.mxu0 %vm16075_vm3, %v14029_v63  ;;  %v13197_v53 = vld [vmem:[#allocation10 + $0x50] sm:$0xff]  }
0x1149   : > { %12696 = vmatpush3.bf16.msk.msra.mxu1 %vm14774_vm7, %v14029_v63  ;;  %12007 = vmatprep.mubr.msk.f32.mxu1 %vm16076_vm14, %v14028_v28 }
0x114a   : > { %12697 = vmatprep.subr.bf16.mxu1 %v14031_v31  ;;  %12010 = vmatprep.subr.mxu0 %v14028_v28 }
0x114d   : > { %12699 = vmatpush3.bf16.msk.msra.mxu1 %vm14789_vm8, %v14029_v63 }
0x114e   : > { %12700 = vmatprep.subr.bf16.mxu1 %v14031_v31 }
0x1151   : > { %12702 = vmatpush3.bf16.msk.msra.mxu1 %vm14814_vm1, %v14029_v63 }
0x1152   : > { %12703 = vmatprep.subr.bf16.mxu1 %v14031_v31 }
0x1155   : > { %12705 = vmatpush3.bf16.msk.msra.mxu1 %vm16087_vm2, %v14029_v63  ;;  %vm16091_vm2 = vnez %v16061_v44 }
0x1156   : > { %12706 = vmatprep.subr.bf16.mxu1 %v14031_v31 }
0x1159   : > { %12708 = vmatpush3.bf16.msk.msra.mxu1 %vm16088_vm12, %v14029_v63 }
0x115a   : > { %12709 = vmatprep.subr.bf16.mxu1 %v14031_v31 }
0x115d   : > { %12711 = vmatpush3.bf16.msk.msra.mxu1 %vm16089_vm15, %v14029_v63 }
0x115e   : > { %12712 = vmatprep.subr.bf16.mxu1 %v14031_v31 }
0x1161   : > { %12714 = vmatpush3.bf16.msk.msra.mxu1 %vm16090_vm5, %v14029_v63 }
0x1162   : > { %12715 = vmatprep.subr.bf16.mxu1 %v14031_v31 }
0x1165   : > { %12717 = vmatpush3.bf16.msk.msra.mxu1 %vm16091_vm2, %v14029_v63  ;;  %vm16092_vm2 = vcmask 64512  }
0x1166   : > { %12032 = vmatprep.subr.bf16.mxu1 %v14028_v28  ;;  %vm16093_vm5 = vmmov %vm16092_vm2 }
0x11fb   : > { %v5383_v49 = vpop.f32.mrb[56].mxu1 }
0x11fc   : > { %v11914_v50 = vpop.f32.mrb[57].mxu1 }
0x11fd   : > { %v5541_v51 = vpop.f32.mrb[76].mxu0  ;;  %v13213_v50 = vld [vmem:[#allocation13 + $0xa0] sm:$0xff]  }
0x11fe   : > { %v11939_v54 = vpop.f32.mrb[77].mxu0 }
0x121b   : > { %v5469_v55 = vpop.f32.mrb[60].mxu1 }
0x121c   : > { %v5470_v58 = vadd.f32 %v5469_v55, %v5383_v49  ;;  %v11933_v59 = vpop.f32.mrb[61].mxu1  ;;  %v13211_v49 = vld [vmem:[#allocation13 + $0x98] sm:$0xff]  }
0x121d   : > { %v5472_v34 = vpop.f32.mrb[62].mxu1 }
0x121e   : > { %v5545_v1 = vadd.f32 %v5541_v51, %v5470_v58  ;;  %v11934_v2 = vpop.f32.mrb[63].mxu1 }
0x121f   : > { %v13206_v2 = vld [vmem:[#allocation13] sm:$0xff]  }
0x1220   : > { %v5553_v3 = vadd.f32 %v10417_v62, %v5545_v1 }
0x1222   : > { %v5554_v4 = vmax.f32 %v5553_v3, 0.0  ;;  %v13208_v3 = vld [vmem:[#allocation13 + $0x8] sm:$0xff]  }
0x1224   : > { %11973 = vmatmul.mubr.f32.vlgmr.msra.gmra.mrb[78].mxu0 %v5554_v4  ;;  %12008 = vmatmul.mubr.f32.vlgmr.msra.gmra.mrb[58].mxu1 %v5554_v4  ;;  %v13210_v4 = vld [vmem:[#allocation13 + $0x10] sm:$0xff]  }
0x1225   : > { %12012 = vmatprep.mubr.msk.f32.mxu0 %vm16076_vm14, %v14028_v28  ;;  %12040 = vmatprep.mubr.msk.bf16.mxu1 %vm16076_vm14, %v14028_v28 }
0x1226   : > { %12033 = vmatpush3.bf16.msra.mxu1 %v13193_v5  ;;  %v13212_v5 = vld [vmem:[#allocation13 + $0x18] sm:$0xff]  }
0x1227   : > { %12034 = vmatprep.subr.bf16.mxu1 %v14028_v28 }
0x122a   : > { %12035 = vmatpush3.bf16.msra.mxu1 %v13195_v52 }
0x122b   : > { %12036 = vmatprep.subr.bf16.mxu1 %v14028_v28 }
0x122e   : > { %12037 = vmatpush3.bf16.msra.mxu1 %v13197_v53  ;;  %v13218_v53 = vld [vmem:[#allocation13 + $0x30] sm:$0xff]  }
0x122f   : > { %12038 = vmatprep.subr.bf16.mxu1 %v14028_v28 }
0x1232   : > { %12039 = vmatpush3.bf16.msra.mxu1 %v13199_v56  ;;  %v13220_v56 = vld [vmem:[#allocation13 + $0x38] sm:$0xff]  }
0x1233   : > { %12049 = vmatprep.subr.bf16.mxu1 %v14028_v28 }
0x12f7   : > { %v5621_v60 = vpop.f32.mrb[78].mxu0  ;;  %v5691_v6 = vpop.f32.mrb[58].mxu1 }
0x12f8   : > { %v5695_v26 = vmax.f32 %v5621_v60, %v5691_v6  ;;  %v11974_v7 = vpop.f32.mrb[79].mxu0  ;;  %v12009_v8 = vpop.f32.mrb[59].mxu1 }
0x12f9   : > { %v13214_v7 = vld [vmem:[#allocation13 + $0x20] sm:$0xff]   ;;  %v13215_v8 = vld [vmem:[#allocation13 + $0xa8] sm:$0xff]  }
0x12fa   : > { %12011 = vmatpush3.msra.mxu0 %v5695_v26 }
0x12fb   : > { %12013 = vmatmul.mubr.msk.f32.vlgmr.msra.gmra.mrb[80].mxu0 %vm16092_vm2, %v14964_v22  ;;  %12015 = vmatprep.subr.mxu0 %v14028_v28  ;;  %vm16095_vm2 = vcmask 523264  }
0x12fc   : > { %12016 = vmatpush3.msra.mxu0 %v5695_v26  ;;  %12017 = vmatprep.mubr.msk.f32.mxu0 %vm16076_vm14, %v14028_v28  ;;  %vm16096_vm15 = vmmov %vm16095_vm2 }
0x12fd   : > { %12020 = vmatprep.subr.bf16.mxu0 %v14028_v28 }
0x12ff   : > { %12018 = vmatmul.mubr.msk.f32.vlgmr.msra.gmra.mrb[82].mxu0 %vm16093_vm5, %v14974_v0  ;;  %vm5841_vm5 = vcmask 519168  }
0x1300   : > { %12021 = vmatpush3.bf16.msra.mxu0 %v13194_v9  ;;  %12028 = vmatprep.mubr.msk.bf16.mxu0 %vm16076_vm14, %v14028_v28  ;;  %v13216_v9 = vld [vmem:[#allocation13 + $0x28] sm:$0xff]  }
0x1301   : > { %12022 = vmatprep.subr.bf16.mxu0 %v14028_v28 }
0x1304   : > { %12023 = vmatpush3.bf16.msra.mxu0 %v13196_v10  ;;  %v13217_v10 = vld [vmem:[#allocation13 + $0xb0] sm:$0xff]  }
0x1305   : > { %12024 = vmatprep.subr.bf16.mxu0 %v14028_v28 }
0x1308   : > { %12025 = vmatpush3.bf16.msra.mxu0 %v13198_v11  ;;  %v13219_v11 = vld [vmem:[#allocation13 + $0xb8] sm:$0xff]  }
0x1309   : > { %12026 = vmatprep.subr.bf16.mxu0 %v14028_v28 }
0x130c   : > { %12027 = vmatpush3.bf16.msra.mxu0 %v13200_v12 }
0x130d   : > { %12044 = vmatprep.subr.mxu0 %v14028_v28 }
0x13ce   : > { %v5764_v13 = vpop.f32.mrb[80].mxu0 }
0x13cf   : > { %v12014_v14 = vpop.f32.mrb[81].mxu0 }
0x13d2   : > { %v5836_v17 = vpop.f32.mrb[82].mxu0 }
0x13d3   : > { %v5840_v18 = vmax.f32 %v5764_v13, %v5836_v17  ;;  %v12019_v24 = vpop.f32.mrb[83].mxu0 }
0x13d5   : > { %5842 = vst.msk [vmem:[%s1500_s2] sm:$0xf] %vm5841_vm5, %v5840_v18  ;;  %v5843_v37 = vpack.c.bf16 %v5840_v18, %v5840_v18  ;;  %vm6004_vm5 = vcmask 1043456   ;;  %v10471_v18 = vld [vmem:[#allocation11] ss:$0 sm:$0xff]  ;;  %s15946_s2 = scalar_lea.vmem [#allocation29], %s15780_s0 }
0x13d7   : > { %12029 = vmatmul.mubr.msk.bf16.vlgmr.msra.gmra.mrb[84].mxu0 %vm16095_vm2, %v5843_v37  ;;  %12041 = vmatmul.mubr.msk.bf16.vlgmr.msra.gmra.mrb[64].mxu1 %vm16096_vm15, %v5843_v37  ;;  %vm16097_vm15 = vmmov %vm16095_vm2  ;;  %vm6001_vm2 = vcmask 31744  }
0x13d8   : > { %12050 = vmatpush3.bf16.msra.mxu1 %v13201_v32  ;;  %12057 = vmatprep.mubr.msk.bf16.mxu1 %vm16076_vm14, %v14028_v28 }
0x13d9   : > { %12051 = vmatprep.subr.bf16.mxu1 %v14028_v28  ;;  %12046 = vmatprep.mubr.msk.f32.mxu0 %vm16076_vm14, %v14028_v28 }
0x13dc   : > { %12052 = vmatpush3.bf16.msra.mxu1 %v13202_v38 }
0x13dd   : > { %12053 = vmatprep.subr.bf16.mxu1 %v14028_v28 }
0x13e0   : > { %12054 = vmatpush3.bf16.msra.mxu1 %v13203_v41  ;;  %v13221_v41 = vld [vmem:[#allocation13 + $0x40] sm:$0xff]  }
0x13e1   : > { %12055 = vmatprep.subr.bf16.mxu1 %v14028_v28 }
0x13e4   : > { %12056 = vmatpush3.bf16.msra.mxu1 %v13204_v42 }
0x13e5   : > { %12086 = vmatprep.subr.bf16.mxu1 %v14028_v28 }
0x13e7   : > { %12058 = vmatmul.mubr.msk.bf16.vlgmr.msra.gmra.mrb[68].mxu1 %vm16097_vm15, %v5843_v37 }
0x13e8   : > { %12102 = vmatprep.mubr.msk.bf16.mxu1 %vm16076_vm14, %v14028_v28  ;;  %12087 = vmatpush3.bf16.msra.mxu1 %v13205_v46  ;;  %v13222_v46 = vld [vmem:[#allocation13 + $0x48] sm:$0xff]  }
0x13e9   : > { %12088 = vmatprep.subr.bf16.mxu1 %v14028_v28 }
0x13ec   : > { %12089 = vmatpush3.bf16.msra.mxu1 %v13207_v47  ;;  %v13223_v47 = vld [vmem:[#allocation13 + $0x50] sm:$0xff]  }
0x13ed   : > { %12090 = vmatprep.subr.bf16.mxu1 %v14028_v28 }
0x13f0   : > { %12091 = vmatpush3.bf16.msra.mxu1 %v13209_v48  ;;  %v13224_v48 = vld [vmem:[#allocation13 + $0x58] sm:$0xff]  }
0x13f1   : > { %12092 = vmatprep.subr.bf16.mxu1 %v14028_v28 }
0x13f4   : > { %12093 = vmatpush3.bf16.msra.mxu1 %v13211_v49  ;;  %v13225_v49 = vld [vmem:[#allocation13 + $0x60] sm:$0xff]  }
0x13f5   : > { %12094 = vmatprep.subr.bf16.mxu1 %v14028_v28 }
0x13f8   : > { %12095 = vmatpush3.bf16.msra.mxu1 %v13213_v50  ;;  %v13226_v50 = vld [vmem:[#allocation13 + $0x68] sm:$0xff]  }
0x13f9   : > { %12096 = vmatprep.subr.bf16.mxu1 %v14028_v28 }
0x13fc   : > { %12097 = vmatpush3.bf16.msra.mxu1 %v13215_v8  ;;  %v13233_v8 = vld [vmem:[#allocation16 + $0x10] sm:$0xff]  }
0x13fd   : > { %12098 = vmatprep.subr.bf16.mxu1 %v14028_v28 }
0x1400   : > { %12099 = vmatpush3.bf16.msra.mxu1 %v13217_v10  ;;  %v13237_v10 = vld [vmem:[#allocation16 + $0x20] sm:$0xff]  }
0x1401   : > { %12100 = vmatprep.subr.bf16.mxu1 %v14028_v28 }
0x1404   : > { %12101 = vmatpush3.bf16.msra.mxu1 %v13219_v11 }
0x1405   : > { %12111 = vmatprep.subr.bf16.mxu1 %v14028_v28 }
0x14aa   : > { %v5913_v51 = vpop.f32.mrb[84].mxu0  ;;  %v5995_v54 = vpop.f32.mrb[64].mxu1 }
0x14ab   : > { %v12030_v55 = vpop.f32.mrb[85].mxu0  ;;  %v12042_v58 = vpop.f32.mrb[65].mxu1  ;;  %12045 = vmatpush3.msk.msra.mxu0 %vm6004_vm5, %v5913_v51  ;;  %v13227_v51 = vld [vmem:[#allocation13 + $0x70] sm:$0xff]  }
0x14ac   : > { %v5916_v59 = vpop.f32.mrb[86].mxu0  ;;  %v5998_v62 = vpop.f32.mrb[66].mxu1  ;;  %12047 = vmatmul.mubr.msk.f32.vlgmr.msra.gmra.mrb[88].mxu0 %vm6001_vm2, %v14634_v29  ;;  %12061 = vmatprep.subr.mxu0 %v14028_v28  ;;  %v13230_v55 = vld [vmem:[#allocation16 + $0x80] sm:$0xff]   ;;  %v13232_v58 = vld [vmem:[#allocation16 + $0x88] sm:$0xff]  }
0x14ad   : > { %v12031_v34 = vpop.f32.mrb[87].mxu0  ;;  %v12043_v1 = vpop.f32.mrb[67].mxu1  ;;  %12062 = vmatpush3.msk.msra.mxu0 %vm6004_vm5, %v5995_v54  ;;  %12063 = vmatprep.mubr.msk.f32.mxu0 %vm16076_vm14, %v14028_v28  ;;  %v13228_v54 = vld [vmem:[#allocation13 + $0x78] sm:$0xff]  }
0x14ae   : > { %12066 = vmatprep.subr.bf16.mxu0 %v14028_v28  ;;  %v13234_v59 = vld [vmem:[#allocation16 + $0x90] sm:$0xff]   ;;  %v13236_v62 = vld [vmem:[#allocation16 + $0x98] sm:$0xff]   ;;  %v13238_v34 = vld [vmem:[#allocation16 + $0xa0] sm:$0xff]  }
0x14b0   : > { %12064 = vmatmul.mubr.msk.f32.vlgmr.msra.gmra.mrb[90].mxu0 %vm6001_vm2, %v14674_v57 }
0x14b1   : > { %12067 = vmatpush3.bf16.msra.mxu0 %v13206_v2  ;;  %12082 = vmatprep.mubr.msk.bf16.mxu0 %vm16076_vm14, %v14028_v28 }
0x14b2   : > { %12068 = vmatprep.subr.bf16.mxu0 %v14028_v28 }
0x14b5   : > { %12069 = vmatpush3.bf16.msra.mxu0 %v13208_v3 }
0x14b6   : > { %12070 = vmatprep.subr.bf16.mxu0 %v14028_v28 }
0x14b9   : > { %12071 = vmatpush3.bf16.msra.mxu0 %v13210_v4 }
0x14ba   : > { %v6136_v52 = vpop.f32.mrb[68].mxu1  ;;  %12072 = vmatprep.subr.bf16.mxu0 %v14028_v28 }
0x14bb   : > { %v12059_v60 = vpop.f32.mrb[69].mxu1 }
0x14bc   : > { %v6139_v6 = vpop.f32.mrb[70].mxu1 }
0x14bd   : > { %v12060_v26 = vpop.f32.mrb[71].mxu1  ;;  %12073 = vmatpush3.bf16.msra.mxu0 %v13212_v5 }
0x14be   : > { %12074 = vmatprep.subr.bf16.mxu0 %v14028_v28  ;;  %v13229_v26 = vld [vmem:[#allocation16] sm:$0xff]  }
0x14c1   : > { %12075 = vmatpush3.bf16.msra.mxu0 %v13214_v7  ;;  %v13231_v7 = vld [vmem:[#allocation16 + $0x8] sm:$0xff]  }
0x14c2   : > { %12076 = vmatprep.subr.bf16.mxu0 %v14028_v28 }
0x14c5   : > { %12077 = vmatpush3.bf16.msra.mxu0 %v13216_v9  ;;  %v13235_v9 = vld [vmem:[#allocation16 + $0x18] sm:$0xff]  }
0x14c6   : > { %12078 = vmatprep.subr.bf16.mxu0 %v14028_v28 }
0x14c9   : > { %12079 = vmatpush3.bf16.msra.mxu0 %v13218_v53 }
0x14ca   : > { %12080 = vmatprep.subr.bf16.mxu0 %v14028_v28 }
0x14cd   : > { %12081 = vmatpush3.bf16.msra.mxu0 %v13220_v56 }
0x14ce   : > { %12106 = vmatprep.subr.mxu0 %v14028_v28 }
0x157f   : > { %v6074_v12 = vpop.f32.mrb[88].mxu0 }
0x1580   : > { %v6137_v13 = vadd.f32 %v6136_v52, %v6074_v12  ;;  %v12048_v14 = vpop.f32.mrb[89].mxu0 }
0x1581   : > { %v13240_v14 = vld [vmem:[#allocation16 + $0xa8] sm:$0xff]  }
0x1583   : > { %v6213_v17 = vpop.f32.mrb[90].mxu0 }
0x1584   : > { %v6217_v24 = vadd.f32 %v6213_v17, %v6137_v13  ;;  %v12065_v32 = vpop.f32.mrb[91].mxu0  ;;  %v13239_v13 = vld [vmem:[#allocation16 + $0x28] sm:$0xff]   ;;  %v13241_v17 = vld [vmem:[#allocation16 + $0x30] sm:$0xff]  }
0x1585   : > { %v13244_v32 = vld [vmem:[#allocation16 + $0xb8] sm:$0xff]  }
0x1586   : > { %v6225_v37 = vadd.f32 %v10471_v18, %v6217_v24  ;;  %v13242_v18 = vld [vmem:[#allocation16 + $0xb0] sm:$0xff]   ;;  %v13243_v24 = vld [vmem:[#allocation16 + $0x38] sm:$0xff]  }
0x1588   : > { %v6226_v38 = vmax.f32 %v6225_v37, 0.0 }
0x158a   : > { %v6227_v42 = vpack.c.bf16 %v6226_v38, %v6226_v38 }
0x158c   : > { %12083 = vmatmul.mubr.bf16.vlgmr.msra.gmra.mrb[92].mxu0 %v6227_v42  ;;  %12103 = vmatmul.mubr.bf16.vlgmr.msra.gmra.mrb[72].mxu1 %v6227_v42 }
0x158d   : > { %12112 = vmatpush3.bf16.msra.mxu1 %v13221_v41  ;;  %12127 = vmatprep.mubr.msk.bf16.mxu1 %vm16076_vm14, %v14028_v28 }
0x158e   : > { %12113 = vmatprep.subr.bf16.mxu1 %v14028_v28  ;;  %12108 = vmatprep.mubr.msk.f32.mxu0 %vm16076_vm14, %v14028_v28 }
0x1591   : > { %12114 = vmatpush3.bf16.msra.mxu1 %v13222_v46  ;;  %v10500_v46 = vld [vmem:[#allocation14] ss:$0 sm:$0xff] }
0x1592   : > { %12115 = vmatprep.subr.bf16.mxu1 %v14028_v28 }
0x1595   : > { %12116 = vmatpush3.bf16.msra.mxu1 %v13223_v47 }
0x1596   : > { %12117 = vmatprep.subr.bf16.mxu1 %v14028_v28 }
0x1599   : > { %12118 = vmatpush3.bf16.msra.mxu1 %v13224_v48 }
0x159a   : > { %12119 = vmatprep.subr.bf16.mxu1 %v14028_v28 }
0x159d   : > { %12120 = vmatpush3.bf16.msra.mxu1 %v13225_v49 }
0x159e   : > { %12121 = vmatprep.subr.bf16.mxu1 %v14028_v28 }
0x15a1   : > { %12122 = vmatpush3.bf16.msra.mxu1 %v13226_v50 }
0x15a2   : > { %12123 = vmatprep.subr.bf16.mxu1 %v14028_v28 }
0x15a5   : > { %12124 = vmatpush3.bf16.msra.mxu1 %v13227_v51 }
0x15a6   : > { %12125 = vmatprep.subr.bf16.mxu1 %v14028_v28 }
0x15a9   : > { %12126 = vmatpush3.bf16.msra.mxu1 %v13228_v54  ;;  %v13245_v54 = vld [vmem:[#allocation16 + $0x40] sm:$0xff]  }
0x15aa   : > { %12156 = vmatprep.subr.bf16.mxu1 %v14028_v28 }
0x15ac   : > { %12128 = vmatmul.mubr.bf16.vlgmr.msra.gmra.mrb[76].mxu1 %v6227_v42 }
0x15ad   : > { %12172 = vmatprep.mubr.msk.bf16.mxu1 %vm16076_vm14, %v14028_v28  ;;  %12157 = vmatpush3.bf16.msra.mxu1 %v13230_v55 }
0x15ae   : > { %12158 = vmatprep.subr.bf16.mxu1 %v14028_v28 }
0x15b1   : > { %12159 = vmatpush3.bf16.msra.mxu1 %v13232_v58 }
0x15b2   : > { %12160 = vmatprep.subr.bf16.mxu1 %v14028_v28 }
0x15b5   : > { %12161 = vmatpush3.bf16.msra.mxu1 %v13234_v59 }
0x15b6   : > { %12162 = vmatprep.subr.bf16.mxu1 %v14028_v28 }
0x15b9   : > { %12163 = vmatpush3.bf16.msra.mxu1 %v13236_v62 }
0x15ba   : > { %12164 = vmatprep.subr.bf16.mxu1 %v14028_v28 }
0x15bd   : > { %12165 = vmatpush3.bf16.msra.mxu1 %v13238_v34 }
0x15be   : > { %12166 = vmatprep.subr.bf16.mxu1 %v14028_v28 }
0x15c1   : > { %12167 = vmatpush3.bf16.msra.mxu1 %v13240_v14 }
0x15c2   : > { %12168 = vmatprep.subr.bf16.mxu1 %v14028_v28 }
0x15c5   : > { %12169 = vmatpush3.bf16.msra.mxu1 %v13242_v18 }
0x15c6   : > { %12170 = vmatprep.subr.bf16.mxu1 %v14028_v28 }
0x15c9   : > { %12171 = vmatpush3.bf16.msra.mxu1 %v13244_v32  ;;  %v13253_v32 = vld [vmem:[#allocation19 + $0x40] sm:$0xff]  }
0x15ca   : > { %12201 = vmatprep.subr.mxu1 %v14028_v28 }
0x165f   : > { %v6326_v1 = vpop.f32.mrb[92].mxu0  ;;  %v6448_v2 = vpop.f32.mrb[72].mxu1 }
0x1660   : > { %v12084_v3 = vpop.f32.mrb[93].mxu0  ;;  %v12104_v4 = vpop.f32.mrb[73].mxu1  ;;  %12107 = vmatpush3.msk.msra.mxu0 %vm6004_vm5, %v6326_v1 }
0x1661   : > { %v6329_v5 = vpop.f32.mrb[94].mxu0  ;;  %v6451_v52 = vpop.f32.mrb[74].mxu1  ;;  %12109 = vmatmul.mubr.msk.f32.vlgmr.msra.gmra.mrb[96].mxu0 %vm6001_vm2, %v14634_v29  ;;  %12131 = vmatprep.subr.mxu0 %v14028_v28  ;;  %v13246_v4 = vld [vmem:[#allocation16 + $0x48] sm:$0xff]  }
0x1662   : > { %v12085_v60 = vpop.f32.mrb[95].mxu0  ;;  %v12105_v6 = vpop.f32.mrb[75].mxu1  ;;  %12132 = vmatpush3.msk.msra.mxu0 %vm6004_vm5, %v6448_v2  ;;  %12133 = vmatprep.mubr.msk.f32.mxu0 %vm16076_vm14, %v14028_v28  ;;  %v13247_v5 = vld [vmem:[#allocation16 + $0x50] sm:$0xff]   ;;  %v13248_v52 = vld [vmem:[#allocation16 + $0x58] sm:$0xff]  }
0x1663   : > { %12136 = vmatprep.subr.bf16.mxu0 %v14028_v28  ;;  %v13249_v60 = vld [vmem:[#allocation16 + $0x60] sm:$0xff]   ;;  %v13250_v6 = vld [vmem:[#allocation16 + $0x68] sm:$0xff]  }
0x1665   : > { %12134 = vmatmul.mubr.msk.f32.vlgmr.msra.gmra.mrb[98].mxu0 %vm6001_vm2, %v14674_v57 }
0x1666   : > { %12137 = vmatpush3.bf16.msra.mxu0 %v13229_v26  ;;  %12152 = vmatprep.mubr.msk.bf16.mxu0 %vm16076_vm14, %v14028_v28  ;;  %v13251_v26 = vld [vmem:[#allocation16 + $0x70] sm:$0xff]  }
0x1667   : > { %12138 = vmatprep.subr.bf16.mxu0 %v14028_v28 }
0x166a   : > { %12139 = vmatpush3.bf16.msra.mxu0 %v13231_v7  ;;  %v13252_v7 = vld [vmem:[#allocation16 + $0x78] sm:$0xff]  }
0x166b   : > { %12140 = vmatprep.subr.bf16.mxu0 %v14028_v28 }
0x166e   : > { %12141 = vmatpush3.bf16.msra.mxu0 %v13233_v8 }
0x166f   : > { %12142 = vmatprep.subr.bf16.mxu0 %v14028_v28 }
0x1672   : > { %12143 = vmatpush3.bf16.msra.mxu0 %v13235_v9  ;;  %v10529_v9 = vld [vmem:[#allocation17] ss:$0 sm:$0xff] }
0x1673   : > { %12144 = vmatprep.subr.bf16.mxu0 %v14028_v28 }
0x1676   : > { %12145 = vmatpush3.bf16.msra.mxu0 %v13237_v10 }
0x1677   : > { %12146 = vmatprep.subr.bf16.mxu0 %v14028_v28 }
0x167a   : > { %12147 = vmatpush3.bf16.msra.mxu0 %v13239_v13 }
0x167b   : > { %12148 = vmatprep.subr.bf16.mxu0 %v14028_v28 }
0x167e   : > { %12149 = vmatpush3.bf16.msra.mxu0 %v13241_v17 }
0x167f   : > { %v6609_v53 = vpop.f32.mrb[76].mxu1  ;;  %12150 = vmatprep.subr.bf16.mxu0 %v14028_v28 }
0x1680   : > { %v12129_v11 = vpop.f32.mrb[77].mxu1 }
0x1681   : > { %v6612_v56 = vpop.f32.mrb[78].mxu1 }
0x1682   : > { %v12130_v12 = vpop.f32.mrb[79].mxu1  ;;  %12151 = vmatpush3.bf16.msra.mxu0 %v13243_v24 }
0x1683   : > { %12176 = vmatprep.subr.mxu0 %v14028_v28  ;;  %v13256_v12 = vld [vmem:[#allocation19 + $0x8] sm:$0xff]  }
0x1734   : > { %v6523_v37 = vpop.f32.mrb[96].mxu0 }
0x1735   : > { %v6610_v38 = vadd.f32 %v6609_v53, %v6523_v37  ;;  %v12110_v41 = vpop.f32.mrb[97].mxu0  ;;  %v13255_v37 = vld [vmem:[#allocation19 + $0x48] sm:$0xff]  }
0x1736   : > { %v13258_v41 = vld [vmem:[#allocation19 + $0x10] sm:$0xff]  }
0x1738   : > { %v6684_v42 = vpop.f32.mrb[98].mxu0 }
0x1739   : > { %v6688_v47 = vadd.f32 %v6684_v42, %v6610_v38  ;;  %v12135_v48 = vpop.f32.mrb[99].mxu0  ;;  %v13257_v38 = vld [vmem:[#allocation19 + $0x50] sm:$0xff]   ;;  %v13259_v42 = vld [vmem:[#allocation19 + $0x58] sm:$0xff]  }
0x173b   : > { %v6696_v49 = vadd.f32 %v10500_v46, %v6688_v47  ;;  %v13260_v46 = vld [vmem:[#allocation19 + $0x18] sm:$0xff]  }
0x173d   : > { %v6697_v50 = vmax.f32 %v6696_v49, 0.0 }
0x173f   : > { %v6698_v51 = vpack.c.bf16 %v6697_v50, %v6697_v50 }
0x1741   : > { %12153 = vmatmul.mubr.bf16.vlgmr.msra.gmra.mrb[100].mxu0 %v6698_v51  ;;  %12173 = vmatmul.mubr.bf16.vlgmr.msra.gmra.mrb[80].mxu1 %v6698_v51 }
0x1742   : > { %12178 = vmatprep.mubr.msk.f32.mxu0 %vm16076_vm14, %v14028_v28  ;;  %12203 = vmatprep.mubr.msk.f32.mxu1 %vm16076_vm14, %v14028_v28 }
0x1814   : > { %v6797_v55 = vpop.f32.mrb[100].mxu0  ;;  %v6919_v58 = vpop.f32.mrb[80].mxu1 }
0x1815   : > { %v12154_v59 = vpop.f32.mrb[101].mxu0  ;;  %v12174_v62 = vpop.f32.mrb[81].mxu1  ;;  %12177 = vmatpush3.msk.msra.mxu0 %vm6004_vm5, %v6797_v55  ;;  %12202 = vmatpush3.msk.msra.mxu1 %vm6004_vm5, %v6919_v58  ;;  %v13262_v58 = vld [vmem:[#allocation19 + $0x28] sm:$0xff]  }
0x1816   : > { %v6800_v34 = vpop.f32.mrb[102].mxu0  ;;  %v6922_v1 = vpop.f32.mrb[82].mxu1  ;;  %12179 = vmatmul.mubr.msk.f32.vlgmr.msra.gmra.mrb[104].mxu0 %vm6001_vm2, %v14634_v29  ;;  %12181 = vmatprep.subr.bf16.mxu0 %v14028_v28  ;;  %v13263_v59 = vld [vmem:[#allocation19 + $0x30] sm:$0xff]   ;;  %v13264_v62 = vld [vmem:[#allocation19 + $0x38] sm:$0xff]  }
0x1817   : > { %v12155_v2 = vpop.f32.mrb[103].mxu0  ;;  %v12175_v3 = vpop.f32.mrb[83].mxu1  ;;  %12182 = vmatpush3.bf16.msra.mxu0 %v13245_v54  ;;  %12197 = vmatprep.mubr.msk.bf16.mxu0 %vm16076_vm14, %v14028_v28  ;;  %v13261_v54 = vld [vmem:[#allocation19 + $0x20] sm:$0xff]  }
0x1818   : > { %12183 = vmatprep.subr.bf16.mxu0 %v14028_v28  ;;  %12204 = vmatmul.mubr.msk.f32.vlgmr.msra.gmra.mrb[84].mxu1 %vm6001_vm2, %v14674_v57  ;;  %v13265_v34 = vld [vmem:[#allocation20 + $0x40] sm:$0xff]  }
0x1819   : > { %12718 = vmatprep.subr.bf16.mxu1 %v14031_v31  ;;  %12238 = vmatprep.mubr.msk.f32.mxu1 %vm16076_vm14, %v14028_v28 }
0x181a   : > { %12720 = vmatpush3.bf16.msk.msra.mxu1 %vm14751_vm13, %v14029_v63 }
0x181b   : > { %12184 = vmatpush3.bf16.msra.mxu0 %v13246_v4  ;;  %12721 = vmatprep.subr.bf16.mxu1 %v14031_v31 }
0x181c   : > { %12185 = vmatprep.subr.bf16.mxu0 %v14028_v28 }
0x181e   : > { %12723 = vmatpush3.bf16.msk.msra.mxu1 %vm14766_vm4, %v14029_v63 }
0x181f   : > { %12186 = vmatpush3.bf16.msra.mxu0 %v13247_v5  ;;  %12724 = vmatprep.subr.bf16.mxu1 %v14031_v31 }
0x1820   : > { %12187 = vmatprep.subr.bf16.mxu0 %v14028_v28 }
0x1822   : > { %12726 = vmatpush3.bf16.msk.msra.mxu1 %vm14802_vm11, %v14029_v63 }
0x1823   : > { %12188 = vmatpush3.bf16.msra.mxu0 %v13248_v52  ;;  %12727 = vmatprep.subr.bf16.mxu1 %v14031_v31 }
0x1824   : > { %12189 = vmatprep.subr.bf16.mxu0 %v14028_v28 }
0x1826   : > { %12729 = vmatpush3.bf16.msk.msra.mxu1 %vm16070_vm6, %v14029_v63 }
0x1827   : > { %12190 = vmatpush3.bf16.msra.mxu0 %v13249_v60  ;;  %12730 = vmatprep.subr.bf16.mxu1 %v14031_v31 }
0x1828   : > { %12191 = vmatprep.subr.bf16.mxu0 %v14028_v28 }
0x182a   : > { %12732 = vmatpush3.bf16.msk.msra.mxu1 %vm16071_vm9, %v14029_v63  ;;  %vm16101_vm9 = vnez %v16061_v44  ;;  %v13254_v44 = vld [vmem:[#allocation19] sm:$0xff]  }
0x182b   : > { %12192 = vmatpush3.bf16.msra.mxu0 %v13250_v6  ;;  %12733 = vmatprep.subr.bf16.mxu1 %v14031_v31 }
0x182c   : > { %12193 = vmatprep.subr.bf16.mxu0 %v14028_v28 }
0x182e   : > { %12735 = vmatpush3.bf16.msk.msra.mxu1 %vm16072_vm10, %v14029_v63  ;;  %vm16099_vm10 = vnez %v16053_v35 }
0x182f   : > { %12194 = vmatpush3.bf16.msra.mxu0 %v13251_v26  ;;  %12736 = vmatprep.subr.bf16.mxu1 %v14031_v31  ;;  %v13266_v26 = vld [vmem:[#allocation20] sm:$0xff]  }
0x1830   : > { %12195 = vmatprep.subr.bf16.mxu0 %v14028_v28 }
0x1832   : > { %12738 = vmatpush3.bf16.msk.msra.mxu1 %vm16074_vm0, %v14029_v63  ;;  %vm16100_vm0 = vnez %v16057_v40 }
0x1833   : > { %12196 = vmatpush3.bf16.msra.mxu0 %v13252_v7  ;;  %12739 = vmatprep.subr.bf16.mxu1 %v14031_v31 }
0x1834   : > { %12742 = vmatprep.subr.bf16.mxu0 %v14031_v31 }
0x1836   : > { %12198 = vmatmul.mubr.bf16.vlgmr.msra.gmra.mrb[108].mxu0 %v6698_v51  ;;  %12741 = vmatpush3.bf16.msk.msra.mxu1 %vm16075_vm3, %v14029_v63  ;;  %vm16098_vm3 = vnez %v16045_v21  ;;  %v13291_v21 = vld [vmem:[#allocation26 + $0x4] ss:$8 sps:$4 sm:$0xff]  }
0x1837   : > { %12744 = vmatpush3.bf16.msk.msra.mxu0 %vm14774_vm7, %v14029_v63  ;;  %12273 = vmatprep.mubr.msk.f32.mxu0 %vm16076_vm14, %v14028_v28 }
0x1838   : > { %12745 = vmatprep.subr.bf16.mxu0 %v14031_v31  ;;  %12276 = vmatprep.subr.mxu1 %v14028_v28 }
0x183b   : > { %12747 = vmatpush3.bf16.msk.msra.mxu0 %vm14789_vm8, %v14029_v63 }
0x183c   : > { %12748 = vmatprep.subr.bf16.mxu0 %v14031_v31 }
0x183f   : > { %12750 = vmatpush3.bf16.msk.msra.mxu0 %vm14814_vm1, %v14029_v63 }
0x1840   : > { %12751 = vmatprep.subr.bf16.mxu0 %v14031_v31 }
0x1843   : > { %12753 = vmatpush3.bf16.msk.msra.mxu0 %vm16098_vm3, %v14029_v63 }
0x1844   : > { %12754 = vmatprep.subr.bf16.mxu0 %v14031_v31 }
0x1847   : > { %12756 = vmatpush3.bf16.msk.msra.mxu0 %vm16088_vm12, %v14029_v63  ;;  %vm7458_vm12 = vcmask 517120  }
0x1848   : > { %12757 = vmatprep.subr.bf16.mxu0 %v14031_v31 }
0x184b   : > { %12759 = vmatpush3.bf16.msk.msra.mxu0 %vm16099_vm10, %v14029_v63  ;;  %vm7621_vm10 = vcmask 1041408  }
0x184c   : > { %12760 = vmatprep.subr.bf16.mxu0 %v14031_v31 }
0x184f   : > { %12762 = vmatpush3.bf16.msk.msra.mxu0 %vm16100_vm0, %v14029_v63  ;;  %vm7618_vm0 = vcmask 15360  }
0x1850   : > { %12763 = vmatprep.subr.bf16.mxu0 %v14031_v31 }
0x1853   : > { %12765 = vmatpush3.bf16.msk.msra.mxu0 %vm16101_vm9, %v14029_v63 }
0x1854   : > { %12286 = vmatprep.subr.bf16.mxu0 %v14028_v28 }
0x18e9   : > { %v6994_v27 = vpop.f32.mrb[104].mxu0 }
0x18ea   : > { %v12180_v30 = vpop.f32.mrb[105].mxu0 }
0x18eb   : > { %v7155_v33 = vpop.f32.mrb[84].mxu1 }
0x18ec   : > { %v12205_v39 = vpop.f32.mrb[85].mxu1 }
0x18ed   : > { %v13267_v39 = vld [vmem:[#allocation20 + $0x48] sm:$0xff]  }
0x1909   : > { %v7080_v35 = vpop.f32.mrb[108].mxu0 }
0x190a   : > { %v7081_v43 = vadd.f32 %v7080_v35, %v6994_v27  ;;  %v12199_v8 = vpop.f32.mrb[109].mxu0  ;;  %v13268_v35 = vld [vmem:[#allocation20 + $0x8] sm:$0xff]  }
0x190b   : > { %v7083_v10 = vpop.f32.mrb[110].mxu0  ;;  %v13270_v8 = vld [vmem:[#allocation20 + $0x10] sm:$0xff]  }
0x190c   : > { %v7159_v53 = vadd.f32 %v7155_v33, %v7081_v43  ;;  %v12200_v40 = vpop.f32.mrb[111].mxu0  ;;  %v13269_v43 = vld [vmem:[#allocation20 + $0x50] sm:$0xff]   ;;  %v13272_v10 = vld [vmem:[#allocation20 + $0x18] sm:$0xff]  }
0x190e   : > { %v7167_v11 = vadd.f32 %v10529_v9, %v7159_v53  ;;  %v13271_v9 = vld [vmem:[#allocation20 + $0x58] sm:$0xff]  }
0x1910   : > { %v7168_v56 = vmax.f32 %v7167_v11, 0.0 }
0x1912   : > { %12239 = vmatmul.mubr.f32.vlgmr.msra.gmra.mrb[86].mxu1 %v7168_v56  ;;  %12274 = vmatmul.mubr.f32.vlgmr.msra.gmra.mrb[106].mxu0 %v7168_v56 }
0x1913   : > { %12278 = vmatprep.mubr.msk.f32.mxu1 %vm16076_vm14, %v14028_v28  ;;  %12294 = vmatprep.mubr.msk.bf16.mxu0 %vm16076_vm14, %v14028_v28 }
0x1914   : > { %12287 = vmatpush3.bf16.msra.mxu0 %v13254_v44  ;;  %v10585_v44 = vld [vmem:[%s16105_s10] ss:$0 sm:$0xff]  ;;  %s16117_s10 = sld [smem:[#allocation63_spill]] }
0x1915   : > { %12288 = vmatprep.subr.bf16.mxu0 %v14028_v28 }
0x1918   : > { %12289 = vmatpush3.bf16.msra.mxu0 %v13256_v12 }
0x1919   : > { %12290 = vmatprep.subr.bf16.mxu0 %v14028_v28 }
0x191c   : > { %12291 = vmatpush3.bf16.msra.mxu0 %v13258_v41  ;;  %v13278_v41 = vld [vmem:[#allocation23 + $0x40] sm:$0xff]  }
0x191d   : > { %12292 = vmatprep.subr.bf16.mxu0 %v14028_v28 }
0x1920   : > { %12293 = vmatpush3.bf16.msra.mxu0 %v13260_v46 }
0x1921   : > { %12310 = vmatprep.subr.mxu0 %v14028_v28 }
0x19e5   : > { %v7235_v13 = vpop.f32.mrb[86].mxu1  ;;  %v7305_v14 = vpop.f32.mrb[106].mxu0 }
0x19e6   : > { %v7309_v17 = vmax.f32 %v7235_v13, %v7305_v14  ;;  %v12240_v18 = vpop.f32.mrb[87].mxu1  ;;  %v12275_v24 = vpop.f32.mrb[107].mxu0 }
0x19e7   : > { %v13273_v18 = vld [vmem:[#allocation20 + $0x20] sm:$0xff]  }
0x19e8   : > { %12277 = vmatpush3.msk.msra.mxu1 %vm6004_vm5, %v7309_v17 }
0x19e9   : > { %12279 = vmatmul.mubr.msk.f32.vlgmr.msra.gmra.mrb[88].mxu1 %vm6001_vm2, %v14964_v22  ;;  %12281 = vmatprep.subr.mxu1 %v14028_v28 }
0x19ea   : > { %12282 = vmatpush3.msk.msra.mxu1 %vm6004_vm5, %v7309_v17  ;;  %12283 = vmatprep.mubr.msk.f32.mxu1 %vm16076_vm14, %v14028_v28  ;;  %vm16103_vm5 = vmmov %vm16097_vm15 }
0x19eb   : > { %12298 = vmatprep.subr.bf16.mxu1 %v14028_v28 }
0x19ed   : > { %12284 = vmatmul.mubr.msk.f32.vlgmr.msra.gmra.mrb[90].mxu1 %vm6001_vm2, %v14974_v0  ;;  %vm16104_vm2 = vmmov %vm16103_vm5 }
0x19ee   : > { %12299 = vmatpush3.bf16.msra.mxu1 %v13253_v32  ;;  %12306 = vmatprep.mubr.msk.bf16.mxu1 %vm16076_vm14, %v14028_v28  ;;  %vm16106_vm9 = vmmov %vm16104_vm2  ;;  %v13274_v32 = vld [vmem:[#allocation20 + $0x28] sm:$0xff]  }
0x19ef   : > { %12300 = vmatprep.subr.bf16.mxu1 %v14028_v28 }
0x19f2   : > { %12301 = vmatpush3.bf16.msra.mxu1 %v13255_v37  ;;  %v13275_v37 = vld [vmem:[#allocation20 + $0x30] sm:$0xff]  }
0x19f3   : > { %12302 = vmatprep.subr.bf16.mxu1 %v14028_v28 }
0x19f6   : > { %12303 = vmatpush3.bf16.msra.mxu1 %v13257_v38  ;;  %v13276_v38 = vld [vmem:[#allocation20 + $0x38] sm:$0xff]  }
0x19f7   : > { %12304 = vmatprep.subr.bf16.mxu1 %v14028_v28 }
0x19fa   : > { %12305 = vmatpush3.bf16.msra.mxu1 %v13259_v42 }
0x19fb   : > { %12315 = vmatprep.subr.bf16.mxu1 %v14028_v28 }
0x1abc   : > { %v7381_v47 = vpop.f32.mrb[88].mxu1 }
0x1abd   : > { %v12280_v48 = vpop.f32.mrb[89].mxu1 }
0x1ac0   : > { %v7453_v49 = vpop.f32.mrb[90].mxu1 }
0x1ac1   : > { %v7457_v50 = vmax.f32 %v7381_v47, %v7453_v49  ;;  %v12285_v51 = vpop.f32.mrb[91].mxu1 }
0x1ac3   : > { %7459 = vst.msk [vmem:[%s1504_s23] sm:$0x3] %vm7458_vm12, %v7457_v50  ;;  %v7460_v55 = vpack.c.bf16 %v7457_v50, %v7457_v50  ;;  %vm16107_vm12 = vmmov %vm16104_vm2  ;;  %s16116_s23 = sld [smem:[#allocation66_spill]] }
0x1ac5   : > { %12295 = vmatmul.mubr.msk.bf16.vlgmr.msra.gmra.mrb[112].mxu0 %vm16097_vm15, %v7460_v55  ;;  %12307 = vmatmul.mubr.msk.bf16.vlgmr.msra.gmra.mrb[92].mxu1 %vm16103_vm5, %v7460_v55  ;;  %vm16108_vm15 = vmmov %vm16104_vm2 }
0x1ac6   : > { %12316 = vmatpush3.bf16.msra.mxu1 %v13261_v54  ;;  %12323 = vmatprep.mubr.msk.bf16.mxu1 %vm16076_vm14, %v14028_v28  ;;  %vm16109_vm5 = vmmov %vm16104_vm2 }
0x1ac7   : > { %12317 = vmatprep.subr.bf16.mxu1 %v14028_v28  ;;  %12312 = vmatprep.mubr.msk.f32.mxu0 %vm16076_vm14, %v14028_v28 }
0x1aca   : > { %12318 = vmatpush3.bf16.msra.mxu1 %v13262_v58 }
0x1acb   : > { %12319 = vmatprep.subr.bf16.mxu1 %v14028_v28 }
0x1ace   : > { %12320 = vmatpush3.bf16.msra.mxu1 %v13263_v59 }
0x1acf   : > { %12321 = vmatprep.subr.bf16.mxu1 %v14028_v28 }
0x1ad2   : > { %12322 = vmatpush3.bf16.msra.mxu1 %v13264_v62 }
0x1ad3   : > { %12344 = vmatprep.subr.bf16.mxu1 %v14028_v28 }
0x1ad5   : > { %12324 = vmatmul.mubr.msk.bf16.vlgmr.msra.gmra.mrb[96].mxu1 %vm16104_vm2, %v7460_v55  ;;  %v13277_v55 = vld [vmem:[#allocation23] sm:$0xff]  }
0x1ad6   : > { %12352 = vmatprep.mubr.msk.bf16.mxu1 %vm16076_vm14, %v14028_v28  ;;  %12345 = vmatpush3.bf16.msra.mxu1 %v13265_v34 }
0x1ad7   : > { %12346 = vmatprep.subr.bf16.mxu1 %v14028_v28 }
0x1ada   : > { %12347 = vmatpush3.bf16.msra.mxu1 %v13267_v39 }
0x1adb   : > { %12348 = vmatprep.subr.bf16.mxu1 %v14028_v28 }
0x1ade   : > { %12349 = vmatpush3.bf16.msra.mxu1 %v13269_v43 }
0x1adf   : > { %12350 = vmatprep.subr.bf16.mxu1 %v14028_v28 }
0x1ae2   : > { %12351 = vmatpush3.bf16.msra.mxu1 %v13271_v9 }
0x1ae3   : > { %12361 = vmatprep.subr.bf16.mxu1 %v14028_v28 }
0x1b98   : > { %v7530_v1 = vpop.f32.mrb[112].mxu0  ;;  %v7612_v2 = vpop.f32.mrb[92].mxu1 }
0x1b99   : > { %v12296_v3 = vpop.f32.mrb[113].mxu0  ;;  %v12308_v4 = vpop.f32.mrb[93].mxu1  ;;  %12311 = vmatpush3.msk.msra.mxu0 %vm7621_vm10, %v7530_v1  ;;  %v13279_v1 = vld [vmem:[#allocation23 + $0x8] sm:$0xff]  }
0x1b9a   : > { %v7533_v5 = vpop.f32.mrb[114].mxu0  ;;  %v7615_v52 = vpop.f32.mrb[94].mxu1  ;;  %12313 = vmatmul.mubr.msk.f32.vlgmr.msra.gmra.mrb[116].mxu0 %vm7618_vm0, %v14634_v29  ;;  %12327 = vmatprep.subr.mxu0 %v14028_v28  ;;  %v13281_v3 = vld [vmem:[#allocation23 + $0x10] sm:$0xff]  }
0x1b9b   : > { %v12297_v60 = vpop.f32.mrb[115].mxu0  ;;  %v12309_v6 = vpop.f32.mrb[95].mxu1  ;;  %12328 = vmatpush3.msk.msra.mxu0 %vm7621_vm10, %v7612_v2  ;;  %12329 = vmatprep.mubr.msk.f32.mxu0 %vm16076_vm14, %v14028_v28  ;;  %v13280_v2 = vld [vmem:[#allocation23 + $0x48] sm:$0xff]   ;;  %v13282_v4 = vld [vmem:[#allocation23 + $0x50] sm:$0xff]   ;;  %v13283_v5 = vld [vmem:[#allocation23 + $0x18] sm:$0xff]  }
0x1b9c   : > { %12332 = vmatprep.subr.bf16.mxu0 %v14028_v28  ;;  %v13284_v52 = vld [vmem:[#allocation23 + $0x58] sm:$0xff]  }
0x1b9e   : > { %12330 = vmatmul.mubr.msk.f32.vlgmr.msra.gmra.mrb[118].mxu0 %vm7618_vm0, %v14674_v57 }
0x1b9f   : > { %12333 = vmatpush3.bf16.msra.mxu0 %v13266_v26  ;;  %12340 = vmatprep.mubr.msk.bf16.mxu0 %vm16076_vm14, %v14028_v28 }
0x1ba0   : > { %12334 = vmatprep.subr.bf16.mxu0 %v14028_v28 }
0x1ba3   : > { %12335 = vmatpush3.bf16.msra.mxu0 %v13268_v35 }
0x1ba4   : > { %12336 = vmatprep.subr.bf16.mxu0 %v14028_v28 }
0x1ba7   : > { %12337 = vmatpush3.bf16.msra.mxu0 %v13270_v8  ;;  %v13285_v8 = vld [vmem:[#allocation23 + $0x20] sm:$0xff]  }
0x1ba8   : > { %v7753_v7 = vpop.f32.mrb[96].mxu1  ;;  %12338 = vmatprep.subr.bf16.mxu0 %v14028_v28 }
0x1ba9   : > { %v12325_v27 = vpop.f32.mrb[97].mxu1 }
0x1baa   : > { %v7756_v30 = vpop.f32.mrb[98].mxu1  ;;  %v10605_v27 = vld [vmem:[#allocation22] ss:$0 sm:$0xff] }
0x1bab   : > { %v12326_v33 = vpop.f32.mrb[99].mxu1  ;;  %12339 = vmatpush3.bf16.msra.mxu0 %v13272_v10 }
0x1bac   : > { %12356 = vmatprep.subr.mxu0 %v14028_v28 }
0x1c6d   : > { %v7691_v53 = vpop.f32.mrb[116].mxu0 }
0x1c6e   : > { %v7754_v40 = vadd.f32 %v7753_v7, %v7691_v53  ;;  %v12314_v11 = vpop.f32.mrb[117].mxu0 }
0x1c71   : > { %v7830_v56 = vpop.f32.mrb[118].mxu0 }
0x1c72   : > { %v7834_v12 = vadd.f32 %v7830_v56, %v7754_v40  ;;  %v12331_v13 = vpop.f32.mrb[119].mxu0 }
0x1c73   : > { %v13286_v13 = vld [vmem:[#allocation23 + $0x28] sm:$0xff]  }
0x1c74   : > { %v7842_v14 = vadd.f32 %v10585_v44, %v7834_v12 }
0x1c76   : > { %v7843_v17 = vmax.f32 %v7842_v14, 0.0 }
0x1c78   : > { %v7844_v24 = vpack.c.bf16 %v7843_v17, %v7843_v17 }
0x1c7a   : > { %12341 = vmatmul.mubr.msk.bf16.vlgmr.msra.gmra.mrb[120].mxu0 %vm16106_vm9, %v7844_v24  ;;  %12353 = vmatmul.mubr.msk.bf16.vlgmr.msra.gmra.mrb[100].mxu1 %vm16107_vm12, %v7844_v24 }
0x1c7b   : > { %12362 = vmatpush3.bf16.msra.mxu1 %v13273_v18  ;;  %12369 = vmatprep.mubr.msk.bf16.mxu1 %vm16076_vm14, %v14028_v28  ;;  %v10625_v18 = vld [vmem:[#allocation25] ss:$0 sm:$0xff] }
0x1c7c   : > { %12363 = vmatprep.subr.bf16.mxu1 %v14028_v28  ;;  %12358 = vmatprep.mubr.msk.f32.mxu0 %vm16076_vm14, %v14028_v28 }
0x1c7f   : > { %12364 = vmatpush3.bf16.msra.mxu1 %v13274_v32 }
0x1c80   : > { %12365 = vmatprep.subr.bf16.mxu1 %v14028_v28 }
0x1c83   : > { %12366 = vmatpush3.bf16.msra.mxu1 %v13275_v37 }
0x1c84   : > { %12367 = vmatprep.subr.bf16.mxu1 %v14028_v28 }
0x1c87   : > { %12368 = vmatpush3.bf16.msra.mxu1 %v13276_v38 }
0x1c88   : > { %12390 = vmatprep.subr.bf16.mxu1 %v14028_v28 }
0x1c8a   : > { %12370 = vmatmul.mubr.msk.bf16.vlgmr.msra.gmra.mrb[104].mxu1 %vm16108_vm15, %v7844_v24 }
0x1c8b   : > { %12398 = vmatprep.mubr.msk.bf16.mxu1 %vm16076_vm14, %v14028_v28  ;;  %12391 = vmatpush3.bf16.msra.mxu1 %v13278_v41 }
0x1c8c   : > { %12392 = vmatprep.subr.bf16.mxu1 %v14028_v28 }
0x1c8f   : > { %12393 = vmatpush3.bf16.msra.mxu1 %v13280_v2  ;;  %v13315_v2 = vld [vmem:[%s16114_s12 + $0x64] ss:$8 sps:$4 sm:$0xff]  }
0x1c90   : > { %12394 = vmatprep.subr.bf16.mxu1 %v14028_v28 }
0x1c93   : > { %12395 = vmatpush3.bf16.msra.mxu1 %v13282_v4  ;;  %v13318_v4 = vld [vmem:[%s16114_s12 + $0x74] ss:$8 sps:$4 sm:$0xff]  }
0x1c94   : > { %12396 = vmatprep.subr.bf16.mxu1 %v14028_v28 }
0x1c97   : > { %12397 = vmatpush3.bf16.msra.mxu1 %v13284_v52  ;;  %v13321_v52 = vld [vmem:[%s16114_s12 + $0x84] ss:$8 sps:$4 sm:$0xff]  }
0x1c98   : > { %12419 = vmatprep.subr.mxu1 %v14028_v28 }
0x1d4d   : > { %v7914_v42 = vpop.f32.mrb[120].mxu0  ;;  %v7996_v46 = vpop.f32.mrb[100].mxu1 }
0x1d4e   : > { %v12342_v47 = vpop.f32.mrb[121].mxu0  ;;  %v12354_v48 = vpop.f32.mrb[101].mxu1  ;;  %12357 = vmatpush3.msk.msra.mxu0 %vm7621_vm10, %v7914_v42 }
0x1d4f   : > { %v7917_v49 = vpop.f32.mrb[122].mxu0  ;;  %v7999_v50 = vpop.f32.mrb[102].mxu1  ;;  %12359 = vmatmul.mubr.msk.f32.vlgmr.msra.gmra.mrb[124].mxu0 %vm7618_vm0, %v14634_v29  ;;  %12373 = vmatprep.subr.mxu0 %v14028_v28  ;;  %v13294_v47 = vld [vmem:[#allocation26 + $0x14] ss:$8 sps:$4 sm:$0xff]   ;;  %v13292_v48 = vld [vmem:[#allocation26 + $0x10] ss:$8 sps:$4 sm:$0xff]  }
0x1d50   : > { %v12343_v51 = vpop.f32.mrb[123].mxu0  ;;  %v12355_v54 = vpop.f32.mrb[103].mxu1  ;;  %12374 = vmatpush3.msk.msra.mxu0 %vm7621_vm10, %v7996_v46  ;;  %12375 = vmatprep.mubr.msk.f32.mxu0 %vm16076_vm14, %v14028_v28  ;;  %v13295_v49 = vld [vmem:[%s16113_s28] ss:$8 sps:$4 sm:$0xff]   ;;  %v13297_v50 = vld [vmem:[%s16114_s12 + $0x4] ss:$8 sps:$4 sm:$0xff]   ;;  %s1508_s28 = scalar_lea.vmem %s14234_s29, %s15615_s16 }
0x1d51   : > { %12378 = vmatprep.subr.bf16.mxu0 %v14028_v28  ;;  %v13300_v51 = vld [vmem:[%s16114_s12 + $0x14] ss:$8 sps:$4 sm:$0xff]   ;;  %v13301_v54 = vld [vmem:[%s16114_s12 + $0x20] ss:$8 sps:$4 sm:$0xff]  }
0x1d53   : > { %12376 = vmatmul.mubr.msk.f32.vlgmr.msra.gmra.mrb[126].mxu0 %vm7618_vm0, %v14674_v57 }
0x1d54   : > { %12379 = vmatpush3.bf16.msra.mxu0 %v13277_v55  ;;  %12386 = vmatprep.mubr.msk.bf16.mxu0 %vm16076_vm14, %v14028_v28  ;;  %v13306_v55 = vld [vmem:[%s16114_s12 + $0x34] ss:$8 sps:$4 sm:$0xff]  }
0x1d55   : > { %12380 = vmatprep.subr.bf16.mxu0 %v14028_v28 }
0x1d58   : > { %12381 = vmatpush3.bf16.msra.mxu0 %v13279_v1  ;;  %v13310_v1 = vld [vmem:[%s16114_s12 + $0x50] ss:$8 sps:$4 sm:$0xff]  }
0x1d59   : > { %12382 = vmatprep.subr.bf16.mxu0 %v14028_v28 }
0x1d5c   : > { %12383 = vmatpush3.bf16.msra.mxu0 %v13281_v3  ;;  %v13313_v3 = vld [vmem:[%s16114_s12 + $0x60] ss:$8 sps:$4 sm:$0xff]  }
0x1d5d   : > { %v8133_v58 = vpop.f32.mrb[104].mxu1  ;;  %12384 = vmatprep.subr.bf16.mxu0 %v14028_v28 }
0x1d5e   : > { %v12371_v59 = vpop.f32.mrb[105].mxu1 }
0x1d5f   : > { %v8136_v62 = vpop.f32.mrb[106].mxu1  ;;  %v13309_v59 = vld [vmem:[%s16114_s12 + $0x44] ss:$8 sps:$4 sm:$0xff]  }
0x1d60   : > { %v12372_v34 = vpop.f32.mrb[107].mxu1  ;;  %12385 = vmatpush3.bf16.msra.mxu0 %v13283_v5  ;;  %v13307_v62 = vld [vmem:[%s16114_s12 + $0x40] ss:$8 sps:$4 sm:$0xff]   ;;  %v13316_v5 = vld [vmem:[%s16114_s12 + $0x70] ss:$8 sps:$4 sm:$0xff]  }
0x1d61   : > { %12402 = vmatprep.subr.mxu0 %v14028_v28  ;;  %v13312_v34 = vld [vmem:[%s16114_s12 + $0x54] ss:$8 sps:$4 sm:$0xff]  }
0x1e22   : > { %v8071_v60 = vpop.f32.mrb[124].mxu0 }
0x1e23   : > { %v8134_v6 = vadd.f32 %v8133_v58, %v8071_v60  ;;  %v12360_v26 = vpop.f32.mrb[125].mxu0  ;;  %v13304_v58 = vld [vmem:[%s16114_s12 + $0x30] ss:$8 sps:$4 sm:$0xff]   ;;  %v13319_v60 = vld [vmem:[%s16114_s12 + $0x80] ss:$8 sps:$4 sm:$0xff]  }
0x1e24   : > { %v13322_v26 = vld [vmem:[%s16114_s12 + $0x90] ss:$8 sps:$4 sm:$0xff]  }
0x1e26   : > { %v8208_v7 = vpop.f32.mrb[126].mxu0 }
0x1e27   : > { %v8212_v30 = vadd.f32 %v8208_v7, %v8134_v6  ;;  %v12377_v33 = vpop.f32.mrb[127].mxu0  ;;  %v13324_v6 = vld [vmem:[%s16114_s12 + $0x94] ss:$8 sps:$4 sm:$0xff]   ;;  %v13327_v7 = vld [vmem:[%s16114_s12 + $0xa4] ss:$8 sps:$4 sm:$0xff]  }
0x1e28   : > { %v13328_v33 = vld [vmem:[%s16114_s12 + $0xb0] ss:$8 sps:$4 sm:$0xff]  }
0x1e29   : > { %v8220_v39 = vadd.f32 %v10605_v27, %v8212_v30  ;;  %v13325_v27 = vld [vmem:[%s16114_s12 + $0xa0] ss:$8 sps:$4 sm:$0xff]   ;;  %v13330_v30 = vld [vmem:[%s16114_s12 + $0xb4] ss:$8 sps:$4 sm:$0xff]  }
0x1e2b   : > { %v8221_v35 = vmax.f32 %v8220_v39, 0.0 }
0x1e2d   : > { %v8222_v43 = vpack.c.bf16 %v8221_v35, %v8221_v35 }
0x1e2f   : > { %12387 = vmatmul.mubr.msk.bf16.vlgmr.msra.gmra.mrb[128].mxu0 %vm16109_vm5, %v8222_v43  ;;  %12399 = vmatmul.mubr.msk.bf16.vlgmr.msra.gmra.mrb[108].mxu1 %vm16104_vm2, %v8222_v43 }
0x1e30   : > { %12404 = vmatprep.mubr.msk.f32.mxu0 %vm16076_vm14, %v14028_v28  ;;  %12421 = vmatprep.mubr.msk.f32.mxu1 %vm16076_vm14, %v14028_v28 }
0x1f02   : > { %v8292_v9 = vpop.f32.mrb[128].mxu0  ;;  %v8374_v10 = vpop.f32.mrb[108].mxu1 }
0x1f03   : > { %v12388_v53 = vpop.f32.mrb[129].mxu0  ;;  %v12400_v40 = vpop.f32.mrb[109].mxu1  ;;  %12403 = vmatpush3.msk.msra.mxu0 %vm7621_vm10, %v8292_v9  ;;  %12420 = vmatpush3.msk.msra.mxu1 %vm7621_vm10, %v8374_v10 }
0x1f04   : > { %v8295_v11 = vpop.f32.mrb[130].mxu0  ;;  %v8377_v56 = vpop.f32.mrb[110].mxu1  ;;  %12407 = vmatprep.subr.bf16.mxu0 %v14028_v28  ;;  %12405 = vmatmul.mubr.msk.f32.vlgmr.msra.gmra.mrb[132].mxu0 %vm7618_vm0, %v14634_v29  ;;  %v13287_v29 = vld [vmem:[#allocation23 + $0x30] sm:$0xff]   ;;  %v13333_v53 = vld [vmem:[%s16114_s12 + $0xc4] ss:$8 sps:$4 sm:$0xff]  }
0x1f05   : > { %v12389_v44 = vpop.f32.mrb[131].mxu0  ;;  %v12401_v12 = vpop.f32.mrb[111].mxu1  ;;  %12408 = vmatpush3.bf16.msra.mxu0 %v13285_v8  ;;  %12415 = vmatprep.mubr.msk.bf16.mxu0 %vm16076_vm14, %v14028_v28  ;;  %v13331_v40 = vld [vmem:[%s16114_s12 + $0xc0] ss:$8 sps:$4 sm:$0xff]   ;;  %v13336_v11 = vld [vmem:[%s16114_s12 + $0xd4] ss:$8 sps:$4 sm:$0xff]  }
0x1f06   : > { %12409 = vmatprep.subr.bf16.mxu0 %v14028_v28  ;;  %12422 = vmatmul.mubr.msk.f32.vlgmr.msra.gmra.mrb[112].mxu1 %vm7618_vm0, %v14674_v57  ;;  %v13288_v57 = vld [vmem:[#allocation23 + $0x38] sm:$0xff]   ;;  %v13334_v56 = vld [vmem:[%s16114_s12 + $0xd0] ss:$8 sps:$4 sm:$0xff]  }
0x1f07   : > { %12766 = vmatprep.subr.bf16.mxu1 %v14031_v31  ;;  %12440 = vmatprep.mubr.msk.f32.mxu1 %vm16076_vm14, %v14028_v28  ;;  %v13339_v44 = vld [vmem:[%s16114_s12 + $0xe4] ss:$8 sps:$4 sm:$0xff]   ;;  %v13337_v12 = vld [vmem:[%s16114_s12 + $0xe0] ss:$8 sps:$4 sm:$0xff]  }
0x1f08   : > { %12768 = vmatpush3.bf16.msk.msra.mxu1 %vm14751_vm13, %v14029_v63  ;;  %vm16110_vm13 = vmmov %vm16104_vm2 }
0x1f09   : > { %12410 = vmatpush3.bf16.msra.mxu0 %v13286_v13  ;;  %12769 = vmatprep.subr.bf16.mxu1 %v14031_v31  ;;  %v13340_v13 = vld [vmem:[%s16114_s12 + $0xf0] ss:$8 sps:$4 sm:$0xff]  }
0x1f0a   : > { %12411 = vmatprep.subr.bf16.mxu0 %v14028_v28 }
0x1f0c   : > { %12771 = vmatpush3.bf16.msk.msra.mxu1 %vm14766_vm4, %v14029_v63  ;;  %vm16111_vm4 = vmmov %vm16104_vm2 }
0x1f0d   : > { %12412 = vmatpush3.bf16.msra.mxu0 %v13287_v29  ;;  %12772 = vmatprep.subr.bf16.mxu1 %v14031_v31  ;;  %v13342_v29 = vld [vmem:[%s16114_s12 + $0xf4] ss:$8 sps:$4 sm:$0xff]  }
0x1f0e   : > { %12413 = vmatprep.subr.bf16.mxu0 %v14028_v28 }
0x1f10   : > { %12774 = vmatpush3.bf16.msk.msra.mxu1 %vm14802_vm11, %v14029_v63  ;;  %vm16115_vm11 = vcmask 261120  }
0x1f11   : > { %12414 = vmatpush3.bf16.msra.mxu0 %v13288_v57  ;;  %12775 = vmatprep.subr.bf16.mxu1 %v14031_v31  ;;  %v13343_v57 = vld [vmem:[%s16116_s23 + $0x40] sm:$0xff]  }
0x1f12   : > { %12778 = vmatprep.subr.bf16.mxu0 %v14031_v31 }
0x1f14   : > { %12416 = vmatmul.mubr.msk.bf16.vlgmr.msra.gmra.mrb[136].mxu0 %vm16110_vm13, %v8222_v43  ;;  %12777 = vmatpush3.bf16.msk.msra.mxu1 %vm16070_vm6, %v14029_v63 }
0x1f15   : > { %12780 = vmatpush3.bf16.msk.msra.mxu0 %vm14774_vm7, %v14029_v63  ;;  %12459 = vmatprep.mubr.msk.f32.mxu0 %vm16076_vm14, %v14028_v28  ;;  %vm16112_vm7 = vmmov %vm16104_vm2 }
0x1f16   : > { %12781 = vmatprep.subr.bf16.mxu0 %v14031_v31  ;;  %12462 = vmatprep.subr.mxu1 %v14028_v28 }
0x1f19   : > { %12783 = vmatpush3.bf16.msk.msra.mxu0 %vm14789_vm8, %v14029_v63  ;;  %vm8892_vm8 = vcmask 253952  }
0x1f1a   : > { %12784 = vmatprep.subr.bf16.mxu0 %v14031_v31 }
0x1f1d   : > { %12786 = vmatpush3.bf16.msk.msra.mxu0 %vm14814_vm1, %v14029_v63  ;;  %vm15813_vm1 = vcmp.lt.s32.totalorder %v1735_v23, 256  ;;  %v13358_v23 = vld [vmem:[%s16116_s23 + $0x38] sm:$0xff]  }
0x1f1e   : > { %12787 = vmatprep.subr.bf16.mxu0 %v14031_v31 }
0x1f21   : > { %12789 = vmatpush3.bf16.msk.msra.mxu0 %vm16098_vm3, %v14029_v63  ;;  %v13289_v63 = vld [vmem:[#allocation26] ss:$8 sps:$4 sm:$0xff]  }
0x1f22   : > { %8923 = vmatprep.subr.bf16.mxu0 %v13291_v21 }
0x1fd7   : > { %v8449_v61 = vpop.f32.mrb[132].mxu0 }
0x1fd8   : > { %v12406_v15 = vpop.f32.mrb[133].mxu0 }
0x1fd9   : > { %v8586_v16 = vpop.f32.mrb[112].mxu1  ;;  %v13345_v15 = vld [vmem:[%s16116_s23 + $0x48] sm:$0xff]  }
0x1fda   : > { %v12423_v45 = vpop.f32.mrb[113].mxu1 }
0x1fdb   : > { %v13347_v45 = vld [vmem:[%s16116_s23 + $0x50] sm:$0xff]  }
0x1fe7   : > { %v8511_v20 = vpop.f32.mrb[136].mxu0 }
0x1fe8   : > { %v8512_v14 = vadd.f32 %v8511_v20, %v8449_v61  ;;  %v12417_v36 = vpop.f32.mrb[137].mxu0  ;;  %v13344_v61 = vld [vmem:[%s16116_s23] sm:$0xff]   ;;  %v13348_v20 = vld [vmem:[%s16116_s23 + $0x10] sm:$0xff]  }
0x1fe9   : > { %v8514_v17 = vpop.f32.mrb[138].mxu0  ;;  %v13350_v36 = vld [vmem:[%s16116_s23 + $0x18] sm:$0xff]  }
0x1fea   : > { %v8590_v24 = vadd.f32 %v8586_v16, %v8512_v14  ;;  %v12418_v32 = vpop.f32.mrb[139].mxu0  ;;  %v13346_v16 = vld [vmem:[%s16116_s23 + $0x8] sm:$0xff]   ;;  %v13349_v14 = vld [vmem:[%s16116_s23 + $0x58] sm:$0xff]   ;;  %v13351_v17 = vld [vmem:[%s16116_s23 + $0x60] sm:$0xff]  }
0x1feb   : > { %v13354_v32 = vld [vmem:[%s16116_s23 + $0x28] sm:$0xff]  }
0x1fec   : > { %v8598_v37 = vadd.f32 %v10625_v18, %v8590_v24  ;;  %v13352_v18 = vld [vmem:[%s16116_s23 + $0x20] sm:$0xff]   ;;  %v13353_v24 = vld [vmem:[%s16116_s23 + $0x68] sm:$0xff]  }
0x1fee   : > { %v8599_v19 = vmax.f32 %v8598_v37, 0.0  ;;  %v14033_v37 = vmov 1966171168  }
0x1ff0   : > { %12441 = vmatmul.mubr.msk.f32.vlgmr.msra.gmra.mrb[114].mxu1 %vm16111_vm4, %v8599_v19  ;;  %12460 = vmatmul.mubr.msk.f32.vlgmr.msra.gmra.mrb[134].mxu0 %vm16112_vm7, %v8599_v19  ;;  %v8968_v19 = vunpack.c.l.s4 %v14033_v37 }
0x1ff1   : > { %12464 = vmatprep.mubr.msk.f32.mxu1 %vm16076_vm14, %v14028_v28  ;;  %8924 = vmatpush1.bf16.msra.mxu0 %v13289_v63 }
0x1ff2   : > { %8925 = vmatprep.subr.bf16.mxu0 %v13294_v47  ;;  %v8969_v63 = vunpack.c.0.s8 %v8968_v19 }
0x1ff5   : > { %8926 = vmatpush1.bf16.msra.mxu0 %v13292_v48  ;;  %v8895_v48 = vld [vmem:[%s16117_s10] sm:$0x3]  ;;  %s10701_s10 = sshll.u32 %s14267_s7, 4 }
0x1ff6   : > { %11262 = vmatprep.subr.bf16.mxu0 %v13343_v57 }
0x20c3   : > { %v8669_v31 = vpop.f32.mrb[114].mxu1  ;;  %v8739_v38 = vpop.f32.mrb[134].mxu0 }
0x20c4   : > { %v8743_v41 = vmax.f32 %v8669_v31, %v8739_v38  ;;  %v12442_v42 = vpop.f32.mrb[115].mxu1  ;;  %v12461_v46 = vpop.f32.mrb[135].mxu0  ;;  %v8972_v31 = vsub.s32 %v8969_v63, %v14625_v25 }
0x20c6   : > { %12463 = vmatpush3.msk.msra.mxu1 %vm7621_vm10, %v8743_v41 }
0x20c7   : > { %12465 = vmatmul.mubr.msk.f32.vlgmr.msra.gmra.mrb[116].mxu1 %vm7618_vm0, %v14964_v22  ;;  %12467 = vmatprep.subr.mxu1 %v14028_v28  ;;  %v14032_v22 = vmov 0  }
0x20c8   : > { %12468 = vmatpush3.msk.msra.mxu1 %vm7621_vm10, %v8743_v41  ;;  %12469 = vmatprep.mubr.msk.f32.mxu1 %vm16076_vm14, %v14028_v28  ;;  %v13298_v28 = vld [vmem:[%s16114_s12 + $0x10] ss:$8 sps:$4 sm:$0xff]  }
0x20c9   : > { %8955 = vmatprep.mubr.bf16.mxu0 %v14032_v22  ;;  %9206 = vmatprep.subr.bf16.mxu1 %v13297_v50  ;;  %v8996_v50 = vsub.s32 1, %v14625_v25 }
0x20cb   : > { %12470 = vmatmul.mubr.msk.f32.vlgmr.msra.gmra.mrb[118].mxu1 %vm7618_vm0, %v14974_v0  ;;  %v13303_v0 = vld [vmem:[%s16114_s12 + $0x24] ss:$8 sps:$4 sm:$0xff]  }
0x20cc   : > { %9207 = vmatpush1.bf16.msra.mxu1 %v13295_v49 }
0x20cd   : > { %9208 = vmatprep.subr.bf16.mxu1 %v13300_v51  ;;  %v8992_v51 = vsub.s32 0, %v14625_v25  ;;  %v13356_v25 = vld [vmem:[%s16116_s23 + $0x30] sm:$0xff]  }
0x20d0   : > { %9209 = vmatpush1.bf16.msra.mxu1 %v13298_v28 }
0x20d1   : > { %9210 = vmatprep.subr.bf16.mxu1 %v13303_v0 }
0x20d4   : > { %9211 = vmatpush1.bf16.msra.mxu1 %v13301_v54 }
0x20d5   : > { %9212 = vmatprep.subr.bf16.mxu1 %v13306_v55 }
0x20d8   : > { %9213 = vmatpush1.bf16.msra.mxu1 %v13304_v58 }
0x20d9   : > { %9214 = vmatprep.subr.bf16.mxu1 %v13309_v59 }
0x20dc   : > { %9215 = vmatpush1.bf16.msra.mxu1 %v13307_v62  ;;  %v13355_v62 = vld [vmem:[%s16116_s23 + $0x70] sm:$0xff]  }
0x20dd   : > { %9216 = vmatprep.subr.bf16.mxu1 %v13312_v34  ;;  %v13357_v34 = vld [vmem:[%s16116_s23 + $0x78] sm:$0xff]  }
0x20e0   : > { %9217 = vmatpush1.bf16.msra.mxu1 %v13310_v1 }
0x20e1   : > { %9218 = vmatprep.subr.bf16.mxu1 %v13315_v2 }
0x20e4   : > { %9219 = vmatpush1.bf16.msra.mxu1 %v13313_v3 }
0x20e5   : > { %9220 = vmatprep.subr.bf16.mxu1 %v13318_v4 }
0x20e8   : > { %9221 = vmatpush1.bf16.msra.mxu1 %v13316_v5 }
0x20e9   : > { %9222 = vmatprep.subr.bf16.mxu1 %v13321_v52 }
0x20ec   : > { %9223 = vmatpush1.bf16.msra.mxu1 %v13319_v60 }
0x20ed   : > { %9224 = vmatprep.subr.bf16.mxu1 %v13324_v6 }
0x20f0   : > { %9225 = vmatpush1.bf16.msra.mxu1 %v13322_v26 }
0x20f1   : > { %9226 = vmatprep.subr.bf16.mxu1 %v13327_v7 }
0x20f4   : > { %9227 = vmatpush1.bf16.msra.mxu1 %v13325_v27 }
0x20f5   : > { %9228 = vmatprep.subr.bf16.mxu1 %v13330_v30 }
0x20f8   : > { %9229 = vmatpush1.bf16.msra.mxu1 %v13328_v33 }
0x20f9   : > { %9230 = vmatprep.subr.bf16.mxu1 %v13333_v53 }
0x20fc   : > { %9231 = vmatpush1.bf16.msra.mxu1 %v13331_v40 }
0x20fd   : > { %9232 = vmatprep.subr.bf16.mxu1 %v13336_v11 }
0x2100   : > { %9233 = vmatpush1.bf16.msra.mxu1 %v13334_v56 }
0x2101   : > { %9234 = vmatprep.subr.bf16.mxu1 %v13339_v44 }
0x2104   : > { %9235 = vmatpush1.bf16.msra.mxu1 %v13337_v12 }
0x2105   : > { %9236 = vmatprep.subr.bf16.mxu1 %v13342_v29 }
0x2108   : > { %9237 = vmatpush1.bf16.msra.mxu1 %v13340_v13 }
0x219a   : > { %v8815_v39 = vpop.f32.mrb[116].mxu1 }
0x219b   : > { %v12466_v35 = vpop.f32.mrb[117].mxu1 }
0x219e   : > { %v8887_v43 = vpop.f32.mrb[118].mxu1 }
0x219f   : > { %v8891_v8 = vmax.f32 %v8815_v39, %v8887_v43  ;;  %v12471_v9 = vpop.f32.mrb[119].mxu1 }
0x21a1   : > { %v8894_v10 = vpack.c.bf16 %v8891_v8, %v8891_v8  ;;  %8893 = vst.msk [vmem:[%s15946_s2] sm:$0x1] %vm8892_vm8, %v8891_v8  ;;  %s16120_s2 = sld [smem:[#allocation65_spill]] }
0x21a3   : > { %10652 = vmatmul.mubr.msk.bf16.vlgmr.msra.gmra.mrb[140].mxu0 %vm16115_vm11, %v8894_v10 }
0x21a4   : > { %11263 = vmatpush3.bf16.msra.mxu0 %v13344_v61 }
0x21a5   : > { %11264 = vmatprep.subr.bf16.mxu0 %v13345_v15 }
0x21a7   : > { %v9034_v1 = vld [vmem:[%s16120_s2] sm:$0x3]  ;;  %s1512_s2 = scalar_lea.vmem %s14239_s21, %s15615_s16  ;;  %s13839_s16 = sshll.u32 %s14034_s8, 4  ;;  %s13840_s16 = int_to_ptr.vmem [resolvable:$false] %s13839_s16 }
0x21a8   : > { %11265 = vmatpush3.bf16.msra.mxu0 %v13346_v16  ;;  %v9199_v2 = vrot.slane %v9034_v1, %v8992_v51  ;;  %v9203_v3 = vrot.slane %v9034_v1, %v8996_v50  ;;  %s13841_s11 = scalar_lea.vmem %s13840_s16, 32  ;;  %p13842_p4 = scmp.lt.s32.totalorder %s9496_s4, %s13840_s16 }
0x21a9   : > { %11266 = vmatprep.subr.bf16.mxu0 %v13347_v45  ;;  %p13843_p7 = scmp.lt.s32.totalorder %s13841_s11, %s13835_s6 }
0x21ab   : > { %p13844_p8 = por %p13843_p7, %p13842_p4 }
0x21ac   : > { %11267 = vmatpush3.bf16.msra.mxu0 %v13348_v20 }
0x21ad   : > { %11268 = vmatprep.subr.bf16.mxu0 %v13349_v14  ;;  %p13845_p11 = pnand %p13844_p8, %p13838_p3 }
0x21b0   : > { %11269 = vmatpush3.bf16.msra.mxu0 %v13350_v36 }
0x21b1   : > { %11270 = vmatprep.subr.bf16.mxu0 %v13351_v17 }
0x21b4   : > { %11271 = vmatpush3.bf16.msra.mxu0 %v13352_v18 }
0x21b5   : > { %11272 = vmatprep.subr.bf16.mxu0 %v13353_v24 }
0x21b8   : > { %11273 = vmatpush3.bf16.msra.mxu0 %v13354_v32 }
0x21b9   : > { %11274 = vmatprep.subr.bf16.mxu0 %v13355_v62 }
0x21bc   : > { %11275 = vmatpush3.bf16.msra.mxu0 %v13356_v25 }
0x21bd   : > { %11276 = vmatprep.subr.bf16.mxu0 %v13357_v34 }
0x21c0   : > { %11277 = vmatpush3.bf16.msra.mxu0 %v13358_v23 }
0x2276   : > { %v8957_v21 = vpop.f32.mrb[140].mxu0 }
0x2277   : > { %v8959_v38 = vpop.f32.mrb[141].mxu0 }
0x2278   : > { %v8966_v41 = vcombine.low %v8957_v21, %v8959_v38  ;;  %v8961_v42 = vpop.f32.mrb[142].mxu0 }
0x2279   : > { %v8962_v46 = vpop.f32.mrb[143].mxu0 }
0x227a   : > { %v8973_v47 = vrot.slane %v8966_v41, %v8972_v31 }
0x227c   : > { %v8980_v22 = vrot.slane %v8973_v47, %v8972_v31 }
0x227e   : > { %v8982_v49 = vadd.f32 %v8980_v22, %v8895_v48 }
0x2280   : > { %v8983_v0 = vmax.f32 %v8982_v49, 0.0 }
0x2282   : > { %8988 = vst.msk [vmem:[%s1508_s28] sm:$0x3] %vm15813_vm1, %v8983_v0  ;;  %v8997_v54 = vrot.slane %v8983_v0, %v8996_v50  ;;  %v8993_v55 = vrot.slane %v8983_v0, %v8992_v51  ;;  %s15832_s28 = scalar_lea.hbm %s14229_s9, %s10701_s10 }
0x2284   : > { %v9001_v58 = vpack.c.bf16 %v8997_v54, %v8997_v54  ;;  %v9000_v59 = vpack.c.bf16 %v8993_v55, %v8993_v55 }
0x2286   : > { %9238 = vmatprep.mubr.bf16.mxu1 %v9001_v58 }
0x2287   : > { %9239 = vmatmul.mubr.bf16.vlgmr.msra.gmra.mrb[120].mxu1 %v9000_v59 }
0x235a   : > { %v9240_v4 = vpop.f32.mrb[120].mxu1 }
0x235b   : > { %v9241_v5 = vadd.f32 %v9240_v4, %v9199_v2  ;;  %v9242_v52 = vpop.f32.mrb[121].mxu1 }
0x235c   : > { %v9243_v60 = vadd.f32 %v9242_v52, %v9203_v3  ;;  %v9244_v6 = vpop.f32.mrb[122].mxu1 }
0x235d   : > { %v9247_v26 = vmax.f32 %v9241_v5, 0.0  ;;  %v9245_v7 = vpop.f32.mrb[123].mxu1 }
0x235e   : > { %v9248_v27 = vmax.f32 %v9243_v60, 0.0 }
0x235f   : > { %v9268_v39 = vpack.c.bf16 %v9247_v26, %v9247_v26 }
0x2360   : > { %v9251_v30 = vcombine.low %v9247_v26, %v9248_v27  ;;  %v9269_v33 = vpack.c.bf16 %v9248_v27, %v9248_v27 }
0x2362   : > { %v9258_v35 = vrot.slane %v9251_v30, %v8972_v31  ;;  %9431 = vmatprep.mubr.bf16.mxu0 %v9269_v33 }
0x2363   : > { %9432 = vmatmul.mubr.bf16.vlgmr.msra.gmra.mrb[144].mxu0 %v9268_v39 }
0x2364   : > { %v9265_v43 = vrot.slane %v9258_v35, %v8972_v31 }
0x2366   : > { %9267 = vst.msk [vmem:[%s1512_s2] sm:$0x3] %vm15813_vm1, %v9265_v43 }
0x2367   : > { %13848 = shalt.err (!%p13845_p11)
}
0x2368   : > { %s13849_s3 = scalar_lea.hbm %s15832_s28, 16  ;;  %s13853_s8 = scalar_lea.hbm %s14229_s9, 32 }
0x2369   : > { %p13850_p13 = scmp.ne.s32.totalorder %s15832_s28, %s13849_s3  ;;  %p13854_p0 = scmp.lt.u32.totalorder %s15832_s28, %s14229_s9 }
0x236a   : > { %p13855_p9 = scmp.lt.u32.totalorder %s13853_s8, %s13849_s3  ;;  %p13857_p12 = scmp.lt.u32.totalorder %s13849_s3, %s15832_s28 }
0x236b   : > { %p13851_p6 = pnand %p13850_p13, %p16122_p1 }
0x236c   : > { %p13856_p10 = por %p13855_p9, %p13854_p0 }
0x236d   : > { %p13852_p5 = pneg %p13851_p6 }
0x236e   : > { %p13858_p2 = por %p13857_p12, %p13856_p10 }
0x2370   : > { %p13859_p3 = pnand %p13858_p2, %p13852_p5 }
0x2372   : > { %13862 = shalt.err (!%p13859_p3)
}
0x2373   : > { %s16123_s6 = sld [smem:[#allocation72_spill]]  ;;  %v9302_v9 = vld [vmem:[#allocation28] sm:$0x1]  ;;  %s1482_s11 = scalar_lea.vmem [#allocation30], %s15780_s0  ;;  %vm9439_vm14 = vcmask 516096  }
0x2374   : > { %12858 = dma.vmem_to_hbm [thread:$0]  (%p16122_p1), %s9496_s4, 16, %s15832_s28, %s9459_s5  }
0x2375   : > { %s9514_s2 = sshll.u32 %s1482_s11, 4  ;;  %s9471_s4 = scalar_lea.sflag [#allocation31], %s15780_s0  ;;  %s15856_s2 = int_to_ptr.vmem [resolvable:$true] %s9514_s2 }
0x2376   : > { %s13863_s5 = scalar_lea.vmem %s15856_s2, 16  ;;  %s14035_s28 = smov [#allocation30]  }
0x2377   : > { %p13864_p4 = scmp.ne.s32.totalorder %s15856_s2, %s13863_s5  ;;  %s13867_s3 = sshll.u32 %s14035_s28, 4  ;;  %s13868_s3 = int_to_ptr.vmem [resolvable:$false] %s13867_s3 }
0x2378   : > { %s13869_s8 = scalar_lea.vmem %s13868_s3, 32  ;;  %p13870_p11 = scmp.lt.s32.totalorder %s15856_s2, %s13868_s3 }
0x2379   : > { %s15854_s16 = scalar_lea.hbm %s16123_s6, %s10701_s10  ;;  %p13865_p7 = pnand %p13864_p4, %p16122_p1 }
0x237a   : > { %p13871_p13 = scmp.lt.s32.totalorder %s13869_s8, %s13863_s5 }
0x237b   : > { %p13866_p8 = pneg %p13865_p7 }
0x237c   : > { %p13872_p6 = por %p13871_p13, %p13870_p11 }
0x237e   : > { %p13873_p5 = pnand %p13872_p6, %p13866_p8 }
0x2436   : > { %v11278_v8 = vpop.f32.mrb[144].mxu0 }
0x2437   : > { %v11279_v10 = vpop.f32.mrb[145].mxu0 }
0x2438   : > { %v11280_v53 = vadd.f32 %v11279_v10, %v11278_v8  ;;  %v11281_v40 = vpop.f32.mrb[146].mxu0 }
0x2439   : > { %v11282_v11 = vpop.f32.mrb[147].mxu0 }
0x243a   : > { %v9434_v56 = vadd.f32 %v11280_v53, %v9302_v9 }
0x243c   : > { %9440 = vst.msk [vmem:[%s1482_s11] sm:$0x1] %vm9439_vm14, %v9434_v56 }
0x243d   : > { %13876 = shalt.err (!%p13873_p5)
}
0x243e   : > { %s13877_s7 = scalar_lea.hbm %s15854_s16, 16  ;;  %s13881_s0 = scalar_lea.hbm %s16123_s6, 32 }
0x243f   : > { %p13878_p0 = scmp.ne.s32.totalorder %s15854_s16, %s13877_s7  ;;  %p13882_p12 = scmp.lt.u32.totalorder %s15854_s16, %s16123_s6 }
0x2440   : > { %p13883_p2 = scmp.lt.u32.totalorder %s13881_s0, %s13877_s7  ;;  %p13885_p4 = scmp.lt.u32.totalorder %s13877_s7, %s15854_s16 }
0x2441   : > { %p13879_p9 = pnand %p13878_p0, %p16122_p1 }
0x2442   : > { %p13884_p3 = por %p13883_p2, %p13882_p12 }
0x2443   : > { %p13880_p10 = pneg %p13879_p9 }
0x2444   : > { %p13886_p7 = por %p13885_p4, %p13884_p3 }
0x2446   : > { %p13887_p8 = pnand %p13886_p7, %p13880_p10 }
0x2448   : > { %13890 = shalt.err (!%p13887_p8)
}
0x2449   : > { %12859 = dma.vmem_to_hbm [thread:$0]  (%p16122_p1), %s15856_s2, 16, %s15854_s16, %s9471_s4  }
0x244a PF: > { %s16124_s10 = sld [smem:[#allocation75_spill]]  ;;  %s16125_s11 = sld [smem:[#allocation73_spill]] }
0x244b   : > { %s16126_s5 = sld [smem:[#allocation78_spill]] }
0x2450   : > { %p12955_p11 = scmp.ge.s32.totalorder %s16124_s10, 2  ;;  %s9555_s28 = sand.u32 1, %s16125_s11  }
0x2451   : > { %p16127_p13 = scmp.ne.s32.totalorder %s16126_s5, 0  ;;  %s9556_s3 = scalar_lea.sflag [#allocation4], %s9555_s28 }
0x2453   : > { %p12915_p6 = pnand %p12955_p11, %p16127_p13 }
0x2455   : > { %13944 = dma.done.wait (!%p12915_p6), %s9556_s3, 16  }
0x2456   : > { %13946 = vsyncadd (!%p12915_p6), %s9556_s3, 4294967280  ;;  %s9578_s8 = scalar_lea.sflag [#allocation31], %s9555_s28 }
0x2457   : > { %13948 = dma.done.wait (!%p12915_p6), %s9578_s8, 16  }
0x2458   : > { %13950 = vsyncadd (!%p12915_p6), %s9578_s8, 4294967280  ;;  %s16128_s0 = sld [smem:[#allocation76_spill]]  ;;  %s16129_s22 = sld [smem:[#allocation74_spill]] }
0x2459   : > { %s16130_s2 = sld [smem:[#allocation77_spill]]  ;;  %s16131_s28 = smov %s13957_s1 }
0x245e   : > { %p104_p1 = scmp.ge.s32.totalorder %s16128_s0, 4   ;;  %s16132_s1 = smov %s16129_s22 }
0x2460   :  { %106 = sbr.rel (!%p104_p1) target bundleno = 95 (0x5f), region = 411 }
0x2467   :  { %9582 = vsyncpa [#allocation3], 1 }
0x2468   :  { %9584 = vsyncpa [#allocation3 + $0x1], 1 }
0x2469   :  { %9585 = vsyncpa [#allocation6], 1 }
0x246a   :  { %9586 = vsyncpa [#allocation9], 1 }
0x246b   :  { %9587 = vsyncpa [#allocation12], 1 }
0x246c   :  { %9588 = vsyncpa [#allocation15], 1 }
0x246d   :  { %9589 = vsyncpa [#allocation18], 1 }
0x246e   :  { %9590 = vsyncpa [#allocation21], 1 }
0x246f   :  { %9591 = vsyncpa [#allocation24], 1 }
0x2470   :  { %9592 = vsyncpa [#allocation27], 1 }
0x2471   :  { %9593 = vsyncpa [#allocation4], 1 }
0x2472   :  { %9595 = vsyncpa [#allocation4 + $0x1], 1 }
0x2473   :  { %9596 = vsyncpa [#allocation31], 1 }
0x2474   :  { %9598 = vsyncpa [#allocation31 + $0x1], 1 }

</bundles_post_ra>
